<compile_context>
chip_gen: v7x
topology: tpu7x:2x2x1
jax: 0.10.0
libtpu: 0.0.40
codegen_flags: <defaults>
</compile_context>

<pallas_src>
import functools

import numpy as np
import jax
import jax.numpy as jnp
from jax import lax
from jax.experimental import pallas as pl
from jax.experimental.pallas import tpu as pltpu


# ---------------------------------------------------------------------------
# Kernel: fused conv(kxk, valid) + bias + ReLU + 2x2/2 maxpool (+ optional fc).
#
#   x_ref    : (TB, 2, Hp, W*C)    f32   row-phase input: xph[b,a,i,w*C+c] = x[b,2i+a,w,c]
#   wbig_ref : (k, 2, W*C, PW*Co)  bf16  banded weights (see build_wbig)
#   bt_ref   : (1, PW*Co)          f32   bias tiled over pw
#   [wfc_ref : (PH, PW*Co, 10)     bf16] fc weight grouped by output row ph
#   [bfc_ref : (1, 10)             f32 ]
#   out_ref  : (TB, PH, PW*Co) f32  —or— (TB, 1, 10) f32 when with_fc
#
# Conv output at (2*ph+dh, 2*pw+dw) (pooling tap (dh, dw)) is
#     sum_kh  xph[b, (dh+kh)%2, (dh+kh)//2 + ph, :] @ wbig[kh, dw]
# i.e. k dense matmuls on unit-stride slices of the VMEM-resident input block.
# max over the 4 taps == the 2x2/stride-2 maxpool.
# ---------------------------------------------------------------------------
def _conv_pool_kernel(*refs, k, ph, with_fc):
    if with_fc:
        x_ref, wbig_ref, bt_ref, wfc_ref, bfc_ref, out_ref = refs
    else:
        x_ref, wbig_ref, bt_ref, out_ref = refs
    tb = x_ref.shape[0]
    pwc = wbig_ref.shape[-1]

    for t in range(tb):                                   # static unroll (tb <= 4)
        acc = [[jnp.zeros((ph, pwc), jnp.float32) for _ in range(2)]
               for _ in range(2)]                         # acc[dh][dw]
        for s in range(k + 1):                            # s = dh + kh
            a, o = s % 2, s // 2
            xs = x_ref[t, a, o:o + ph, :].astype(jnp.bfloat16)   # (ph, W*C)
            for dh in range(2):
                kh = s - dh
                if 0 <= kh < k:
                    for dw in range(2):
                        acc[dh][dw] += jnp.dot(
                            xs, wbig_ref[kh, dw],
                            preferred_element_type=jnp.float32)
        pooled = jnp.maximum(jnp.maximum(acc[0][0], acc[0][1]),
                             jnp.maximum(acc[1][0], acc[1][1]))
        y = jnp.maximum(pooled + bt_ref[...], 0.0)        # bias + ReLU after max

        if with_fc:
            yb = y.astype(jnp.bfloat16)
            logits = bfc_ref[...]                         # (1, 10) f32
            for r in range(ph):                           # fc as ph row-matmuls (no reshape)
                logits = logits + jnp.dot(yb[r:r + 1, :], wfc_ref[r],
                                          preferred_element_type=jnp.float32)
            out_ref[t] = logits
        else:
            out_ref[t] = y.astype(out_ref.dtype)


def _pick_tb(batch, cap=4):
    """Largest divisor of batch that is <= cap and keeps >= 2 grid steps."""
    best = 1
    for tb in range(1, min(cap, batch) + 1):
        if batch % tb == 0 and (batch // tb >= 2 or batch == 1):
            best = tb
    return best


def conv_pool_call(xph, wbig, btile, *, fc=None):
    """Fused conv+bias+ReLU+maxpool (and optional fc epilogue) as one pallas_call."""
    B, _, Hp, WC = xph.shape
    k, _, WC2, PWC = wbig.shape
    assert WC == WC2
    PH = (2 * Hp - k + 1) // 2
    tb = _pick_tb(B)
    grid = (B // tb,)
    with_fc = fc is not None

    in_specs = [
        pl.BlockSpec((tb, 2, Hp, WC), lambda i: (i, 0, 0, 0)),   # batch-tiled input
        pl.BlockSpec((k, 2, WC, PWC), lambda i: (0, 0, 0, 0)),   # resident weights
        pl.BlockSpec((1, PWC), lambda i: (0, 0)),                # resident tiled bias
    ]
    operands = [xph, wbig, btile]
    if with_fc:
        wfc_r, bfc = fc
        in_specs += [
            pl.BlockSpec(wfc_r.shape, lambda i: (0, 0, 0)),      # resident fc weight
            pl.BlockSpec((1, 10), lambda i: (0, 0)),             # resident fc bias
        ]
        operands += [wfc_r, bfc]
        out_shape = jax.ShapeDtypeStruct((B, 1, 10), jnp.float32)
        out_spec = pl.BlockSpec((tb, 1, 10), lambda i: (i, 0, 0))
    else:
        out_shape = jax.ShapeDtypeStruct((B, PH, PWC), jnp.float32)
        out_spec = pl.BlockSpec((tb, PH, PWC), lambda i: (i, 0, 0))

    kernel = functools.partial(_conv_pool_kernel, k=k, ph=PH, with_fc=with_fc)
    return pl.pallas_call(
        kernel,
        out_shape=out_shape,
        grid=grid,
        in_specs=in_specs,
        out_specs=out_spec,
        compiler_params=pltpu.CompilerParams(
            dimension_semantics=("parallel",)),
    )(*operands)


# ---------------------------------------------------------------------------
# Cheap wrapper-side layout helpers (raw activation only, no amplification).
# ---------------------------------------------------------------------------
def to_row_phase(a_nhwc):
    """(B, H, W, C) -> (B, 2, H//2, W*C) with xph[b,a,i,w*C+c] = a[b, 2*i+a, w, c]."""
    B, H, W, C = a_nhwc.shape
    return a_nhwc.reshape(B, H // 2, 2, W * C).transpose(0, 2, 1, 3)


def build_wbig(w_oihw, W):
    """PyTorch conv weight (Cout, Cin, k, k) -> banded (k, 2, W*Cin, PW*Cout) bf16.

    wbig[kh, dw, w'*Cin + ci, pw*Cout + co] = w[co, ci, kh, w' - (2*pw + dw)]
    (zero outside the band), so one dense matmul of a full input row-slab
    against wbig[kh, dw] does the (kw, ci) contraction for every pooled column.
    Built once at setup time; zeros contribute exactly 0.
    """
    w = np.asarray(w_oihw, np.float32)
    Cout, Cin, KH, KW = w.shape
    PW = (W - KW + 1) // 2
    out = np.zeros((KH, 2, W * Cin, PW * Cout), np.float32)
    for kh in range(KH):
        for dw in range(2):
            for pw in range(PW):
                for kw in range(KW):
                    col = 2 * pw + dw + kw
                    out[kh, dw, col * Cin:(col + 1) * Cin,
                        pw * Cout:(pw + 1) * Cout] = w[:, :, kh, kw].T
    return jnp.asarray(out, jnp.bfloat16)


# ---------------------------------------------------------------------------
# Forward pass
# ---------------------------------------------------------------------------
def cnn_forward(x_nchw, params):
    """x: (B, 3, 32, 32) f32 NCHW (PyTorch convention). Returns logits (B, 10)."""
    wbig1, bt1, wbig2, bt2, wfc_r, bfc_r = params
    B = x_nchw.shape[0]
    x = jnp.transpose(x_nchw, (0, 2, 3, 1))                      # NHWC
    x1 = to_row_phase(x)                                         # (B, 2, 16, 96)

    # layer1: conv(3->16, k5) + ReLU + maxpool(2,2), fused; lane-dense output
    a1 = conv_pool_call(x1, wbig1, bt1)                          # (B, 14, 224) f32
    a1_nhwc = a1.reshape(B, 14, 14, 16)
    x2 = to_row_phase(a1_nhwc)                                   # (B, 2, 7, 224)

    # layer2: conv(16->32, k5) + ReLU + maxpool(2,2) + fc(800->10), all fused
    logits = conv_pool_call(x2, wbig2, bt2, fc=(wfc_r, bfc_r))   # (B, 1, 10)
    return logits.reshape(B, 10)


# ---------------------------------------------------------------------------
# Pure-JAX reference with the same bf16-operand / f32-accumulate quantization.
# ---------------------------------------------------------------------------
def reference_forward(x, w1, b1, w2, b2, wfc, bfc):
    def conv_relu_pool_ref(x_nchw, w, b):
        y = lax.conv_general_dilated(
            x_nchw.astype(jnp.bfloat16), w.astype(jnp.bfloat16), (1, 1), "VALID",
            dimension_numbers=("NCHW", "OIHW", "NCHW"),
            preferred_element_type=jnp.float32)
        y = jnp.maximum(y + b.reshape(1, -1, 1, 1), 0.0)
        B, C, H, W = y.shape
        return y.reshape(B, C, H // 2, 2, W // 2, 2).max(axis=(3, 5))

    o1 = conv_relu_pool_ref(x, w1, b1)
    o2 = conv_relu_pool_ref(o1, w2, b2)
    flat = o2.reshape(x.shape[0], -1)
    return jnp.dot(flat.astype(jnp.bfloat16), wfc.T.astype(jnp.bfloat16),
                   preferred_element_type=jnp.float32) + bfc


# ---------------------------------------------------------------------------
if __name__ == "__main__":
    key = jax.random.PRNGKey(0)
    ks = jax.random.split(key, 7)
    B = 2
    # SVHN-sized input: fc in_dim = 32*5*5 forces 3x32x32 spatial input.
    x = jax.random.normal(ks[0], (B, 3, 32, 32), jnp.float32)

    # Deterministic synthetic parameters (PyTorch layouts).
    w1 = jax.random.normal(ks[1], (16, 3, 5, 5), jnp.float32) * 0.10
    b1 = jax.random.normal(ks[2], (16,), jnp.float32) * 0.10
    w2 = jax.random.normal(ks[3], (32, 16, 5, 5), jnp.float32) * 0.05
    b2 = jax.random.normal(ks[4], (32,), jnp.float32) * 0.10
    wfc = jax.random.normal(ks[5], (10, 800), jnp.float32) * 0.05
    bfc = jax.random.normal(ks[6], (10,), jnp.float32) * 0.10

    # One-time repacking into kernel-friendly layouts.
    wbig1 = build_wbig(w1, W=32)                         # (5, 2, 96, 224) bf16
    wbig2 = build_wbig(w2, W=14)                         # (5, 2, 224, 160) bf16
    bt1 = jnp.tile(b1, 14).reshape(1, 14 * 16)           # (1, 224) f32, col = pw*16+co
    bt2 = jnp.tile(b2, 5).reshape(1, 5 * 32)             # (1, 160) f32
    # fc weight: PyTorch flattens (c, h, w); regroup to (ph, pw*C + c, out).
    wfc_r = (wfc.reshape(10, 32, 5, 5).transpose(2, 3, 1, 0)
                .reshape(5, 5 * 32, 10).astype(jnp.bfloat16))
    bfc_r = bfc.reshape(1, 10)

    params = (wbig1, bt1, wbig2, bt2, wfc_r, bfc_r)

    out = jax.block_until_ready(jax.jit(cnn_forward)(x, params))
    ref = reference_forward(x, w1, b1, w2, b2, wfc, bfc)

    assert out.shape == (B, 10), out.shape
    err = float(jnp.max(jnp.abs(out - ref)))
    assert jnp.allclose(out, ref, rtol=2e-2, atol=2e-2), err
    print("KERNEL_OK")
</pallas_src>

<mosaic_0001>
module attributes {stable_mosaic.version = 11 : i64} {
  func.func @_conv_pool_kernel(%arg0: i32, %arg1: memref<1x2x16x96xf32, #tpu.memory_space<vmem>>, %arg2: memref<5x2x96x224xbf16, #tpu.memory_space<vmem>>, %arg3: memref<1x224xf32, #tpu.memory_space<vmem>>, %arg4: memref<1x14x224xf32, #tpu.memory_space<vmem>>) attributes {dimension_semantics = [#tpu.dimension_semantics<parallel>], iteration_bounds = array<i64: 2>, scalar_prefetch = 0 : i64, scratch_operands = 0 : i64, tpu.core_type = #tpu.core_type<tc>, window_params = [{transform_indices = @transform_0, window_bounds = array<i64: 1, 2, 16, 96>}, {pipeline_mode = #tpu.pipeline_mode<synchronous>, transform_indices = @transform_1, window_bounds = array<i64: 5, 2, 96, 224>}, {pipeline_mode = #tpu.pipeline_mode<synchronous>, transform_indices = @transform_2, window_bounds = array<i64: 1, 224>}, {transform_indices = @transform_3, window_bounds = array<i64: 1, 14, 224>}]} {
    %cst = arith.constant 0.000000e+00 : f32
    %0 = vector.broadcast %cst : f32 to vector<14x224xf32>
    %cst_0 = arith.constant 0.000000e+00 : f32
    %1 = vector.broadcast %cst_0 : f32 to vector<14x224xf32>
    %cst_1 = arith.constant 0.000000e+00 : f32
    %2 = vector.broadcast %cst_1 : f32 to vector<14x224xf32>
    %cst_2 = arith.constant 0.000000e+00 : f32
    %3 = vector.broadcast %cst_2 : f32 to vector<14x224xf32>
    %c0 = arith.constant 0 : index
    %c0_3 = arith.constant 0 : index
    %c0_4 = arith.constant 0 : index
    %c0_5 = arith.constant 0 : index
    %4 = vector.load %arg1[%c0, %c0_3, %c0_4, %c0_5] : memref<1x2x16x96xf32, #tpu.memory_space<vmem>>, vector<1x1x14x96xf32>
    %5 = vector.shape_cast %4 : vector<1x1x14x96xf32> to vector<14x96xf32>
    %6 = arith.truncf %5 : vector<14x96xf32> to vector<14x96xbf16>
    %c0_6 = arith.constant 0 : index
    %c0_7 = arith.constant 0 : index
    %c0_8 = arith.constant 0 : index
    %c0_9 = arith.constant 0 : index
    %7 = vector.load %arg2[%c0_6, %c0_7, %c0_8, %c0_9] : memref<5x2x96x224xbf16, #tpu.memory_space<vmem>>, vector<1x1x96x224xbf16>
    %8 = vector.shape_cast %7 : vector<1x1x96x224xbf16> to vector<96x224xbf16>
    %cst_10 = arith.constant dense<0.000000e+00> : vector<14x224xf32>
    %9 = tpu.matmul %6, %8, %cst_10 {dimension_numbers = #tpu.dot_dimension_numbers<[1], [0], [0], [1], [0, 0, 1, 1], [], []>} : vector<14x96xbf16>, vector<96x224xbf16>, vector<14x224xf32> -> vector<14x224xf32>
    %10 = arith.addf %0, %9 : vector<14x224xf32>
    %c0_11 = arith.constant 0 : index
    %c1 = arith.constant 1 : index
    %c0_12 = arith.constant 0 : index
    %c0_13 = arith.constant 0 : index
    %11 = vector.load %arg2[%c0_11, %c1, %c0_12, %c0_13] : memref<5x2x96x224xbf16, #tpu.memory_space<vmem>>, vector<1x1x96x224xbf16>
    %12 = vector.shape_cast %11 : vector<1x1x96x224xbf16> to vector<96x224xbf16>
    %cst_14 = arith.constant dense<0.000000e+00> : vector<14x224xf32>
    %13 = tpu.matmul %6, %12, %cst_14 {dimension_numbers = #tpu.dot_dimension_numbers<[1], [0], [0], [1], [0, 0, 1, 1], [], []>} : vector<14x96xbf16>, vector<96x224xbf16>, vector<14x224xf32> -> vector<14x224xf32>
    %14 = arith.addf %1, %13 : vector<14x224xf32>
    %c0_15 = arith.constant 0 : index
    %c1_16 = arith.constant 1 : index
    %c0_17 = arith.constant 0 : index
    %c0_18 = arith.constant 0 : index
    %15 = vector.load %arg1[%c0_15, %c1_16, %c0_17, %c0_18] : memref<1x2x16x96xf32, #tpu.memory_space<vmem>>, vector<1x1x14x96xf32>
    %16 = vector.shape_cast %15 : vector<1x1x14x96xf32> to vector<14x96xf32>
    %17 = arith.truncf %16 : vector<14x96xf32> to vector<14x96xbf16>
    %c1_19 = arith.constant 1 : index
    %c0_20 = arith.constant 0 : index
    %c0_21 = arith.constant 0 : index
    %c0_22 = arith.constant 0 : index
    %18 = vector.load %arg2[%c1_19, %c0_20, %c0_21, %c0_22] : memref<5x2x96x224xbf16, #tpu.memory_space<vmem>>, vector<1x1x96x224xbf16>
    %19 = vector.shape_cast %18 : vector<1x1x96x224xbf16> to vector<96x224xbf16>
    %cst_23 = arith.constant dense<0.000000e+00> : vector<14x224xf32>
    %20 = tpu.matmul %17, %19, %cst_23 {dimension_numbers = #tpu.dot_dimension_numbers<[1], [0], [0], [1], [0, 0, 1, 1], [], []>} : vector<14x96xbf16>, vector<96x224xbf16>, vector<14x224xf32> -> vector<14x224xf32>
    %21 = arith.addf %10, %20 : vector<14x224xf32>
    %c1_24 = arith.constant 1 : index
    %c1_25 = arith.constant 1 : index
    %c0_26 = arith.constant 0 : index
    %c0_27 = arith.constant 0 : index
    %22 = vector.load %arg2[%c1_24, %c1_25, %c0_26, %c0_27] : memref<5x2x96x224xbf16, #tpu.memory_space<vmem>>, vector<1x1x96x224xbf16>
    %23 = vector.shape_cast %22 : vector<1x1x96x224xbf16> to vector<96x224xbf16>
    %cst_28 = arith.constant dense<0.000000e+00> : vector<14x224xf32>
    %24 = tpu.matmul %17, %23, %cst_28 {dimension_numbers = #tpu.dot_dimension_numbers<[1], [0], [0], [1], [0, 0, 1, 1], [], []>} : vector<14x96xbf16>, vector<96x224xbf16>, vector<14x224xf32> -> vector<14x224xf32>
    %25 = arith.addf %14, %24 : vector<14x224xf32>
    %c0_29 = arith.constant 0 : index
    %c0_30 = arith.constant 0 : index
    %c0_31 = arith.constant 0 : index
    %c0_32 = arith.constant 0 : index
    %26 = vector.load %arg2[%c0_29, %c0_30, %c0_31, %c0_32] : memref<5x2x96x224xbf16, #tpu.memory_space<vmem>>, vector<1x1x96x224xbf16>
    %27 = vector.shape_cast %26 : vector<1x1x96x224xbf16> to vector<96x224xbf16>
    %cst_33 = arith.constant dense<0.000000e+00> : vector<14x224xf32>
    %28 = tpu.matmul %17, %27, %cst_33 {dimension_numbers = #tpu.dot_dimension_numbers<[1], [0], [0], [1], [0, 0, 1, 1], [], []>} : vector<14x96xbf16>, vector<96x224xbf16>, vector<14x224xf32> -> vector<14x224xf32>
    %29 = arith.addf %2, %28 : vector<14x224xf32>
    %c0_34 = arith.constant 0 : index
    %c1_35 = arith.constant 1 : index
    %c0_36 = arith.constant 0 : index
    %c0_37 = arith.constant 0 : index
    %30 = vector.load %arg2[%c0_34, %c1_35, %c0_36, %c0_37] : memref<5x2x96x224xbf16, #tpu.memory_space<vmem>>, vector<1x1x96x224xbf16>
    %31 = vector.shape_cast %30 : vector<1x1x96x224xbf16> to vector<96x224xbf16>
    %cst_38 = arith.constant dense<0.000000e+00> : vector<14x224xf32>
    %32 = tpu.matmul %17, %31, %cst_38 {dimension_numbers = #tpu.dot_dimension_numbers<[1], [0], [0], [1], [0, 0, 1, 1], [], []>} : vector<14x96xbf16>, vector<96x224xbf16>, vector<14x224xf32> -> vector<14x224xf32>
    %33 = arith.addf %3, %32 : vector<14x224xf32>
    %c0_39 = arith.constant 0 : index
    %c0_40 = arith.constant 0 : index
    %c1_41 = arith.constant 1 : index
    %c0_42 = arith.constant 0 : index
    %34 = vector.load %arg1[%c0_39, %c0_40, %c1_41, %c0_42] : memref<1x2x16x96xf32, #tpu.memory_space<vmem>>, vector<1x1x14x96xf32>
    %35 = vector.shape_cast %34 : vector<1x1x14x96xf32> to vector<14x96xf32>
    %36 = arith.truncf %35 : vector<14x96xf32> to vector<14x96xbf16>
    %c2 = arith.constant 2 : index
    %c0_43 = arith.constant 0 : index
    %c0_44 = arith.constant 0 : index
    %c0_45 = arith.constant 0 : index
    %37 = vector.load %arg2[%c2, %c0_43, %c0_44, %c0_45] : memref<5x2x96x224xbf16, #tpu.memory_space<vmem>>, vector<1x1x96x224xbf16>
    %38 = vector.shape_cast %37 : vector<1x1x96x224xbf16> to vector<96x224xbf16>
    %cst_46 = arith.constant dense<0.000000e+00> : vector<14x224xf32>
    %39 = tpu.matmul %36, %38, %cst_46 {dimension_numbers = #tpu.dot_dimension_numbers<[1], [0], [0], [1], [0, 0, 1, 1], [], []>} : vector<14x96xbf16>, vector<96x224xbf16>, vector<14x224xf32> -> vector<14x224xf32>
    %40 = arith.addf %21, %39 : vector<14x224xf32>
    %c2_47 = arith.constant 2 : index
    %c1_48 = arith.constant 1 : index
    %c0_49 = arith.constant 0 : index
    %c0_50 = arith.constant 0 : index
    %41 = vector.load %arg2[%c2_47, %c1_48, %c0_49, %c0_50] : memref<5x2x96x224xbf16, #tpu.memory_space<vmem>>, vector<1x1x96x224xbf16>
    %42 = vector.shape_cast %41 : vector<1x1x96x224xbf16> to vector<96x224xbf16>
    %cst_51 = arith.constant dense<0.000000e+00> : vector<14x224xf32>
    %43 = tpu.matmul %36, %42, %cst_51 {dimension_numbers = #tpu.dot_dimension_numbers<[1], [0], [0], [1], [0, 0, 1, 1], [], []>} : vector<14x96xbf16>, vector<96x224xbf16>, vector<14x224xf32> -> vector<14x224xf32>
    %44 = arith.addf %25, %43 : vector<14x224xf32>
    %c1_52 = arith.constant 1 : index
    %c0_53 = arith.constant 0 : index
    %c0_54 = arith.constant 0 : index
    %c0_55 = arith.constant 0 : index
    %45 = vector.load %arg2[%c1_52, %c0_53, %c0_54, %c0_55] : memref<5x2x96x224xbf16, #tpu.memory_space<vmem>>, vector<1x1x96x224xbf16>
    %46 = vector.shape_cast %45 : vector<1x1x96x224xbf16> to vector<96x224xbf16>
    %cst_56 = arith.constant dense<0.000000e+00> : vector<14x224xf32>
    %47 = tpu.matmul %36, %46, %cst_56 {dimension_numbers = #tpu.dot_dimension_numbers<[1], [0], [0], [1], [0, 0, 1, 1], [], []>} : vector<14x96xbf16>, vector<96x224xbf16>, vector<14x224xf32> -> vector<14x224xf32>
    %48 = arith.addf %29, %47 : vector<14x224xf32>
    %c1_57 = arith.constant 1 : index
    %c1_58 = arith.constant 1 : index
    %c0_59 = arith.constant 0 : index
    %c0_60 = arith.constant 0 : index
    %49 = vector.load %arg2[%c1_57, %c1_58, %c0_59, %c0_60] : memref<5x2x96x224xbf16, #tpu.memory_space<vmem>>, vector<1x1x96x224xbf16>
    %50 = vector.shape_cast %49 : vector<1x1x96x224xbf16> to vector<96x224xbf16>
    %cst_61 = arith.constant dense<0.000000e+00> : vector<14x224xf32>
    %51 = tpu.matmul %36, %50, %cst_61 {dimension_numbers = #tpu.dot_dimension_numbers<[1], [0], [0], [1], [0, 0, 1, 1], [], []>} : vector<14x96xbf16>, vector<96x224xbf16>, vector<14x224xf32> -> vector<14x224xf32>
    %52 = arith.addf %33, %51 : vector<14x224xf32>
    %c0_62 = arith.constant 0 : index
    %c1_63 = arith.constant 1 : index
    %c1_64 = arith.constant 1 : index
    %c0_65 = arith.constant 0 : index
    %53 = vector.load %arg1[%c0_62, %c1_63, %c1_64, %c0_65] : memref<1x2x16x96xf32, #tpu.memory_space<vmem>>, vector<1x1x14x96xf32>
    %54 = vector.shape_cast %53 : vector<1x1x14x96xf32> to vector<14x96xf32>
    %55 = arith.truncf %54 : vector<14x96xf32> to vector<14x96xbf16>
    %c3 = arith.constant 3 : index
    %c0_66 = arith.constant 0 : index
    %c0_67 = arith.constant 0 : index
    %c0_68 = arith.constant 0 : index
    %56 = vector.load %arg2[%c3, %c0_66, %c0_67, %c0_68] : memref<5x2x96x224xbf16, #tpu.memory_space<vmem>>, vector<1x1x96x224xbf16>
    %57 = vector.shape_cast %56 : vector<1x1x96x224xbf16> to vector<96x224xbf16>
    %cst_69 = arith.constant dense<0.000000e+00> : vector<14x224xf32>
    %58 = tpu.matmul %55, %57, %cst_69 {dimension_numbers = #tpu.dot_dimension_numbers<[1], [0], [0], [1], [0, 0, 1, 1], [], []>} : vector<14x96xbf16>, vector<96x224xbf16>, vector<14x224xf32> -> vector<14x224xf32>
    %59 = arith.addf %40, %58 : vector<14x224xf32>
    %c3_70 = arith.constant 3 : index
    %c1_71 = arith.constant 1 : index
    %c0_72 = arith.constant 0 : index
    %c0_73 = arith.constant 0 : index
    %60 = vector.load %arg2[%c3_70, %c1_71, %c0_72, %c0_73] : memref<5x2x96x224xbf16, #tpu.memory_space<vmem>>, vector<1x1x96x224xbf16>
    %61 = vector.shape_cast %60 : vector<1x1x96x224xbf16> to vector<96x224xbf16>
    %cst_74 = arith.constant dense<0.000000e+00> : vector<14x224xf32>
    %62 = tpu.matmul %55, %61, %cst_74 {dimension_numbers = #tpu.dot_dimension_numbers<[1], [0], [0], [1], [0, 0, 1, 1], [], []>} : vector<14x96xbf16>, vector<96x224xbf16>, vector<14x224xf32> -> vector<14x224xf32>
    %63 = arith.addf %44, %62 : vector<14x224xf32>
    %c2_75 = arith.constant 2 : index
    %c0_76 = arith.constant 0 : index
    %c0_77 = arith.constant 0 : index
    %c0_78 = arith.constant 0 : index
    %64 = vector.load %arg2[%c2_75, %c0_76, %c0_77, %c0_78] : memref<5x2x96x224xbf16, #tpu.memory_space<vmem>>, vector<1x1x96x224xbf16>
    %65 = vector.shape_cast %64 : vector<1x1x96x224xbf16> to vector<96x224xbf16>
    %cst_79 = arith.constant dense<0.000000e+00> : vector<14x224xf32>
    %66 = tpu.matmul %55, %65, %cst_79 {dimension_numbers = #tpu.dot_dimension_numbers<[1], [0], [0], [1], [0, 0, 1, 1], [], []>} : vector<14x96xbf16>, vector<96x224xbf16>, vector<14x224xf32> -> vector<14x224xf32>
    %67 = arith.addf %48, %66 : vector<14x224xf32>
    %c2_80 = arith.constant 2 : index
    %c1_81 = arith.constant 1 : index
    %c0_82 = arith.constant 0 : index
    %c0_83 = arith.constant 0 : index
    %68 = vector.load %arg2[%c2_80, %c1_81, %c0_82, %c0_83] : memref<5x2x96x224xbf16, #tpu.memory_space<vmem>>, vector<1x1x96x224xbf16>
    %69 = vector.shape_cast %68 : vector<1x1x96x224xbf16> to vector<96x224xbf16>
    %cst_84 = arith.constant dense<0.000000e+00> : vector<14x224xf32>
    %70 = tpu.matmul %55, %69, %cst_84 {dimension_numbers = #tpu.dot_dimension_numbers<[1], [0], [0], [1], [0, 0, 1, 1], [], []>} : vector<14x96xbf16>, vector<96x224xbf16>, vector<14x224xf32> -> vector<14x224xf32>
    %71 = arith.addf %52, %70 : vector<14x224xf32>
    %c0_85 = arith.constant 0 : index
    %c0_86 = arith.constant 0 : index
    %c2_87 = arith.constant 2 : index
    %c0_88 = arith.constant 0 : index
    %72 = vector.load %arg1[%c0_85, %c0_86, %c2_87, %c0_88] : memref<1x2x16x96xf32, #tpu.memory_space<vmem>>, vector<1x1x14x96xf32>
    %73 = vector.shape_cast %72 : vector<1x1x14x96xf32> to vector<14x96xf32>
    %74 = arith.truncf %73 : vector<14x96xf32> to vector<14x96xbf16>
    %c4 = arith.constant 4 : index
    %c0_89 = arith.constant 0 : index
    %c0_90 = arith.constant 0 : index
    %c0_91 = arith.constant 0 : index
    %75 = vector.load %arg2[%c4, %c0_89, %c0_90, %c0_91] : memref<5x2x96x224xbf16, #tpu.memory_space<vmem>>, vector<1x1x96x224xbf16>
    %76 = vector.shape_cast %75 : vector<1x1x96x224xbf16> to vector<96x224xbf16>
    %cst_92 = arith.constant dense<0.000000e+00> : vector<14x224xf32>
    %77 = tpu.matmul %74, %76, %cst_92 {dimension_numbers = #tpu.dot_dimension_numbers<[1], [0], [0], [1], [0, 0, 1, 1], [], []>} : vector<14x96xbf16>, vector<96x224xbf16>, vector<14x224xf32> -> vector<14x224xf32>
    %78 = arith.addf %59, %77 : vector<14x224xf32>
    %c4_93 = arith.constant 4 : index
    %c1_94 = arith.constant 1 : index
    %c0_95 = arith.constant 0 : index
    %c0_96 = arith.constant 0 : index
    %79 = vector.load %arg2[%c4_93, %c1_94, %c0_95, %c0_96] : memref<5x2x96x224xbf16, #tpu.memory_space<vmem>>, vector<1x1x96x224xbf16>
    %80 = vector.shape_cast %79 : vector<1x1x96x224xbf16> to vector<96x224xbf16>
    %cst_97 = arith.constant dense<0.000000e+00> : vector<14x224xf32>
    %81 = tpu.matmul %74, %80, %cst_97 {dimension_numbers = #tpu.dot_dimension_numbers<[1], [0], [0], [1], [0, 0, 1, 1], [], []>} : vector<14x96xbf16>, vector<96x224xbf16>, vector<14x224xf32> -> vector<14x224xf32>
    %82 = arith.addf %63, %81 : vector<14x224xf32>
    %c3_98 = arith.constant 3 : index
    %c0_99 = arith.constant 0 : index
    %c0_100 = arith.constant 0 : index
    %c0_101 = arith.constant 0 : index
    %83 = vector.load %arg2[%c3_98, %c0_99, %c0_100, %c0_101] : memref<5x2x96x224xbf16, #tpu.memory_space<vmem>>, vector<1x1x96x224xbf16>
    %84 = vector.shape_cast %83 : vector<1x1x96x224xbf16> to vector<96x224xbf16>
    %cst_102 = arith.constant dense<0.000000e+00> : vector<14x224xf32>
    %85 = tpu.matmul %74, %84, %cst_102 {dimension_numbers = #tpu.dot_dimension_numbers<[1], [0], [0], [1], [0, 0, 1, 1], [], []>} : vector<14x96xbf16>, vector<96x224xbf16>, vector<14x224xf32> -> vector<14x224xf32>
    %86 = arith.addf %67, %85 : vector<14x224xf32>
    %c3_103 = arith.constant 3 : index
    %c1_104 = arith.constant 1 : index
    %c0_105 = arith.constant 0 : index
    %c0_106 = arith.constant 0 : index
    %87 = vector.load %arg2[%c3_103, %c1_104, %c0_105, %c0_106] : memref<5x2x96x224xbf16, #tpu.memory_space<vmem>>, vector<1x1x96x224xbf16>
    %88 = vector.shape_cast %87 : vector<1x1x96x224xbf16> to vector<96x224xbf16>
    %cst_107 = arith.constant dense<0.000000e+00> : vector<14x224xf32>
    %89 = tpu.matmul %74, %88, %cst_107 {dimension_numbers = #tpu.dot_dimension_numbers<[1], [0], [0], [1], [0, 0, 1, 1], [], []>} : vector<14x96xbf16>, vector<96x224xbf16>, vector<14x224xf32> -> vector<14x224xf32>
    %90 = arith.addf %71, %89 : vector<14x224xf32>
    %c0_108 = arith.constant 0 : index
    %c1_109 = arith.constant 1 : index
    %c2_110 = arith.constant 2 : index
    %c0_111 = arith.constant 0 : index
    %91 = vector.load %arg1[%c0_108, %c1_109, %c2_110, %c0_111] : memref<1x2x16x96xf32, #tpu.memory_space<vmem>>, vector<1x1x14x96xf32>
    %92 = vector.shape_cast %91 : vector<1x1x14x96xf32> to vector<14x96xf32>
    %93 = arith.truncf %92 : vector<14x96xf32> to vector<14x96xbf16>
    %c4_112 = arith.constant 4 : index
    %c0_113 = arith.constant 0 : index
    %c0_114 = arith.constant 0 : index
    %c0_115 = arith.constant 0 : index
    %94 = vector.load %arg2[%c4_112, %c0_113, %c0_114, %c0_115] : memref<5x2x96x224xbf16, #tpu.memory_space<vmem>>, vector<1x1x96x224xbf16>
    %95 = vector.shape_cast %94 : vector<1x1x96x224xbf16> to vector<96x224xbf16>
    %cst_116 = arith.constant dense<0.000000e+00> : vector<14x224xf32>
    %96 = tpu.matmul %93, %95, %cst_116 {dimension_numbers = #tpu.dot_dimension_numbers<[1], [0], [0], [1], [0, 0, 1, 1], [], []>} : vector<14x96xbf16>, vector<96x224xbf16>, vector<14x224xf32> -> vector<14x224xf32>
    %97 = arith.addf %86, %96 : vector<14x224xf32>
    %c4_117 = arith.constant 4 : index
    %c1_118 = arith.constant 1 : index
    %c0_119 = arith.constant 0 : index
    %c0_120 = arith.constant 0 : index
    %98 = vector.load %arg2[%c4_117, %c1_118, %c0_119, %c0_120] : memref<5x2x96x224xbf16, #tpu.memory_space<vmem>>, vector<1x1x96x224xbf16>
    %99 = vector.shape_cast %98 : vector<1x1x96x224xbf16> to vector<96x224xbf16>
    %cst_121 = arith.constant dense<0.000000e+00> : vector<14x224xf32>
    %100 = tpu.matmul %93, %99, %cst_121 {dimension_numbers = #tpu.dot_dimension_numbers<[1], [0], [0], [1], [0, 0, 1, 1], [], []>} : vector<14x96xbf16>, vector<96x224xbf16>, vector<14x224xf32> -> vector<14x224xf32>
    %101 = arith.addf %90, %100 : vector<14x224xf32>
    %102 = arith.maximumf %78, %82 : vector<14x224xf32>
    %103 = arith.maximumf %97, %101 : vector<14x224xf32>
    %104 = arith.maximumf %102, %103 : vector<14x224xf32>
    %c0_122 = arith.constant 0 : index
    %c0_123 = arith.constant 0 : index
    %105 = vector.load %arg3[%c0_122, %c0_123] : memref<1x224xf32, #tpu.memory_space<vmem>>, vector<1x224xf32>
    %106 = vector.broadcast %105 : vector<1x224xf32> to vector<14x224xf32>
    %107 = arith.addf %104, %106 : vector<14x224xf32>
    %cst_124 = arith.constant 0.000000e+00 : f32
    %108 = vector.broadcast %cst_124 : f32 to vector<14x224xf32>
    %109 = arith.maximumf %107, %108 : vector<14x224xf32>
    %c0_125 = arith.constant 0 : index
    %c0_126 = arith.constant 0 : index
    %c0_127 = arith.constant 0 : index
    %110 = vector.load %arg4[%c0_125, %c0_126, %c0_127] : memref<1x14x224xf32, #tpu.memory_space<vmem>>, vector<1x14x224xf32>
    %111 = vector.shape_cast %110 : vector<1x14x224xf32> to vector<14x224xf32>
    %112 = vector.shape_cast %109 : vector<14x224xf32> to vector<1x14x224xf32>
    tpu.vector_store %arg4[%c0_125, %c0_126, %c0_127], %112 {strides = array<i32>} : memref<1x14x224xf32, #tpu.memory_space<vmem>>, vector<1x14x224xf32>,
    return
  }
  func.func @transform_0(%arg0: i32) -> (i32, i32, i32, i32) {
    %c0_i32 = arith.constant 0 : i32
    %c0_i32_0 = arith.constant 0 : i32
    %c0_i32_1 = arith.constant 0 : i32
    %c0_i32_2 = arith.constant 0 : i32
    return %arg0, %c0_i32, %c0_i32_0, %c0_i32_1 : i32, i32, i32, i32
  }
  func.func @transform_1(%arg0: i32) -> (i32, i32, i32, i32) {
    %c0_i32 = arith.constant 0 : i32
    %c0_i32_0 = arith.constant 0 : i32
    %c0_i32_1 = arith.constant 0 : i32
    %c0_i32_2 = arith.constant 0 : i32
    %c0_i32_3 = arith.constant 0 : i32
    return %c0_i32, %c0_i32_0, %c0_i32_1, %c0_i32_2 : i32, i32, i32, i32
  }
  func.func @transform_2(%arg0: i32) -> (i32, i32) {
    %c0_i32 = arith.constant 0 : i32
    %c0_i32_0 = arith.constant 0 : i32
    %c0_i32_1 = arith.constant 0 : i32
    return %c0_i32, %c0_i32_0 : i32, i32
  }
  func.func @transform_3(%arg0: i32) -> (i32, i32, i32) {
    %c0_i32 = arith.constant 0 : i32
    %c0_i32_0 = arith.constant 0 : i32
    %c0_i32_1 = arith.constant 0 : i32
    return %arg0, %c0_i32, %c0_i32_0 : i32, i32, i32
  }
}

module attributes {stable_mosaic.version = 11 : i64} {
  func.func @_conv_pool_kernel(%arg0: i32, %arg1: memref<1x2x7x224xf32, #tpu.memory_space<vmem>>, %arg2: memref<5x2x224x160xbf16, #tpu.memory_space<vmem>>, %arg3: memref<1x160xf32, #tpu.memory_space<vmem>>, %arg4: memref<5x160x10xbf16, #tpu.memory_space<vmem>>, %arg5: memref<1x10xf32, #tpu.memory_space<vmem>>, %arg6: memref<1x1x10xf32, #tpu.memory_space<vmem>>) attributes {dimension_semantics = [#tpu.dimension_semantics<parallel>], iteration_bounds = array<i64: 2>, scalar_prefetch = 0 : i64, scratch_operands = 0 : i64, tpu.core_type = #tpu.core_type<tc>, window_params = [{transform_indices = @transform_0, window_bounds = array<i64: 1, 2, 7, 224>}, {pipeline_mode = #tpu.pipeline_mode<synchronous>, transform_indices = @transform_1, window_bounds = array<i64: 5, 2, 224, 160>}, {pipeline_mode = #tpu.pipeline_mode<synchronous>, transform_indices = @transform_2, window_bounds = array<i64: 1, 160>}, {pipeline_mode = #tpu.pipeline_mode<synchronous>, transform_indices = @transform_3, window_bounds = array<i64: 5, 160, 10>}, {pipeline_mode = #tpu.pipeline_mode<synchronous>, transform_indices = @transform_4, window_bounds = array<i64: 1, 10>}, {transform_indices = @transform_5, window_bounds = array<i64: 1, 1, 10>}]} {
    %cst = arith.constant 0.000000e+00 : f32
    %0 = vector.broadcast %cst : f32 to vector<5x160xf32>
    %cst_0 = arith.constant 0.000000e+00 : f32
    %1 = vector.broadcast %cst_0 : f32 to vector<5x160xf32>
    %cst_1 = arith.constant 0.000000e+00 : f32
    %2 = vector.broadcast %cst_1 : f32 to vector<5x160xf32>
    %cst_2 = arith.constant 0.000000e+00 : f32
    %3 = vector.broadcast %cst_2 : f32 to vector<5x160xf32>
    %c0 = arith.constant 0 : index
    %c0_3 = arith.constant 0 : index
    %c0_4 = arith.constant 0 : index
    %c0_5 = arith.constant 0 : index
    %4 = vector.load %arg1[%c0, %c0_3, %c0_4, %c0_5] : memref<1x2x7x224xf32, #tpu.memory_space<vmem>>, vector<1x1x5x224xf32>
    %5 = vector.shape_cast %4 : vector<1x1x5x224xf32> to vector<5x224xf32>
    %6 = arith.truncf %5 : vector<5x224xf32> to vector<5x224xbf16>
    %c0_6 = arith.constant 0 : index
    %c0_7 = arith.constant 0 : index
    %c0_8 = arith.constant 0 : index
    %c0_9 = arith.constant 0 : index
    %7 = vector.load %arg2[%c0_6, %c0_7, %c0_8, %c0_9] : memref<5x2x224x160xbf16, #tpu.memory_space<vmem>>, vector<1x1x224x160xbf16>
    %8 = vector.shape_cast %7 : vector<1x1x224x160xbf16> to vector<224x160xbf16>
    %cst_10 = arith.constant dense<0.000000e+00> : vector<5x160xf32>
    %9 = tpu.matmul %6, %8, %cst_10 {dimension_numbers = #tpu.dot_dimension_numbers<[1], [0], [0], [1], [0, 0, 1, 1], [], []>} : vector<5x224xbf16>, vector<224x160xbf16>, vector<5x160xf32> -> vector<5x160xf32>
    %10 = arith.addf %0, %9 : vector<5x160xf32>
    %c0_11 = arith.constant 0 : index
    %c1 = arith.constant 1 : index
    %c0_12 = arith.constant 0 : index
    %c0_13 = arith.constant 0 : index
    %11 = vector.load %arg2[%c0_11, %c1, %c0_12, %c0_13] : memref<5x2x224x160xbf16, #tpu.memory_space<vmem>>, vector<1x1x224x160xbf16>
    %12 = vector.shape_cast %11 : vector<1x1x224x160xbf16> to vector<224x160xbf16>
    %cst_14 = arith.constant dense<0.000000e+00> : vector<5x160xf32>
    %13 = tpu.matmul %6, %12, %cst_14 {dimension_numbers = #tpu.dot_dimension_numbers<[1], [0], [0], [1], [0, 0, 1, 1], [], []>} : vector<5x224xbf16>, vector<224x160xbf16>, vector<5x160xf32> -> vector<5x160xf32>
    %14 = arith.addf %1, %13 : vector<5x160xf32>
    %c0_15 = arith.constant 0 : index
    %c1_16 = arith.constant 1 : index
    %c0_17 = arith.constant 0 : index
    %c0_18 = arith.constant 0 : index
    %15 = vector.load %arg1[%c0_15, %c1_16, %c0_17, %c0_18] : memref<1x2x7x224xf32, #tpu.memory_space<vmem>>, vector<1x1x5x224xf32>
    %16 = vector.shape_cast %15 : vector<1x1x5x224xf32> to vector<5x224xf32>
    %17 = arith.truncf %16 : vector<5x224xf32> to vector<5x224xbf16>
    %c1_19 = arith.constant 1 : index
    %c0_20 = arith.constant 0 : index
    %c0_21 = arith.constant 0 : index
    %c0_22 = arith.constant 0 : index
    %18 = vector.load %arg2[%c1_19, %c0_20, %c0_21, %c0_22] : memref<5x2x224x160xbf16, #tpu.memory_space<vmem>>, vector<1x1x224x160xbf16>
    %19 = vector.shape_cast %18 : vector<1x1x224x160xbf16> to vector<224x160xbf16>
    %cst_23 = arith.constant dense<0.000000e+00> : vector<5x160xf32>
    %20 = tpu.matmul %17, %19, %cst_23 {dimension_numbers = #tpu.dot_dimension_numbers<[1], [0], [0], [1], [0, 0, 1, 1], [], []>} : vector<5x224xbf16>, vector<224x160xbf16>, vector<5x160xf32> -> vector<5x160xf32>
    %21 = arith.addf %10, %20 : vector<5x160xf32>
    %c1_24 = arith.constant 1 : index
    %c1_25 = arith.constant 1 : index
    %c0_26 = arith.constant 0 : index
    %c0_27 = arith.constant 0 : index
    %22 = vector.load %arg2[%c1_24, %c1_25, %c0_26, %c0_27] : memref<5x2x224x160xbf16, #tpu.memory_space<vmem>>, vector<1x1x224x160xbf16>
    %23 = vector.shape_cast %22 : vector<1x1x224x160xbf16> to vector<224x160xbf16>
    %cst_28 = arith.constant dense<0.000000e+00> : vector<5x160xf32>
    %24 = tpu.matmul %17, %23, %cst_28 {dimension_numbers = #tpu.dot_dimension_numbers<[1], [0], [0], [1], [0, 0, 1, 1], [], []>} : vector<5x224xbf16>, vector<224x160xbf16>, vector<5x160xf32> -> vector<5x160xf32>
    %25 = arith.addf %14, %24 : vector<5x160xf32>
    %c0_29 = arith.constant 0 : index
    %c0_30 = arith.constant 0 : index
    %c0_31 = arith.constant 0 : index
    %c0_32 = arith.constant 0 : index
    %26 = vector.load %arg2[%c0_29, %c0_30, %c0_31, %c0_32] : memref<5x2x224x160xbf16, #tpu.memory_space<vmem>>, vector<1x1x224x160xbf16>
    %27 = vector.shape_cast %26 : vector<1x1x224x160xbf16> to vector<224x160xbf16>
    %cst_33 = arith.constant dense<0.000000e+00> : vector<5x160xf32>
    %28 = tpu.matmul %17, %27, %cst_33 {dimension_numbers = #tpu.dot_dimension_numbers<[1], [0], [0], [1], [0, 0, 1, 1], [], []>} : vector<5x224xbf16>, vector<224x160xbf16>, vector<5x160xf32> -> vector<5x160xf32>
    %29 = arith.addf %2, %28 : vector<5x160xf32>
    %c0_34 = arith.constant 0 : index
    %c1_35 = arith.constant 1 : index
    %c0_36 = arith.constant 0 : index
    %c0_37 = arith.constant 0 : index
    %30 = vector.load %arg2[%c0_34, %c1_35, %c0_36, %c0_37] : memref<5x2x224x160xbf16, #tpu.memory_space<vmem>>, vector<1x1x224x160xbf16>
    %31 = vector.shape_cast %30 : vector<1x1x224x160xbf16> to vector<224x160xbf16>
    %cst_38 = arith.constant dense<0.000000e+00> : vector<5x160xf32>
    %32 = tpu.matmul %17, %31, %cst_38 {dimension_numbers = #tpu.dot_dimension_numbers<[1], [0], [0], [1], [0, 0, 1, 1], [], []>} : vector<5x224xbf16>, vector<224x160xbf16>, vector<5x160xf32> -> vector<5x160xf32>
    %33 = arith.addf %3, %32 : vector<5x160xf32>
    %c0_39 = arith.constant 0 : index
    %c0_40 = arith.constant 0 : index
    %c1_41 = arith.constant 1 : index
    %c0_42 = arith.constant 0 : index
    %34 = vector.load %arg1[%c0_39, %c0_40, %c1_41, %c0_42] : memref<1x2x7x224xf32, #tpu.memory_space<vmem>>, vector<1x1x5x224xf32>
    %35 = vector.shape_cast %34 : vector<1x1x5x224xf32> to vector<5x224xf32>
    %36 = arith.truncf %35 : vector<5x224xf32> to vector<5x224xbf16>
    %c2 = arith.constant 2 : index
    %c0_43 = arith.constant 0 : index
    %c0_44 = arith.constant 0 : index
    %c0_45 = arith.constant 0 : index
    %37 = vector.load %arg2[%c2, %c0_43, %c0_44, %c0_45] : memref<5x2x224x160xbf16, #tpu.memory_space<vmem>>, vector<1x1x224x160xbf16>
    %38 = vector.shape_cast %37 : vector<1x1x224x160xbf16> to vector<224x160xbf16>
    %cst_46 = arith.constant dense<0.000000e+00> : vector<5x160xf32>
    %39 = tpu.matmul %36, %38, %cst_46 {dimension_numbers = #tpu.dot_dimension_numbers<[1], [0], [0], [1], [0, 0, 1, 1], [], []>} : vector<5x224xbf16>, vector<224x160xbf16>, vector<5x160xf32> -> vector<5x160xf32>
    %40 = arith.addf %21, %39 : vector<5x160xf32>
    %c2_47 = arith.constant 2 : index
    %c1_48 = arith.constant 1 : index
    %c0_49 = arith.constant 0 : index
    %c0_50 = arith.constant 0 : index
    %41 = vector.load %arg2[%c2_47, %c1_48, %c0_49, %c0_50] : memref<5x2x224x160xbf16, #tpu.memory_space<vmem>>, vector<1x1x224x160xbf16>
    %42 = vector.shape_cast %41 : vector<1x1x224x160xbf16> to vector<224x160xbf16>
    %cst_51 = arith.constant dense<0.000000e+00> : vector<5x160xf32>
    %43 = tpu.matmul %36, %42, %cst_51 {dimension_numbers = #tpu.dot_dimension_numbers<[1], [0], [0], [1], [0, 0, 1, 1], [], []>} : vector<5x224xbf16>, vector<224x160xbf16>, vector<5x160xf32> -> vector<5x160xf32>
    %44 = arith.addf %25, %43 : vector<5x160xf32>
    %c1_52 = arith.constant 1 : index
    %c0_53 = arith.constant 0 : index
    %c0_54 = arith.constant 0 : index
    %c0_55 = arith.constant 0 : index
    %45 = vector.load %arg2[%c1_52, %c0_53, %c0_54, %c0_55] : memref<5x2x224x160xbf16, #tpu.memory_space<vmem>>, vector<1x1x224x160xbf16>
    %46 = vector.shape_cast %45 : vector<1x1x224x160xbf16> to vector<224x160xbf16>
    %cst_56 = arith.constant dense<0.000000e+00> : vector<5x160xf32>
    %47 = tpu.matmul %36, %46, %cst_56 {dimension_numbers = #tpu.dot_dimension_numbers<[1], [0], [0], [1], [0, 0, 1, 1], [], []>} : vector<5x224xbf16>, vector<224x160xbf16>, vector<5x160xf32> -> vector<5x160xf32>
    %48 = arith.addf %29, %47 : vector<5x160xf32>
    %c1_57 = arith.constant 1 : index
    %c1_58 = arith.constant 1 : index
    %c0_59 = arith.constant 0 : index
    %c0_60 = arith.constant 0 : index
    %49 = vector.load %arg2[%c1_57, %c1_58, %c0_59, %c0_60] : memref<5x2x224x160xbf16, #tpu.memory_space<vmem>>, vector<1x1x224x160xbf16>
    %50 = vector.shape_cast %49 : vector<1x1x224x160xbf16> to vector<224x160xbf16>
    %cst_61 = arith.constant dense<0.000000e+00> : vector<5x160xf32>
    %51 = tpu.matmul %36, %50, %cst_61 {dimension_numbers = #tpu.dot_dimension_numbers<[1], [0], [0], [1], [0, 0, 1, 1], [], []>} : vector<5x224xbf16>, vector<224x160xbf16>, vector<5x160xf32> -> vector<5x160xf32>
    %52 = arith.addf %33, %51 : vector<5x160xf32>
    %c0_62 = arith.constant 0 : index
    %c1_63 = arith.constant 1 : index
    %c1_64 = arith.constant 1 : index
    %c0_65 = arith.constant 0 : index
    %53 = vector.load %arg1[%c0_62, %c1_63, %c1_64, %c0_65] : memref<1x2x7x224xf32, #tpu.memory_space<vmem>>, vector<1x1x5x224xf32>
    %54 = vector.shape_cast %53 : vector<1x1x5x224xf32> to vector<5x224xf32>
    %55 = arith.truncf %54 : vector<5x224xf32> to vector<5x224xbf16>
    %c3 = arith.constant 3 : index
    %c0_66 = arith.constant 0 : index
    %c0_67 = arith.constant 0 : index
    %c0_68 = arith.constant 0 : index
    %56 = vector.load %arg2[%c3, %c0_66, %c0_67, %c0_68] : memref<5x2x224x160xbf16, #tpu.memory_space<vmem>>, vector<1x1x224x160xbf16>
    %57 = vector.shape_cast %56 : vector<1x1x224x160xbf16> to vector<224x160xbf16>
    %cst_69 = arith.constant dense<0.000000e+00> : vector<5x160xf32>
    %58 = tpu.matmul %55, %57, %cst_69 {dimension_numbers = #tpu.dot_dimension_numbers<[1], [0], [0], [1], [0, 0, 1, 1], [], []>} : vector<5x224xbf16>, vector<224x160xbf16>, vector<5x160xf32> -> vector<5x160xf32>
    %59 = arith.addf %40, %58 : vector<5x160xf32>
    %c3_70 = arith.constant 3 : index
    %c1_71 = arith.constant 1 : index
    %c0_72 = arith.constant 0 : index
    %c0_73 = arith.constant 0 : index
    %60 = vector.load %arg2[%c3_70, %c1_71, %c0_72, %c0_73] : memref<5x2x224x160xbf16, #tpu.memory_space<vmem>>, vector<1x1x224x160xbf16>
    %61 = vector.shape_cast %60 : vector<1x1x224x160xbf16> to vector<224x160xbf16>
    %cst_74 = arith.constant dense<0.000000e+00> : vector<5x160xf32>
    %62 = tpu.matmul %55, %61, %cst_74 {dimension_numbers = #tpu.dot_dimension_numbers<[1], [0], [0], [1], [0, 0, 1, 1], [], []>} : vector<5x224xbf16>, vector<224x160xbf16>, vector<5x160xf32> -> vector<5x160xf32>
    %63 = arith.addf %44, %62 : vector<5x160xf32>
    %c2_75 = arith.constant 2 : index
    %c0_76 = arith.constant 0 : index
    %c0_77 = arith.constant 0 : index
    %c0_78 = arith.constant 0 : index
    %64 = vector.load %arg2[%c2_75, %c0_76, %c0_77, %c0_78] : memref<5x2x224x160xbf16, #tpu.memory_space<vmem>>, vector<1x1x224x160xbf16>
    %65 = vector.shape_cast %64 : vector<1x1x224x160xbf16> to vector<224x160xbf16>
    %cst_79 = arith.constant dense<0.000000e+00> : vector<5x160xf32>
    %66 = tpu.matmul %55, %65, %cst_79 {dimension_numbers = #tpu.dot_dimension_numbers<[1], [0], [0], [1], [0, 0, 1, 1], [], []>} : vector<5x224xbf16>, vector<224x160xbf16>, vector<5x160xf32> -> vector<5x160xf32>
    %67 = arith.addf %48, %66 : vector<5x160xf32>
    %c2_80 = arith.constant 2 : index
    %c1_81 = arith.constant 1 : index
    %c0_82 = arith.constant 0 : index
    %c0_83 = arith.constant 0 : index
    %68 = vector.load %arg2[%c2_80, %c1_81, %c0_82, %c0_83] : memref<5x2x224x160xbf16, #tpu.memory_space<vmem>>, vector<1x1x224x160xbf16>
    %69 = vector.shape_cast %68 : vector<1x1x224x160xbf16> to vector<224x160xbf16>
    %cst_84 = arith.constant dense<0.000000e+00> : vector<5x160xf32>
    %70 = tpu.matmul %55, %69, %cst_84 {dimension_numbers = #tpu.dot_dimension_numbers<[1], [0], [0], [1], [0, 0, 1, 1], [], []>} : vector<5x224xbf16>, vector<224x160xbf16>, vector<5x160xf32> -> vector<5x160xf32>
    %71 = arith.addf %52, %70 : vector<5x160xf32>
    %c0_85 = arith.constant 0 : index
    %c0_86 = arith.constant 0 : index
    %c2_87 = arith.constant 2 : index
    %c0_88 = arith.constant 0 : index
    %72 = vector.load %arg1[%c0_85, %c0_86, %c2_87, %c0_88] : memref<1x2x7x224xf32, #tpu.memory_space<vmem>>, vector<1x1x5x224xf32>
    %73 = vector.shape_cast %72 : vector<1x1x5x224xf32> to vector<5x224xf32>
    %74 = arith.truncf %73 : vector<5x224xf32> to vector<5x224xbf16>
    %c4 = arith.constant 4 : index
    %c0_89 = arith.constant 0 : index
    %c0_90 = arith.constant 0 : index
    %c0_91 = arith.constant 0 : index
    %75 = vector.load %arg2[%c4, %c0_89, %c0_90, %c0_91] : memref<5x2x224x160xbf16, #tpu.memory_space<vmem>>, vector<1x1x224x160xbf16>
    %76 = vector.shape_cast %75 : vector<1x1x224x160xbf16> to vector<224x160xbf16>
    %cst_92 = arith.constant dense<0.000000e+00> : vector<5x160xf32>
    %77 = tpu.matmul %74, %76, %cst_92 {dimension_numbers = #tpu.dot_dimension_numbers<[1], [0], [0], [1], [0, 0, 1, 1], [], []>} : vector<5x224xbf16>, vector<224x160xbf16>, vector<5x160xf32> -> vector<5x160xf32>
    %78 = arith.addf %59, %77 : vector<5x160xf32>
    %c4_93 = arith.constant 4 : index
    %c1_94 = arith.constant 1 : index
    %c0_95 = arith.constant 0 : index
    %c0_96 = arith.constant 0 : index
    %79 = vector.load %arg2[%c4_93, %c1_94, %c0_95, %c0_96] : memref<5x2x224x160xbf16, #tpu.memory_space<vmem>>, vector<1x1x224x160xbf16>
    %80 = vector.shape_cast %79 : vector<1x1x224x160xbf16> to vector<224x160xbf16>
    %cst_97 = arith.constant dense<0.000000e+00> : vector<5x160xf32>
    %81 = tpu.matmul %74, %80, %cst_97 {dimension_numbers = #tpu.dot_dimension_numbers<[1], [0], [0], [1], [0, 0, 1, 1], [], []>} : vector<5x224xbf16>, vector<224x160xbf16>, vector<5x160xf32> -> vector<5x160xf32>
    %82 = arith.addf %63, %81 : vector<5x160xf32>
    %c3_98 = arith.constant 3 : index
    %c0_99 = arith.constant 0 : index
    %c0_100 = arith.constant 0 : index
    %c0_101 = arith.constant 0 : index
    %83 = vector.load %arg2[%c3_98, %c0_99, %c0_100, %c0_101] : memref<5x2x224x160xbf16, #tpu.memory_space<vmem>>, vector<1x1x224x160xbf16>
    %84 = vector.shape_cast %83 : vector<1x1x224x160xbf16> to vector<224x160xbf16>
    %cst_102 = arith.constant dense<0.000000e+00> : vector<5x160xf32>
    %85 = tpu.matmul %74, %84, %cst_102 {dimension_numbers = #tpu.dot_dimension_numbers<[1], [0], [0], [1], [0, 0, 1, 1], [], []>} : vector<5x224xbf16>, vector<224x160xbf16>, vector<5x160xf32> -> vector<5x160xf32>
    %86 = arith.addf %67, %85 : vector<5x160xf32>
    %c3_103 = arith.constant 3 : index
    %c1_104 = arith.constant 1 : index
    %c0_105 = arith.constant 0 : index
    %c0_106 = arith.constant 0 : index
    %87 = vector.load %arg2[%c3_103, %c1_104, %c0_105, %c0_106] : memref<5x2x224x160xbf16, #tpu.memory_space<vmem>>, vector<1x1x224x160xbf16>
    %88 = vector.shape_cast %87 : vector<1x1x224x160xbf16> to vector<224x160xbf16>
    %cst_107 = arith.constant dense<0.000000e+00> : vector<5x160xf32>
    %89 = tpu.matmul %74, %88, %cst_107 {dimension_numbers = #tpu.dot_dimension_numbers<[1], [0], [0], [1], [0, 0, 1, 1], [], []>} : vector<5x224xbf16>, vector<224x160xbf16>, vector<5x160xf32> -> vector<5x160xf32>
    %90 = arith.addf %71, %89 : vector<5x160xf32>
    %c0_108 = arith.constant 0 : index
    %c1_109 = arith.constant 1 : index
    %c2_110 = arith.constant 2 : index
    %c0_111 = arith.constant 0 : index
    %91 = vector.load %arg1[%c0_108, %c1_109, %c2_110, %c0_111] : memref<1x2x7x224xf32, #tpu.memory_space<vmem>>, vector<1x1x5x224xf32>
    %92 = vector.shape_cast %91 : vector<1x1x5x224xf32> to vector<5x224xf32>
    %93 = arith.truncf %92 : vector<5x224xf32> to vector<5x224xbf16>
    %c4_112 = arith.constant 4 : index
    %c0_113 = arith.constant 0 : index
    %c0_114 = arith.constant 0 : index
    %c0_115 = arith.constant 0 : index
    %94 = vector.load %arg2[%c4_112, %c0_113, %c0_114, %c0_115] : memref<5x2x224x160xbf16, #tpu.memory_space<vmem>>, vector<1x1x224x160xbf16>
    %95 = vector.shape_cast %94 : vector<1x1x224x160xbf16> to vector<224x160xbf16>
    %cst_116 = arith.constant dense<0.000000e+00> : vector<5x160xf32>
    %96 = tpu.matmul %93, %95, %cst_116 {dimension_numbers = #tpu.dot_dimension_numbers<[1], [0], [0], [1], [0, 0, 1, 1], [], []>} : vector<5x224xbf16>, vector<224x160xbf16>, vector<5x160xf32> -> vector<5x160xf32>
    %97 = arith.addf %86, %96 : vector<5x160xf32>
    %c4_117 = arith.constant 4 : index
    %c1_118 = arith.constant 1 : index
    %c0_119 = arith.constant 0 : index
    %c0_120 = arith.constant 0 : index
    %98 = vector.load %arg2[%c4_117, %c1_118, %c0_119, %c0_120] : memref<5x2x224x160xbf16, #tpu.memory_space<vmem>>, vector<1x1x224x160xbf16>
    %99 = vector.shape_cast %98 : vector<1x1x224x160xbf16> to vector<224x160xbf16>
    %cst_121 = arith.constant dense<0.000000e+00> : vector<5x160xf32>
    %100 = tpu.matmul %93, %99, %cst_121 {dimension_numbers = #tpu.dot_dimension_numbers<[1], [0], [0], [1], [0, 0, 1, 1], [], []>} : vector<5x224xbf16>, vector<224x160xbf16>, vector<5x160xf32> -> vector<5x160xf32>
    %101 = arith.addf %90, %100 : vector<5x160xf32>
    %102 = arith.maximumf %78, %82 : vector<5x160xf32>
    %103 = arith.maximumf %97, %101 : vector<5x160xf32>
    %104 = arith.maximumf %102, %103 : vector<5x160xf32>
    %c0_122 = arith.constant 0 : index
    %c0_123 = arith.constant 0 : index
    %105 = vector.load %arg3[%c0_122, %c0_123] : memref<1x160xf32, #tpu.memory_space<vmem>>, vector<1x160xf32>
    %106 = vector.broadcast %105 : vector<1x160xf32> to vector<5x160xf32>
    %107 = arith.addf %104, %106 : vector<5x160xf32>
    %cst_124 = arith.constant 0.000000e+00 : f32
    %108 = vector.broadcast %cst_124 : f32 to vector<5x160xf32>
    %109 = arith.maximumf %107, %108 : vector<5x160xf32>
    %110 = arith.truncf %109 : vector<5x160xf32> to vector<5x160xbf16>
    %c0_125 = arith.constant 0 : index
    %c0_126 = arith.constant 0 : index
    %111 = vector.load %arg5[%c0_125, %c0_126] : memref<1x10xf32, #tpu.memory_space<vmem>>, vector<1x10xf32>
    %112 = vector.extract_strided_slice %110 {offsets = [0, 0], sizes = [1, 160], strides = [1, 1]} : vector<5x160xbf16> to vector<1x160xbf16>
    %c0_127 = arith.constant 0 : index
    %c0_128 = arith.constant 0 : index
    %c0_129 = arith.constant 0 : index
    %113 = vector.load %arg4[%c0_127, %c0_128, %c0_129] : memref<5x160x10xbf16, #tpu.memory_space<vmem>>, vector<1x160x10xbf16>
    %114 = vector.shape_cast %113 : vector<1x160x10xbf16> to vector<160x10xbf16>
    %cst_130 = arith.constant dense<0.000000e+00> : vector<1x10xf32>
    %115 = tpu.matmul %112, %114, %cst_130 {dimension_numbers = #tpu.dot_dimension_numbers<[1], [0], [0], [1], [0, 0, 1, 1], [], []>} : vector<1x160xbf16>, vector<160x10xbf16>, vector<1x10xf32> -> vector<1x10xf32>
    %116 = arith.addf %111, %115 : vector<1x10xf32>
    %117 = vector.extract_strided_slice %110 {offsets = [1, 0], sizes = [1, 160], strides = [1, 1]} : vector<5x160xbf16> to vector<1x160xbf16>
    %c1_131 = arith.constant 1 : index
    %c0_132 = arith.constant 0 : index
    %c0_133 = arith.constant 0 : index
    %118 = vector.load %arg4[%c1_131, %c0_132, %c0_133] : memref<5x160x10xbf16, #tpu.memory_space<vmem>>, vector<1x160x10xbf16>
    %119 = vector.shape_cast %118 : vector<1x160x10xbf16> to vector<160x10xbf16>
    %cst_134 = arith.constant dense<0.000000e+00> : vector<1x10xf32>
    %120 = tpu.matmul %117, %119, %cst_134 {dimension_numbers = #tpu.dot_dimension_numbers<[1], [0], [0], [1], [0, 0, 1, 1], [], []>} : vector<1x160xbf16>, vector<160x10xbf16>, vector<1x10xf32> -> vector<1x10xf32>
    %121 = arith.addf %116, %120 : vector<1x10xf32>
    %122 = vector.extract_strided_slice %110 {offsets = [2, 0], sizes = [1, 160], strides = [1, 1]} : vector<5x160xbf16> to vector<1x160xbf16>
    %c2_135 = arith.constant 2 : index
    %c0_136 = arith.constant 0 : index
    %c0_137 = arith.constant 0 : index
    %123 = vector.load %arg4[%c2_135, %c0_136, %c0_137] : memref<5x160x10xbf16, #tpu.memory_space<vmem>>, vector<1x160x10xbf16>
    %124 = vector.shape_cast %123 : vector<1x160x10xbf16> to vector<160x10xbf16>
    %cst_138 = arith.constant dense<0.000000e+00> : vector<1x10xf32>
    %125 = tpu.matmul %122, %124, %cst_138 {dimension_numbers = #tpu.dot_dimension_numbers<[1], [0], [0], [1], [0, 0, 1, 1], [], []>} : vector<1x160xbf16>, vector<160x10xbf16>, vector<1x10xf32> -> vector<1x10xf32>
    %126 = arith.addf %121, %125 : vector<1x10xf32>
    %127 = vector.extract_strided_slice %110 {offsets = [3, 0], sizes = [1, 160], strides = [1, 1]} : vector<5x160xbf16> to vector<1x160xbf16>
    %c3_139 = arith.constant 3 : index
    %c0_140 = arith.constant 0 : index
    %c0_141 = arith.constant 0 : index
    %128 = vector.load %arg4[%c3_139, %c0_140, %c0_141] : memref<5x160x10xbf16, #tpu.memory_space<vmem>>, vector<1x160x10xbf16>
    %129 = vector.shape_cast %128 : vector<1x160x10xbf16> to vector<160x10xbf16>
    %cst_142 = arith.constant dense<0.000000e+00> : vector<1x10xf32>
    %130 = tpu.matmul %127, %129, %cst_142 {dimension_numbers = #tpu.dot_dimension_numbers<[1], [0], [0], [1], [0, 0, 1, 1], [], []>} : vector<1x160xbf16>, vector<160x10xbf16>, vector<1x10xf32> -> vector<1x10xf32>
    %131 = arith.addf %126, %130 : vector<1x10xf32>
    %132 = vector.extract_strided_slice %110 {offsets = [4, 0], sizes = [1, 160], strides = [1, 1]} : vector<5x160xbf16> to vector<1x160xbf16>
    %c4_143 = arith.constant 4 : index
    %c0_144 = arith.constant 0 : index
    %c0_145 = arith.constant 0 : index
    %133 = vector.load %arg4[%c4_143, %c0_144, %c0_145] : memref<5x160x10xbf16, #tpu.memory_space<vmem>>, vector<1x160x10xbf16>
    %134 = vector.shape_cast %133 : vector<1x160x10xbf16> to vector<160x10xbf16>
    %cst_146 = arith.constant dense<0.000000e+00> : vector<1x10xf32>
    %135 = tpu.matmul %132, %134, %cst_146 {dimension_numbers = #tpu.dot_dimension_numbers<[1], [0], [0], [1], [0, 0, 1, 1], [], []>} : vector<1x160xbf16>, vector<160x10xbf16>, vector<1x10xf32> -> vector<1x10xf32>
    %136 = arith.addf %131, %135 : vector<1x10xf32>
    %c0_147 = arith.constant 0 : index
    %c0_148 = arith.constant 0 : index
    %c0_149 = arith.constant 0 : index
    %137 = vector.load %arg6[%c0_147, %c0_148, %c0_149] : memref<1x1x10xf32, #tpu.memory_space<vmem>>, vector<1x1x10xf32>
    %138 = vector.shape_cast %137 : vector<1x1x10xf32> to vector<1x10xf32>
    %139 = vector.shape_cast %136 : vector<1x10xf32> to vector<1x1x10xf32>
    tpu.vector_store %arg6[%c0_147, %c0_148, %c0_149], %139 {strides = array<i32>} : memref<1x1x10xf32, #tpu.memory_space<vmem>>, vector<1x1x10xf32>,
    return
  }
  func.func @transform_0(%arg0: i32) -> (i32, i32, i32, i32) {
    %c0_i32 = arith.constant 0 : i32
    %c0_i32_0 = arith.constant 0 : i32
    %c0_i32_1 = arith.constant 0 : i32
    %c0_i32_2 = arith.constant 0 : i32
    return %arg0, %c0_i32, %c0_i32_0, %c0_i32_1 : i32, i32, i32, i32
  }
  func.func @transform_1(%arg0: i32) -> (i32, i32, i32, i32) {
    %c0_i32 = arith.constant 0 : i32
    %c0_i32_0 = arith.constant 0 : i32
    %c0_i32_1 = arith.constant 0 : i32
    %c0_i32_2 = arith.constant 0 : i32
    %c0_i32_3 = arith.constant 0 : i32
    return %c0_i32, %c0_i32_0, %c0_i32_1, %c0_i32_2 : i32, i32, i32, i32
  }
  func.func @transform_2(%arg0: i32) -> (i32, i32) {
    %c0_i32 = arith.constant 0 : i32
    %c0_i32_0 = arith.constant 0 : i32
    %c0_i32_1 = arith.constant 0 : i32
    return %c0_i32, %c0_i32_0 : i32, i32
  }
  func.func @transform_3(%arg0: i32) -> (i32, i32, i32) {
    %c0_i32 = arith.constant 0 : i32
    %c0_i32_0 = arith.constant 0 : i32
    %c0_i32_1 = arith.constant 0 : i32
    %c0_i32_2 = arith.constant 0 : i32
    return %c0_i32, %c0_i32_0, %c0_i32_1 : i32, i32, i32
  }
  func.func @transform_4(%arg0: i32) -> (i32, i32) {
    %c0_i32 = arith.constant 0 : i32
    %c0_i32_0 = arith.constant 0 : i32
    %c0_i32_1 = arith.constant 0 : i32
    return %c0_i32, %c0_i32_0 : i32, i32
  }
  func.func @transform_5(%arg0: i32) -> (i32, i32, i32) {
    %c0_i32 = arith.constant 0 : i32
    %c0_i32_0 = arith.constant 0 : i32
    %c0_i32_1 = arith.constant 0 : i32
    return %arg0, %c0_i32, %c0_i32_0 : i32, i32, i32
  }
}

</mosaic_0001>

<bundles_post_ra>
// kernel: cnn_forward.2
= control target key start
LH: loop header
LB: loop body
LE: loop exit
PB: predicated region body
PF: predicated region fallthrough
CT: control target
= control target key end

     0   :  { %s2488_s12 = smov 0   ;;  %s3420_s0 = inlined_call_operand.vmem [shape: f32[2,2,16,96], index: 0, kind: input, shape index: {}]   ;;  %s3421_s1 = inlined_call_operand.vmem [shape: bf16[5,2,96,224], index: 1, kind: input, shape index: {}]   ;;  %s3422_s2 = inlined_call_operand.vmem [shape: f32[1,224], index: 2, kind: input, shape index: {}]   ;;  %s3423_s3 = inlined_call_operand.vmem [shape: f32[2,14,224], index: 3, kind: output, shape index: {}]  }
   0x1 LB: > { %s1939_s13 = sadd.s32 4294967295, %s2465_s12   ;;  %p1943_p0 = scmp.ge.s32.totalorder %s2465_s12, 1  ;;  %s2465_s12 = sphi %s2488_s12, %s13_s12  }
   0x2   : > { %p137_p1 = scmp.lt.s32.totalorder %s2465_s12, 3 }
   0x4   : > { %p138_p2 = pnand %p1943_p0, %p137_p1 }
   0x6   : > { %141 = sbr.rel (%p138_p2) target bundleno = 479 (0x1df), region = 32 }
   0xd   : > { %v2499_v0 = vld [vmem:[%s3421_s1 + $0xc4] ss:$8 sps:$4 sm:$0xff]   ;;  %v3424_v2 = vmov 0   ;;  %v2512_v3 = vld [vmem:[%s3421_s1 + $0xc0] ss:$8 sps:$4 sm:$0xff]   ;;  %p161_p3 = scmp.lt.s32.totalorder %s1939_s13, 1 }
   0xe   : > { %v2504_v1 = vld [vmem:[%s3421_s1 + $0x124] ss:$8 sps:$4 sm:$0xff]   ;;  %313 = vmatprep.mubr.bf16.mxu0 %v3424_v2  ;;  %535 = vmatprep.mubr.bf16.mxu1 %v3424_v2  ;;  %v2517_v4 = vld [vmem:[%s3421_s1 + $0x120] ss:$8 sps:$4 sm:$0xff]   ;;  %v2523_v5 = vld [vmem:[%s3421_s1 + $0xd4] ss:$8 sps:$4 sm:$0xff]  }
   0xf   : > { %281 = vmatprep.subr.bf16.mxu0 %v2499_v0  ;;  %503 = vmatprep.subr.bf16.mxu1 %v2504_v1  ;;  %v2530_v6 = vld [vmem:[%s3421_s1 + $0x134] ss:$8 sps:$4 sm:$0xff]   ;;  %v2535_v7 = vld [vmem:[%s3421_s1 + $0xd0] ss:$8 sps:$4 sm:$0xff]   ;;  %v2547_v9 = vld [vmem:[%s3421_s1 + $0xe4] ss:$8 sps:$4 sm:$0xff]  }
  0x10   : > { %282 = vmatpush1.bf16.msra.mxu0 %v2512_v3  ;;  %504 = vmatpush1.bf16.msra.mxu1 %v2517_v4  ;;  %v2541_v8 = vld [vmem:[%s3421_s1 + $0x130] ss:$8 sps:$4 sm:$0xff]   ;;  %v2554_v10 = vld [vmem:[%s3421_s1 + $0x144] ss:$8 sps:$4 sm:$0xff]   ;;  %v2559_v11 = vld [vmem:[%s3421_s1 + $0xe0] ss:$8 sps:$4 sm:$0xff]  }
  0x11   : > { %283 = vmatprep.subr.bf16.mxu0 %v2523_v5  ;;  %505 = vmatprep.subr.bf16.mxu1 %v2530_v6  ;;  %v2564_v12 = vld [vmem:[%s3421_s1 + $0x140] ss:$8 sps:$4 sm:$0xff]   ;;  %v2571_v13 = vld [vmem:[%s3421_s1 + $0xf4] ss:$8 sps:$4 sm:$0xff]   ;;  %s3464_s13 = smov (!%p161_p3, %s1939_s13), 1  ;;  %vm277_vm0 = vcmask 785408  }
  0x12   : > { %v2578_v14 = vld [vmem:[%s3421_s1 + $0x154] ss:$8 sps:$4 sm:$0xff]   ;;  %v2587_v15 = vld [vmem:[%s3421_s1 + $0xf0] ss:$8 sps:$4 sm:$0xff]   ;;  %v2599_v17 = vld [vmem:[%s3421_s1 + $0x104] ss:$8 sps:$4 sm:$0xff]  }
  0x13   : > { %v2594_v16 = vld [vmem:[%s3421_s1 + $0x150] ss:$8 sps:$4 sm:$0xff]   ;;  %v2606_v18 = vld [vmem:[%s3421_s1 + $0x164] ss:$8 sps:$4 sm:$0xff]   ;;  %s2204_s25 = sshll.u32 %s3464_s13, 5  ;;  %vm1882_vm1 = vcmask 783360  }
  0x14   : > { %284 = vmatpush1.bf16.msra.mxu0 %v2535_v7  ;;  %506 = vmatpush1.bf16.msra.mxu1 %v2541_v8  ;;  %v2612_v19 = vld [vmem:[%s3421_s1 + $0x100] ss:$8 sps:$4 sm:$0xff]   ;;  %v2624_v21 = vld [vmem:[%s3421_s1 + $0x114] ss:$8 sps:$4 sm:$0xff]   ;;  %s2638_s9 = scalar_lea.vmem %s3420_s0, %s2204_s25  ;;  %v2643_v23 = vld [vmem:[%s3421_s1 + $0x110] ss:$8 sps:$4 sm:$0xff]   ;;  %s170_s28 = scalar_lea.vmem %s3423_s3, %s2204_s25 }
  0x15   : > { %285 = vmatprep.subr.bf16.mxu0 %v2547_v9  ;;  %507 = vmatprep.subr.bf16.mxu1 %v2554_v10  ;;  %v2617_v20 = vld [vmem:[%s3421_s1 + $0x160] ss:$8 sps:$4 sm:$0xff]   ;;  %v2631_v22 = vld [vmem:[%s3421_s1 + $0x174] ss:$8 sps:$4 sm:$0xff]   ;;  %v2648_v24 = vld [vmem:[%s3421_s1 + $0x170] ss:$8 sps:$4 sm:$0xff]  }
  0x16   : > { %v1960_v25 = vld [vmem:[%s2638_s9 + $0x10] sm:$0xff]  ;;  %v1961_v26 = vld [vmem:[%s2638_s9 + $0x18] sm:$0x3f]  ;;  %v2659_v27 = vld [vmem:[%s3421_s1 + $0x4] ss:$8 sps:$4 sm:$0xff]  }
  0x17   : > { %v2664_v28 = vld [vmem:[%s3421_s1 + $0x64] ss:$8 sps:$4 sm:$0xff]   ;;  %v2666_v29 = vpack.c.bf16 %v1961_v26, %v1960_v25  ;;  %v2673_v30 = vld [vmem:[%s3421_s1] ss:$8 sps:$4 sm:$0xff]   ;;  %v2685_v32 = vld [vmem:[%s3421_s1 + $0x14] ss:$8 sps:$4 sm:$0xff]  }
  0x18   : > { %286 = vmatpush1.bf16.msra.mxu0 %v2559_v11  ;;  %508 = vmatpush1.bf16.msra.mxu1 %v2564_v12  ;;  %v2678_v31 = vld [vmem:[%s3421_s1 + $0x60] ss:$8 sps:$4 sm:$0xff]   ;;  %v2690_v33 = vld [vmem:[%s3421_s1 + $0x74] ss:$8 sps:$4 sm:$0xff]   ;;  %v2701_v34 = vld [vmem:[%s3421_s1 + $0x10] ss:$8 sps:$4 sm:$0xff]  }
  0x19   : > { %287 = vmatprep.subr.bf16.mxu0 %v2571_v13  ;;  %509 = vmatprep.subr.bf16.mxu1 %v2578_v14  ;;  %v2706_v35 = vld [vmem:[%s3421_s1 + $0x70] ss:$8 sps:$4 sm:$0xff]   ;;  %v2713_v36 = vld [vmem:[%s3421_s1 + $0x24] ss:$8 sps:$4 sm:$0xff]   ;;  %v2727_v38 = vld [vmem:[%s3421_s1 + $0x20] ss:$8 sps:$4 sm:$0xff]  }
  0x1a   : > { %v2718_v37 = vld [vmem:[%s3421_s1 + $0x84] ss:$8 sps:$4 sm:$0xff]   ;;  %v2732_v39 = vld [vmem:[%s3421_s1 + $0x80] ss:$8 sps:$4 sm:$0xff]   ;;  %v2739_v40 = vld [vmem:[%s3421_s1 + $0x34] ss:$8 sps:$4 sm:$0xff]  }
  0x1b   : > { %v2744_v41 = vld [vmem:[%s3421_s1 + $0x94] ss:$8 sps:$4 sm:$0xff]   ;;  %v2749_v42 = vld [vmem:[%s3421_s1 + $0x30] ss:$8 sps:$4 sm:$0xff]   ;;  %v2761_v44 = vld [vmem:[%s3421_s1 + $0x44] ss:$8 sps:$4 sm:$0xff]  }
  0x1c   : > { %288 = vmatpush1.bf16.msra.mxu0 %v2587_v15  ;;  %510 = vmatpush1.bf16.msra.mxu1 %v2594_v16  ;;  %v2754_v43 = vld [vmem:[%s3421_s1 + $0x90] ss:$8 sps:$4 sm:$0xff]   ;;  %v2768_v45 = vld [vmem:[%s3421_s1 + $0xa4] ss:$8 sps:$4 sm:$0xff]   ;;  %v2773_v46 = vld [vmem:[%s3421_s1 + $0x40] ss:$8 sps:$4 sm:$0xff]  }
  0x1d   : > { %289 = vmatprep.subr.bf16.mxu0 %v2599_v17  ;;  %511 = vmatprep.subr.bf16.mxu1 %v2606_v18  ;;  %v2778_v47 = vld [vmem:[%s3421_s1 + $0xa0] ss:$8 sps:$4 sm:$0xff]   ;;  %v2785_v48 = vld [vmem:[%s3421_s1 + $0x54] ss:$8 sps:$4 sm:$0xff]   ;;  %v2797_v50 = vld [vmem:[%s3421_s1 + $0x50] ss:$8 sps:$4 sm:$0xff]  }
  0x1e   : > { %v2792_v49 = vld [vmem:[%s3421_s1 + $0xb4] ss:$8 sps:$4 sm:$0xff]   ;;  %v2802_v51 = vld [vmem:[%s3421_s1 + $0xb0] ss:$8 sps:$4 sm:$0xff]   ;;  %v2807_v52 = vld [vmem:[%s3421_s1 + $0x184] ss:$8 sps:$4 sm:$0xff]  }
  0x1f   : > { %v172_v53 = vld [vmem:[%s2638_s9] sm:$0xff]  ;;  %v173_v54 = vld [vmem:[%s2638_s9 + $0x8] sm:$0x3f]  ;;  %v2837_v59 = vld [vmem:[%s3421_s1 + $0x194] ss:$8 sps:$4 sm:$0xff]  }
  0x20   : > { %290 = vmatpush1.bf16.msra.mxu0 %v2612_v19  ;;  %512 = vmatpush1.bf16.msra.mxu1 %v2617_v20  ;;  %v2818_v55 = vld [vmem:[%s3421_s1 + $0x1e4] ss:$8 sps:$4 sm:$0xff]   ;;  %v2823_v56 = vld [vmem:[%s3421_s1 + $0x180] ss:$8 sps:$4 sm:$0xff]   ;;  %v174_v57 = vpack.c.bf16 %v173_v54, %v172_v53  ;;  %v2842_v60 = vld [vmem:[%s3421_s1 + $0x1f4] ss:$8 sps:$4 sm:$0xff]  }
  0x21   : > { %291 = vmatprep.subr.bf16.mxu0 %v2624_v21  ;;  %513 = vmatprep.subr.bf16.mxu1 %v2631_v22  ;;  %v2830_v58 = vld [vmem:[%s3421_s1 + $0x1e0] ss:$8 sps:$4 sm:$0xff]   ;;  %v2851_v61 = vld [vmem:[%s3421_s1 + $0x190] ss:$8 sps:$4 sm:$0xff]   ;;  %v2863_v63 = vld [vmem:[%s3421_s1 + $0x1a4] ss:$8 sps:$4 sm:$0xff]  }
  0x22   : > { %3438 = vst [vmem:[#allocation2_spill] sm:$0xff] %v2851_v61  ;;  %v2856_v62 = vld [vmem:[%s3421_s1 + $0x1f0] ss:$8 sps:$4 sm:$0xff]   ;;  %3440 = vst [vmem:[#allocation4_spill] sm:$0xff] %v2863_v63  ;;  %v2868_v25 = vld [vmem:[%s3421_s1 + $0x204] ss:$8 sps:$4 sm:$0xff]  }
  0x23   : > { %3439 = vst [vmem:[#allocation3_spill] sm:$0xff] %v2856_v62  ;;  %3441 = vst [vmem:[#allocation5_spill] sm:$0xff] %v2868_v25  ;;  %v2877_v26 = vld [vmem:[%s3421_s1 + $0x1a0] ss:$8 sps:$4 sm:$0xff]   ;;  %v2889_v54 = vld [vmem:[%s3421_s1 + $0x1b4] ss:$8 sps:$4 sm:$0xff]  }
  0x24   : > { %292 = vmatpush1.bf16.msra.mxu0 %v2643_v23  ;;  %514 = vmatpush1.bf16.msra.mxu1 %v2648_v24  ;;  %3442 = vst [vmem:[#allocation6_spill] sm:$0xff] %v2877_v26  ;;  %v2882_v53 = vld [vmem:[%s3421_s1 + $0x200] ss:$8 sps:$4 sm:$0xff]   ;;  %3444 = vst [vmem:[#allocation8_spill] sm:$0xff] %v2889_v54 }
  0x25   : > { %387 = vmatprep.subr.bf16.mxu0 %v2659_v27  ;;  %606 = vmatprep.subr.bf16.mxu1 %v2664_v28  ;;  %3443 = vst [vmem:[#allocation7_spill] sm:$0xff] %v2882_v53 }
  0x27   : > { %1986 = vmatmul.mubr.msk.bf16.vlgmr.msra.gmra.mrb[0].mxu0 %vm277_vm0, %v2666_v29  ;;  %2024 = vmatmul.mubr.msk.bf16.vlgmr.msra.gmra.mrb[0].mxu1 %vm277_vm0, %v2666_v29 }
  0x28   : > { %388 = vmatpush1.bf16.msra.mxu0 %v2673_v30  ;;  %607 = vmatpush1.bf16.msra.mxu1 %v2678_v31 }
  0x29   : > { %389 = vmatprep.subr.bf16.mxu0 %v2685_v32  ;;  %608 = vmatprep.subr.bf16.mxu1 %v2690_v33 }
  0x2a   : > { %419 = vmatprep.mubr.bf16.mxu0 %v3424_v2  ;;  %638 = vmatprep.mubr.bf16.mxu1 %v3424_v2 }
  0x2c   : > { %390 = vmatpush1.bf16.msra.mxu0 %v2701_v34  ;;  %609 = vmatpush1.bf16.msra.mxu1 %v2706_v35 }
  0x2d   : > { %391 = vmatprep.subr.bf16.mxu0 %v2713_v36  ;;  %610 = vmatprep.subr.bf16.mxu1 %v2718_v37 }
  0x30   : > { %392 = vmatpush1.bf16.msra.mxu0 %v2727_v38  ;;  %611 = vmatpush1.bf16.msra.mxu1 %v2732_v39 }
  0x31   : > { %393 = vmatprep.subr.bf16.mxu0 %v2739_v40  ;;  %612 = vmatprep.subr.bf16.mxu1 %v2744_v41 }
  0x34   : > { %394 = vmatpush1.bf16.msra.mxu0 %v2749_v42  ;;  %613 = vmatpush1.bf16.msra.mxu1 %v2754_v43 }
  0x35   : > { %395 = vmatprep.subr.bf16.mxu0 %v2761_v44  ;;  %614 = vmatprep.subr.bf16.mxu1 %v2768_v45 }
  0x38   : > { %396 = vmatpush1.bf16.msra.mxu0 %v2773_v46  ;;  %615 = vmatpush1.bf16.msra.mxu1 %v2778_v47 }
  0x39   : > { %397 = vmatprep.subr.bf16.mxu0 %v2785_v48  ;;  %616 = vmatprep.subr.bf16.mxu1 %v2792_v49 }
  0x3c   : > { %398 = vmatpush1.bf16.msra.mxu0 %v2797_v50  ;;  %617 = vmatpush1.bf16.msra.mxu1 %v2802_v51 }
  0x3d   : > { %728 = vmatprep.subr.bf16.mxu0 %v2807_v52  ;;  %848 = vmatprep.subr.bf16.mxu1 %v2818_v55 }
  0x3f   : > { %1999 = vmatmul.mubr.msk.bf16.vlgmr.msra.gmra.mrb[0].mxu0 %vm277_vm0, %v174_v57  ;;  %2037 = vmatmul.mubr.msk.bf16.vlgmr.msra.gmra.mrb[0].mxu1 %vm277_vm0, %v174_v57  ;;  %v2894_v57 = vld [vmem:[%s3421_s1 + $0x214] ss:$8 sps:$4 sm:$0xff]  }
  0x40   : > { %729 = vmatpush1.bf16.msra.mxu0 %v2823_v56  ;;  %849 = vmatpush1.bf16.msra.mxu1 %v2830_v58  ;;  %3445 = vst [vmem:[#allocation9_spill] sm:$0xff] %v2894_v57 }
  0x41   : > { %730 = vmatprep.subr.bf16.mxu0 %v2837_v59  ;;  %850 = vmatprep.subr.bf16.mxu1 %v2842_v60 }
  0x42   : > { %760 = vmatprep.mubr.bf16.mxu0 %v3424_v2  ;;  %880 = vmatprep.mubr.bf16.mxu1 %v3424_v2  ;;  %v2901_v2 = vld [vmem:[%s3421_s1 + $0x1b0] ss:$8 sps:$4 sm:$0xff]  }
  0x43   : > { %3446 = vst [vmem:[#allocation10_spill] sm:$0xff] %v2901_v2 }
  0x44   : > { %731 = vmatpush1.bf16.msra.mxu0 %v2851_v61  ;;  %851 = vmatpush1.bf16.msra.mxu1 %v2856_v62  ;;  %v650_v62 = vld [vmem:[%s2638_s9 + $0x9] sm:$0x3f] }
  0x45   : > { %732 = vmatprep.subr.bf16.mxu0 %v2863_v63  ;;  %852 = vmatprep.subr.bf16.mxu1 %v2868_v25  ;;  %v2906_v25 = vld [vmem:[%s3421_s1 + $0x210] ss:$8 sps:$4 sm:$0xff]  }
  0x46   : > { %3447 = vst [vmem:[#allocation11_spill] sm:$0xff] %v2906_v25  ;;  %v2947_v63 = vld [vmem:[%s3421_s1 + $0x1d0] ss:$8 sps:$4 sm:$0xff]  }
  0x48   : > { %733 = vmatpush1.bf16.msra.mxu0 %v2877_v26  ;;  %853 = vmatpush1.bf16.msra.mxu1 %v2882_v53  ;;  %v2913_v53 = vld [vmem:[%s3421_s1 + $0x1c4] ss:$8 sps:$4 sm:$0xff]  }
  0x49   : > { %734 = vmatprep.subr.bf16.mxu0 %v2889_v54  ;;  %854 = vmatprep.subr.bf16.mxu1 %v2894_v57  ;;  %3448 = vst [vmem:[#allocation12_spill] sm:$0xff] %v2913_v53  ;;  %v2918_v26 = vld [vmem:[%s3421_s1 + $0x224] ss:$8 sps:$4 sm:$0xff]   ;;  %v2925_v54 = vld [vmem:[%s3421_s1 + $0x1c0] ss:$8 sps:$4 sm:$0xff]  }
  0x4a   : > { %3449 = vst [vmem:[#allocation13_spill] sm:$0xff] %v2918_v26  ;;  %v2930_v57 = vld [vmem:[%s3421_s1 + $0x220] ss:$8 sps:$4 sm:$0xff]  }
  0x4c   : > { %735 = vmatpush1.bf16.msra.mxu0 %v2901_v2  ;;  %855 = vmatpush1.bf16.msra.mxu1 %v2906_v25  ;;  %v2937_v2 = vld [vmem:[%s3421_s1 + $0x1d4] ss:$8 sps:$4 sm:$0xff]  }
  0x4d   : > { %736 = vmatprep.subr.bf16.mxu0 %v2913_v53  ;;  %856 = vmatprep.subr.bf16.mxu1 %v2918_v26  ;;  %v2942_v25 = vld [vmem:[%s3421_s1 + $0x234] ss:$8 sps:$4 sm:$0xff]   ;;  %v2952_v53 = vld [vmem:[%s3421_s1 + $0x230] ss:$8 sps:$4 sm:$0xff]   ;;  %v649_v26 = vld [vmem:[%s2638_s9 + $0x1] sm:$0xff] }
  0x4e   : > { %v651_v61 = vpack.c.bf16 %v650_v62, %v649_v26  ;;  %v3450_v62 = vmov 0   ;;  %v3323_v26 = vld [vmem:[%s3421_s1 + $0x354] ss:$8 sps:$4 sm:$0xff]  }
  0x50   : > { %737 = vmatpush1.bf16.msra.mxu0 %v2925_v54  ;;  %857 = vmatpush1.bf16.msra.mxu1 %v2930_v57 }
  0x51   : > { %738 = vmatprep.subr.bf16.mxu0 %v2937_v2  ;;  %858 = vmatprep.subr.bf16.mxu1 %v2942_v25 }
  0x54   : > { %739 = vmatpush1.bf16.msra.mxu0 %v2947_v63  ;;  %859 = vmatpush1.bf16.msra.mxu1 %v2952_v53 }
  0x55   : > { %895 = vmatprep.subr.bf16.mxu0 %v2499_v0  ;;  %981 = vmatprep.subr.bf16.mxu1 %v2504_v1  ;;  %v3019_v0 = vld [vmem:[%s3421_s1 + $0x244] ss:$8 sps:$4 sm:$0xff]  }
  0x56   : > { %v3024_v1 = vld [vmem:[%s3421_s1 + $0x2a4] ss:$8 sps:$4 sm:$0xff]  }
  0x57   : > { %2062 = vmatmul.mubr.msk.bf16.vlgmr.msra.gmra.mrb[0].mxu0 %vm277_vm0, %v651_v61  ;;  %2087 = vmatmul.mubr.msk.bf16.vlgmr.msra.gmra.mrb[0].mxu1 %vm277_vm0, %v651_v61 }
  0x58   : > { %896 = vmatpush1.bf16.msra.mxu0 %v2512_v3  ;;  %982 = vmatpush1.bf16.msra.mxu1 %v2517_v4  ;;  %v3031_v3 = vld [vmem:[%s3421_s1 + $0x240] ss:$8 sps:$4 sm:$0xff]  }
  0x59   : > { %897 = vmatprep.subr.bf16.mxu0 %v2523_v5  ;;  %983 = vmatprep.subr.bf16.mxu1 %v2530_v6  ;;  %v3036_v4 = vld [vmem:[%s3421_s1 + $0x2a0] ss:$8 sps:$4 sm:$0xff]   ;;  %v3043_v5 = vld [vmem:[%s3421_s1 + $0x254] ss:$8 sps:$4 sm:$0xff]  }
  0x5a   : > { %927 = vmatprep.mubr.bf16.mxu0 %v3450_v62  ;;  %1013 = vmatprep.mubr.bf16.mxu1 %v3450_v62  ;;  %v3048_v6 = vld [vmem:[%s3421_s1 + $0x2b4] ss:$8 sps:$4 sm:$0xff]  }
  0x5c   : > { %898 = vmatpush1.bf16.msra.mxu0 %v2535_v7  ;;  %984 = vmatpush1.bf16.msra.mxu1 %v2541_v8  ;;  %v3059_v7 = vld [vmem:[%s3421_s1 + $0x250] ss:$8 sps:$4 sm:$0xff]  }
  0x5d   : > { %899 = vmatprep.subr.bf16.mxu0 %v2547_v9  ;;  %985 = vmatprep.subr.bf16.mxu1 %v2554_v10  ;;  %v3064_v8 = vld [vmem:[%s3421_s1 + $0x2b0] ss:$8 sps:$4 sm:$0xff]   ;;  %v3071_v9 = vld [vmem:[%s3421_s1 + $0x264] ss:$8 sps:$4 sm:$0xff]  }
  0x5e   : > { %v3076_v10 = vld [vmem:[%s3421_s1 + $0x2c4] ss:$8 sps:$4 sm:$0xff]  }
  0x60   : > { %900 = vmatpush1.bf16.msra.mxu0 %v2559_v11  ;;  %986 = vmatpush1.bf16.msra.mxu1 %v2564_v12  ;;  %v3085_v11 = vld [vmem:[%s3421_s1 + $0x260] ss:$8 sps:$4 sm:$0xff]  }
  0x61   : > { %901 = vmatprep.subr.bf16.mxu0 %v2571_v13  ;;  %987 = vmatprep.subr.bf16.mxu1 %v2578_v14  ;;  %v3090_v12 = vld [vmem:[%s3421_s1 + $0x2c0] ss:$8 sps:$4 sm:$0xff]   ;;  %v3097_v13 = vld [vmem:[%s3421_s1 + $0x274] ss:$8 sps:$4 sm:$0xff]  }
  0x62   : > { %v3102_v14 = vld [vmem:[%s3421_s1 + $0x2d4] ss:$8 sps:$4 sm:$0xff]  }
  0x64   : > { %902 = vmatpush1.bf16.msra.mxu0 %v2587_v15  ;;  %988 = vmatpush1.bf16.msra.mxu1 %v2594_v16  ;;  %v3109_v15 = vld [vmem:[%s3421_s1 + $0x270] ss:$8 sps:$4 sm:$0xff]  }
  0x65   : > { %903 = vmatprep.subr.bf16.mxu0 %v2599_v17  ;;  %989 = vmatprep.subr.bf16.mxu1 %v2606_v18  ;;  %v3114_v16 = vld [vmem:[%s3421_s1 + $0x2d0] ss:$8 sps:$4 sm:$0xff]   ;;  %v3121_v17 = vld [vmem:[%s3421_s1 + $0x284] ss:$8 sps:$4 sm:$0xff]  }
  0x66   : > { %v3126_v18 = vld [vmem:[%s3421_s1 + $0x2e4] ss:$8 sps:$4 sm:$0xff]  }
  0x68   : > { %904 = vmatpush1.bf16.msra.mxu0 %v2612_v19  ;;  %990 = vmatpush1.bf16.msra.mxu1 %v2617_v20  ;;  %v3133_v19 = vld [vmem:[%s3421_s1 + $0x280] ss:$8 sps:$4 sm:$0xff]  }
  0x69   : > { %905 = vmatprep.subr.bf16.mxu0 %v2624_v21  ;;  %991 = vmatprep.subr.bf16.mxu1 %v2631_v22  ;;  %v3138_v20 = vld [vmem:[%s3421_s1 + $0x2e0] ss:$8 sps:$4 sm:$0xff]   ;;  %v3145_v21 = vld [vmem:[%s3421_s1 + $0x294] ss:$8 sps:$4 sm:$0xff]  }
  0x6a   : > { %v3150_v22 = vld [vmem:[%s3421_s1 + $0x2f4] ss:$8 sps:$4 sm:$0xff]  }
  0x6c   : > { %906 = vmatpush1.bf16.msra.mxu0 %v2643_v23  ;;  %992 = vmatpush1.bf16.msra.mxu1 %v2648_v24  ;;  %v3155_v23 = vld [vmem:[%s3421_s1 + $0x290] ss:$8 sps:$4 sm:$0xff]  }
  0x6d   : > { %938 = vmatprep.subr.bf16.mxu0 %v2659_v27  ;;  %1024 = vmatprep.subr.bf16.mxu1 %v2664_v28  ;;  %v3162_v24 = vld [vmem:[%s3421_s1 + $0x2f0] ss:$8 sps:$4 sm:$0xff]  }
  0x6e   : > { %v2092_v27 = vld [vmem:[%s2638_s9 + $0x11] sm:$0xff]  ;;  %v2093_v28 = vld [vmem:[%s2638_s9 + $0x19] sm:$0x3f] }
  0x6f   : > { %2088 = vmatmul.mubr.msk.bf16.vlgmr.msra.gmra.mrb[4].mxu0 %vm277_vm0, %v651_v61  ;;  %2090 = vmatmul.mubr.msk.bf16.vlgmr.msra.gmra.mrb[4].mxu1 %vm277_vm0, %v651_v61  ;;  %v3304_v61 = vld [vmem:[%s3421_s1 + $0x3a4] ss:$8 sps:$4 sm:$0xff]  }
  0x70   : > { %939 = vmatpush1.bf16.msra.mxu0 %v2673_v30  ;;  %1025 = vmatpush1.bf16.msra.mxu1 %v2678_v31  ;;  %v3451_v30 = vld [vmem:[#allocation2_spill] sm:$0xff]  ;;  %v3452_v31 = vld [vmem:[#allocation3_spill] sm:$0xff] }
  0x71   : > { %940 = vmatprep.subr.bf16.mxu0 %v2685_v32  ;;  %1026 = vmatprep.subr.bf16.mxu1 %v2690_v33  ;;  %v3453_v32 = vld [vmem:[#allocation4_spill] sm:$0xff]  ;;  %v3454_v33 = vld [vmem:[#allocation5_spill] sm:$0xff] }
  0x72   : > { %970 = vmatprep.mubr.bf16.mxu0 %v3450_v62  ;;  %1056 = vmatprep.mubr.bf16.mxu1 %v3450_v62 }
  0x74   : > { %941 = vmatpush1.bf16.msra.mxu0 %v2701_v34  ;;  %1027 = vmatpush1.bf16.msra.mxu1 %v2706_v35  ;;  %v3455_v34 = vld [vmem:[#allocation6_spill] sm:$0xff]  ;;  %v3456_v35 = vld [vmem:[#allocation7_spill] sm:$0xff] }
  0x75   : > { %942 = vmatprep.subr.bf16.mxu0 %v2713_v36  ;;  %1028 = vmatprep.subr.bf16.mxu1 %v2718_v37  ;;  %v3457_v36 = vld [vmem:[#allocation8_spill] sm:$0xff]  ;;  %v3458_v37 = vld [vmem:[#allocation9_spill] sm:$0xff] }
  0x78   : > { %943 = vmatpush1.bf16.msra.mxu0 %v2727_v38  ;;  %1029 = vmatpush1.bf16.msra.mxu1 %v2732_v39  ;;  %v3459_v38 = vld [vmem:[#allocation10_spill] sm:$0xff]  ;;  %v3460_v39 = vld [vmem:[#allocation11_spill] sm:$0xff] }
  0x79   : > { %944 = vmatprep.subr.bf16.mxu0 %v2739_v40  ;;  %1030 = vmatprep.subr.bf16.mxu1 %v2744_v41  ;;  %v3461_v40 = vld [vmem:[#allocation12_spill] sm:$0xff]  ;;  %v3462_v41 = vld [vmem:[#allocation13_spill] sm:$0xff] }
  0x7c   : > { %945 = vmatpush1.bf16.msra.mxu0 %v2749_v42  ;;  %1031 = vmatpush1.bf16.msra.mxu1 %v2754_v43  ;;  %v3199_v42 = vld [vmem:[%s3421_s1 + $0x304] ss:$8 sps:$4 sm:$0xff]  }
  0x7d   : > { %946 = vmatprep.subr.bf16.mxu0 %v2761_v44  ;;  %1032 = vmatprep.subr.bf16.mxu1 %v2768_v45  ;;  %v3204_v43 = vld [vmem:[%s3421_s1 + $0x364] ss:$8 sps:$4 sm:$0xff]   ;;  %v3216_v44 = vld [vmem:[%s3421_s1 + $0x360] ss:$8 sps:$4 sm:$0xff]   ;;  %v3223_v45 = vld [vmem:[%s3421_s1 + $0x314] ss:$8 sps:$4 sm:$0xff]  }
  0x80   : > { %947 = vmatpush1.bf16.msra.mxu0 %v2773_v46  ;;  %1033 = vmatpush1.bf16.msra.mxu1 %v2778_v47  ;;  %v3228_v46 = vld [vmem:[%s3421_s1 + $0x374] ss:$8 sps:$4 sm:$0xff]   ;;  %v3237_v47 = vld [vmem:[%s3421_s1 + $0x310] ss:$8 sps:$4 sm:$0xff]  }
  0x81   : > { %948 = vmatprep.subr.bf16.mxu0 %v2785_v48  ;;  %1034 = vmatprep.subr.bf16.mxu1 %v2792_v49  ;;  %v3242_v48 = vld [vmem:[%s3421_s1 + $0x370] ss:$8 sps:$4 sm:$0xff]   ;;  %v3249_v49 = vld [vmem:[%s3421_s1 + $0x324] ss:$8 sps:$4 sm:$0xff]  }
  0x84   : > { %949 = vmatpush1.bf16.msra.mxu0 %v2797_v50  ;;  %1035 = vmatpush1.bf16.msra.mxu1 %v2802_v51  ;;  %v3254_v50 = vld [vmem:[%s3421_s1 + $0x384] ss:$8 sps:$4 sm:$0xff]   ;;  %v3263_v51 = vld [vmem:[%s3421_s1 + $0x320] ss:$8 sps:$4 sm:$0xff]  }
  0x85   : > { %1146 = vmatprep.subr.bf16.mxu0 %v3019_v0  ;;  %1266 = vmatprep.subr.bf16.mxu1 %v3024_v1 }
  0x87   : > { %2089 = vmatmul.mubr.msk.bf16.vlgmr.msra.gmra.mrb[4].mxu0 %vm277_vm0, %v2666_v29  ;;  %2091 = vmatmul.mubr.msk.bf16.vlgmr.msra.gmra.mrb[4].mxu1 %vm277_vm0, %v2666_v29  ;;  %v1069_v29 = vpack.c.bf16 %v2093_v28, %v2092_v27  ;;  %v1407_v27 = vld [vmem:[%s2638_s9 + $0x2] sm:$0xff]  ;;  %v1408_v28 = vld [vmem:[%s2638_s9 + $0xa] sm:$0x3f] }
  0x88   : > { %1147 = vmatpush1.bf16.msra.mxu0 %v3031_v3  ;;  %1267 = vmatpush1.bf16.msra.mxu1 %v3036_v4 }
  0x89   : > { %1148 = vmatprep.subr.bf16.mxu0 %v3043_v5  ;;  %1268 = vmatprep.subr.bf16.mxu1 %v3048_v6 }
  0x8a   : > { %1178 = vmatprep.mubr.bf16.mxu0 %v3450_v62  ;;  %1298 = vmatprep.mubr.bf16.mxu1 %v3450_v62 }
  0x8c   : > { %1149 = vmatpush1.bf16.msra.mxu0 %v3059_v7  ;;  %1269 = vmatpush1.bf16.msra.mxu1 %v3064_v8 }
  0x8d   : > { %1150 = vmatprep.subr.bf16.mxu0 %v3071_v9  ;;  %1270 = vmatprep.subr.bf16.mxu1 %v3076_v10 }
  0x90   : > { %1151 = vmatpush1.bf16.msra.mxu0 %v3085_v11  ;;  %1271 = vmatpush1.bf16.msra.mxu1 %v3090_v12 }
  0x91   : > { %1152 = vmatprep.subr.bf16.mxu0 %v3097_v13  ;;  %1272 = vmatprep.subr.bf16.mxu1 %v3102_v14 }
  0x94   : > { %1153 = vmatpush1.bf16.msra.mxu0 %v3109_v15  ;;  %1273 = vmatpush1.bf16.msra.mxu1 %v3114_v16 }
  0x95   : > { %1154 = vmatprep.subr.bf16.mxu0 %v3121_v17  ;;  %1274 = vmatprep.subr.bf16.mxu1 %v3126_v18 }
  0x98   : > { %1155 = vmatpush1.bf16.msra.mxu0 %v3133_v19  ;;  %1275 = vmatpush1.bf16.msra.mxu1 %v3138_v20 }
  0x99   : > { %1156 = vmatprep.subr.bf16.mxu0 %v3145_v21  ;;  %1276 = vmatprep.subr.bf16.mxu1 %v3150_v22 }
  0x9c   : > { %1157 = vmatpush1.bf16.msra.mxu0 %v3155_v23  ;;  %1277 = vmatpush1.bf16.msra.mxu1 %v3162_v24 }
  0x9d   : > { %1313 = vmatprep.subr.bf16.mxu0 %v2807_v52  ;;  %1360 = vmatprep.subr.bf16.mxu1 %v2818_v55  ;;  %v3268_v52 = vld [vmem:[%s3421_s1 + $0x380] ss:$8 sps:$4 sm:$0xff]   ;;  %v3275_v55 = vld [vmem:[%s3421_s1 + $0x334] ss:$8 sps:$4 sm:$0xff]  }
  0x9f   : > { %2118 = vmatmul.mubr.msk.bf16.vlgmr.msra.gmra.mrb[0].mxu0 %vm277_vm0, %v1069_v29  ;;  %2143 = vmatmul.mubr.msk.bf16.vlgmr.msra.gmra.mrb[0].mxu1 %vm277_vm0, %v1069_v29 }
  0xa0   : > { %1314 = vmatpush1.bf16.msra.mxu0 %v2823_v56  ;;  %1361 = vmatpush1.bf16.msra.mxu1 %v2830_v58  ;;  %v3280_v56 = vld [vmem:[%s3421_s1 + $0x394] ss:$8 sps:$4 sm:$0xff]   ;;  %v3287_v58 = vld [vmem:[%s3421_s1 + $0x330] ss:$8 sps:$4 sm:$0xff]  }
  0xa1   : > { %1315 = vmatprep.subr.bf16.mxu0 %v2837_v59  ;;  %1362 = vmatprep.subr.bf16.mxu1 %v2842_v60  ;;  %v3292_v59 = vld [vmem:[%s3421_s1 + $0x390] ss:$8 sps:$4 sm:$0xff]   ;;  %v3299_v60 = vld [vmem:[%s3421_s1 + $0x344] ss:$8 sps:$4 sm:$0xff]  }
  0xa2   : > { %1345 = vmatprep.mubr.bf16.mxu0 %v3450_v62  ;;  %1392 = vmatprep.mubr.bf16.mxu1 %v3450_v62 }
  0xa4   : > { %1316 = vmatpush1.bf16.msra.mxu0 %v3451_v30  ;;  %1363 = vmatpush1.bf16.msra.mxu1 %v3452_v31 }
  0xa5   : > { %1317 = vmatprep.subr.bf16.mxu0 %v3453_v32  ;;  %1364 = vmatprep.subr.bf16.mxu1 %v3454_v33 }
  0xa8   : > { %1318 = vmatpush1.bf16.msra.mxu0 %v3455_v34  ;;  %1365 = vmatpush1.bf16.msra.mxu1 %v3456_v35 }
  0xa9   : > { %1319 = vmatprep.subr.bf16.mxu0 %v3457_v36  ;;  %1366 = vmatprep.subr.bf16.mxu1 %v3458_v37 }
  0xac   : > { %1320 = vmatpush1.bf16.msra.mxu0 %v3459_v38  ;;  %1367 = vmatpush1.bf16.msra.mxu1 %v3460_v39 }
  0xad   : > { %1321 = vmatprep.subr.bf16.mxu0 %v3461_v40  ;;  %1368 = vmatprep.subr.bf16.mxu1 %v3462_v41 }
  0xb0   : > { %1322 = vmatpush1.bf16.msra.mxu0 %v2925_v54  ;;  %1369 = vmatpush1.bf16.msra.mxu1 %v2930_v57  ;;  %v3333_v54 = vld [vmem:[%s3421_s1 + $0x350] ss:$8 sps:$4 sm:$0xff]  }
  0xb1   : > { %1323 = vmatprep.subr.bf16.mxu0 %v2937_v2  ;;  %1370 = vmatprep.subr.bf16.mxu1 %v2942_v25  ;;  %v3211_v2 = vld [vmem:[%s3421_s1 + $0x300] ss:$8 sps:$4 sm:$0xff]   ;;  %v3340_v57 = vld [vmem:[%s3421_s1 + $0x3b0] ss:$8 sps:$4 sm:$0xff]  }
  0xb2   : > { %v3316_v25 = vld [vmem:[%s3421_s1 + $0x3a0] ss:$8 sps:$4 sm:$0xff]  }
  0xb4   : > { %1324 = vmatpush1.bf16.msra.mxu0 %v2947_v63  ;;  %1371 = vmatpush1.bf16.msra.mxu1 %v2952_v53  ;;  %v3311_v63 = vld [vmem:[%s3421_s1 + $0x340] ss:$8 sps:$4 sm:$0xff]   ;;  %v3328_v53 = vld [vmem:[%s3421_s1 + $0x3b4] ss:$8 sps:$4 sm:$0xff]  }
  0xb5   : > { %1486 = vmatprep.subr.bf16.mxu0 %v3199_v42  ;;  %1606 = vmatprep.subr.bf16.mxu1 %v3204_v43 }
  0xb7   : > { %2144 = vmatmul.mubr.msk.bf16.vlgmr.msra.gmra.mrb[4].mxu0 %vm277_vm0, %v1069_v29  ;;  %2145 = vmatmul.mubr.msk.bf16.vlgmr.msra.gmra.mrb[4].mxu1 %vm277_vm0, %v1069_v29  ;;  %v1409_v29 = vpack.c.bf16 %v1408_v28, %v1407_v27 }
  0xb8   : > { %1487 = vmatpush1.bf16.msra.mxu0 %v3211_v2  ;;  %1607 = vmatpush1.bf16.msra.mxu1 %v3216_v44 }
  0xb9   : > { %1488 = vmatprep.subr.bf16.mxu0 %v3223_v45  ;;  %1608 = vmatprep.subr.bf16.mxu1 %v3228_v46 }
  0xba   : > { %1518 = vmatprep.mubr.bf16.mxu0 %v3450_v62  ;;  %1638 = vmatprep.mubr.bf16.mxu1 %v3450_v62 }
  0xbc   : > { %1489 = vmatpush1.bf16.msra.mxu0 %v3237_v47  ;;  %1609 = vmatpush1.bf16.msra.mxu1 %v3242_v48 }
  0xbd   : > { %1490 = vmatprep.subr.bf16.mxu0 %v3249_v49  ;;  %1610 = vmatprep.subr.bf16.mxu1 %v3254_v50 }
  0xc0   : > { %1491 = vmatpush1.bf16.msra.mxu0 %v3263_v51  ;;  %1611 = vmatpush1.bf16.msra.mxu1 %v3268_v52 }
  0xc1   : > { %1492 = vmatprep.subr.bf16.mxu0 %v3275_v55  ;;  %1612 = vmatprep.subr.bf16.mxu1 %v3280_v56 }
  0xc4   : > { %1493 = vmatpush1.bf16.msra.mxu0 %v3287_v58  ;;  %1613 = vmatpush1.bf16.msra.mxu1 %v3292_v59 }
  0xc5   : > { %1494 = vmatprep.subr.bf16.mxu0 %v3299_v60  ;;  %1614 = vmatprep.subr.bf16.mxu1 %v3304_v61 }
  0xc8   : > { %1495 = vmatpush1.bf16.msra.mxu0 %v3311_v63  ;;  %1615 = vmatpush1.bf16.msra.mxu1 %v3316_v25 }
  0xc9   : > { %1496 = vmatprep.subr.bf16.mxu0 %v3323_v26  ;;  %1616 = vmatprep.subr.bf16.mxu1 %v3328_v53 }
  0xcc   : > { %1497 = vmatpush1.bf16.msra.mxu0 %v3333_v54  ;;  %1617 = vmatpush1.bf16.msra.mxu1 %v3340_v57 }
  0xcd   : > { %1653 = vmatprep.subr.bf16.mxu0 %v3019_v0  ;;  %1700 = vmatprep.subr.bf16.mxu1 %v3024_v1  ;;  %v2199_v0 = vld [vmem:[%s2638_s9 + $0x1a] sm:$0x3f] }
  0xcf   : > { %2170 = vmatmul.mubr.msk.bf16.vlgmr.msra.gmra.mrb[0].mxu0 %vm277_vm0, %v1409_v29  ;;  %2195 = vmatmul.mubr.msk.bf16.vlgmr.msra.gmra.mrb[0].mxu1 %vm277_vm0, %v1409_v29 }
  0xd0   : > { %1654 = vmatpush1.bf16.msra.mxu0 %v3031_v3  ;;  %1701 = vmatpush1.bf16.msra.mxu1 %v3036_v4 }
  0xd1   : > { %1655 = vmatprep.subr.bf16.mxu0 %v3043_v5  ;;  %1702 = vmatprep.subr.bf16.mxu1 %v3048_v6 }
  0xd2   : > { %1685 = vmatprep.mubr.bf16.mxu0 %v3450_v62  ;;  %1732 = vmatprep.mubr.bf16.mxu1 %v3450_v62 }
  0xd4   : > { %1656 = vmatpush1.bf16.msra.mxu0 %v3059_v7  ;;  %1703 = vmatpush1.bf16.msra.mxu1 %v3064_v8 }
  0xd5   : > { %1657 = vmatprep.subr.bf16.mxu0 %v3071_v9  ;;  %1704 = vmatprep.subr.bf16.mxu1 %v3076_v10 }
  0xd8   : > { %1658 = vmatpush1.bf16.msra.mxu0 %v3085_v11  ;;  %1705 = vmatpush1.bf16.msra.mxu1 %v3090_v12 }
  0xd9   : > { %1659 = vmatprep.subr.bf16.mxu0 %v3097_v13  ;;  %1706 = vmatprep.subr.bf16.mxu1 %v3102_v14 }
  0xdc   : > { %1660 = vmatpush1.bf16.msra.mxu0 %v3109_v15  ;;  %1707 = vmatpush1.bf16.msra.mxu1 %v3114_v16  ;;  %v1861_v15 = vlaneseq }
  0xdd   : > { %1661 = vmatprep.subr.bf16.mxu0 %v3121_v17  ;;  %1708 = vmatprep.subr.bf16.mxu1 %v3126_v18  ;;  %v1859_v18 = vld [vmem:[%s3422_s2] sm:$0x3] }
  0xde   : > { %v1862_v16 = vshrl.u32 %v1861_v15, 7 }
  0xe0   : > { %1662 = vmatpush1.bf16.msra.mxu0 %v3133_v19  ;;  %1709 = vmatpush1.bf16.msra.mxu1 %v3138_v20  ;;  %v1863_v17 = vsub.s32 0, %v1862_v16  ;;  %v1867_v19 = vsub.s32 1, %v1862_v16 }
  0xe1   : > { %1663 = vmatprep.subr.bf16.mxu0 %v3145_v21  ;;  %1710 = vmatprep.subr.bf16.mxu1 %v3150_v22 }
  0xe2   : > { %v1868_v32 = vrot.slane %v1859_v18, %v1867_v19 }
  0xe4   : > { %1664 = vmatpush1.bf16.msra.mxu0 %v3155_v23  ;;  %1711 = vmatpush1.bf16.msra.mxu1 %v3162_v24  ;;  %v1864_v23 = vrot.slane %v1859_v18, %v1863_v17 }
  0xe5   : > { %1753 = vmatprep.subr.bf16.mxu0 %v3199_v42  ;;  %1800 = vmatprep.subr.bf16.mxu1 %v3204_v43 }
  0xe7   : > { %2196 = vmatmul.mubr.msk.bf16.vlgmr.msra.gmra.mrb[4].mxu0 %vm277_vm0, %v1409_v29  ;;  %2197 = vmatmul.mubr.msk.bf16.vlgmr.msra.gmra.mrb[4].mxu1 %vm277_vm0, %v1409_v29 }
  0xe8   : > { %1754 = vmatpush1.bf16.msra.mxu0 %v3211_v2  ;;  %1801 = vmatpush1.bf16.msra.mxu1 %v3216_v44 }
  0xe9   : > { %1755 = vmatprep.subr.bf16.mxu0 %v3223_v45  ;;  %1802 = vmatprep.subr.bf16.mxu1 %v3228_v46 }
  0xea   : > { %1785 = vmatprep.mubr.bf16.mxu0 %v3450_v62  ;;  %1832 = vmatprep.mubr.bf16.mxu1 %v3450_v62  ;;  %v2198_v62 = vld [vmem:[%s2638_s9 + $0x12] sm:$0xff] }
  0xeb   : > { %v1749_v1 = vpack.c.bf16 %v2199_v0, %v2198_v62 }
  0xec   : > { %1756 = vmatpush1.bf16.msra.mxu0 %v3237_v47  ;;  %1803 = vmatpush1.bf16.msra.mxu1 %v3242_v48 }
  0xed   : > { %1757 = vmatprep.subr.bf16.mxu0 %v3249_v49  ;;  %1804 = vmatprep.subr.bf16.mxu1 %v3254_v50 }
  0xf0   : > { %1758 = vmatpush1.bf16.msra.mxu0 %v3263_v51  ;;  %1805 = vmatpush1.bf16.msra.mxu1 %v3268_v52 }
  0xf1   : > { %1759 = vmatprep.subr.bf16.mxu0 %v3275_v55  ;;  %1806 = vmatprep.subr.bf16.mxu1 %v3280_v56 }
  0xf4   : > { %1760 = vmatpush1.bf16.msra.mxu0 %v3287_v58  ;;  %1807 = vmatpush1.bf16.msra.mxu1 %v3292_v59 }
  0xf5   : > { %1761 = vmatprep.subr.bf16.mxu0 %v3299_v60  ;;  %1808 = vmatprep.subr.bf16.mxu1 %v3304_v61 }
  0xf8   : > { %1762 = vmatpush1.bf16.msra.mxu0 %v3311_v63  ;;  %1809 = vmatpush1.bf16.msra.mxu1 %v3316_v25 }
  0xf9   : > { %1763 = vmatprep.subr.bf16.mxu0 %v3323_v26  ;;  %1810 = vmatprep.subr.bf16.mxu1 %v3328_v53 }
  0xfc   : > { %1764 = vmatpush1.bf16.msra.mxu0 %v3333_v54  ;;  %1811 = vmatpush1.bf16.msra.mxu1 %v3340_v57 }
  0xff   : > { %2200 = vmatmul.mubr.msk.bf16.vlgmr.msra.gmra.mrb[4].mxu0 %vm277_vm0, %v1749_v1  ;;  %2201 = vmatmul.mubr.msk.bf16.vlgmr.msra.gmra.mrb[4].mxu1 %vm277_vm0, %v1749_v1 }
 0x1a2   : > { %v1520_v3 = vpop.f32.mrb[0].mxu0  ;;  %v1640_v4 = vpop.f32.mrb[0].mxu1 }
 0x1a3   : > { %v1847_v5 = vmax.f32 %v1520_v3, %v1640_v4  ;;  %v1522_v6 = vpop.f32.mrb[1].mxu0  ;;  %v1642_v7 = vpop.f32.mrb[1].mxu1 }
 0x1a4   : > { %v1848_v8 = vmax.f32 %v1522_v6, %v1642_v7  ;;  %v1524_v9 = vpop.f32.mrb[2].mxu0  ;;  %v1644_v10 = vpop.f32.mrb[2].mxu1 }
 0x1a5   : > { %v1849_v11 = vmax.f32 %v1524_v9, %v1644_v10  ;;  %v1526_v12 = vpop.f32.mrb[3].mxu0  ;;  %v1646_v13 = vpop.f32.mrb[3].mxu1 }
 0x1a6   : > { %v1850_v14 = vmax.f32 %v1526_v12, %v1646_v13 }
 0x1d2   : > { %v1787_v20 = vpop.f32.mrb[4].mxu0  ;;  %v1834_v21 = vpop.f32.mrb[4].mxu1 }
 0x1d3   : > { %v1851_v22 = vmax.f32 %v1787_v20, %v1834_v21  ;;  %v1789_v24 = vpop.f32.mrb[5].mxu0  ;;  %v1836_v30 = vpop.f32.mrb[5].mxu1 }
 0x1d4   : > { %v1852_v31 = vmax.f32 %v1789_v24, %v1836_v30  ;;  %v1791_v33 = vpop.f32.mrb[6].mxu0  ;;  %v1838_v34 = vpop.f32.mrb[6].mxu1 }
 0x1d5   : > { %v1855_v35 = vmax.f32 %v1847_v5, %v1851_v22  ;;  %v1853_v36 = vmax.f32 %v1791_v33, %v1838_v34  ;;  %v1793_v37 = vpop.f32.mrb[7].mxu0  ;;  %v1840_v38 = vpop.f32.mrb[7].mxu1 }
 0x1d6   : > { %v1856_v39 = vmax.f32 %v1848_v8, %v1852_v31  ;;  %v1854_v40 = vmax.f32 %v1793_v37, %v1840_v38 }
 0x1d7   : > { %v1871_v41 = vadd.f32 %v1864_v23, %v1855_v35  ;;  %v1857_v42 = vmax.f32 %v1849_v11, %v1853_v36 }
 0x1d8   : > { %v1872_v43 = vadd.f32 %v1868_v32, %v1856_v39  ;;  %v1858_v2 = vmax.f32 %v1850_v14, %v1854_v40 }
 0x1d9   : > { %v1875_v44 = vmax.f32 %v1871_v41, 0.0  ;;  %v1873_v45 = vadd.f32 %v1864_v23, %v1857_v42 }
 0x1da   : > { %v1876_v46 = vmax.f32 %v1872_v43, 0.0  ;;  %v1874_v47 = vadd.f32 %v1868_v32, %v1858_v2 }
 0x1db   : > { %1879 = vst [vmem:[%s170_s28] sm:$0xff] %v1875_v44  ;;  %v1877_v48 = vmax.f32 %v1873_v45, 0.0 }
 0x1dc   : > { %1880 = vst.msk [vmem:[%s170_s28 + $0x8] sm:$0xff] %vm277_vm0, %v1876_v46  ;;  %v1878_v49 = vmax.f32 %v1874_v47, 0.0 }
 0x1dd   : > { %1881 = vst [vmem:[%s170_s28 + $0x10] sm:$0x3f] %v1877_v48 }
 0x1de   : > { %1883 = vst.msk [vmem:[%s170_s28 + $0x18] sm:$0x3f] %vm1882_vm1, %v1878_v49 }
 0x1df PF: > { %s13_s12 = sadd.s32 1, %s2465_s12  }
 0x1e0   : > { %p10_p4 = scmp.ge.s32.totalorder %s13_s12, 4  }
 0x1e2   :  { %12 = sbr.rel (!%p10_p4) target bundleno = 1 (0x1), region = 72 }

// kernel: cnn_forward.3
= control target key start
LH: loop header
LB: loop body
LE: loop exit
PB: predicated region body
PF: predicated region fallthrough
CT: control target
= control target key end

     0   :  { %10 = vsyncpa [#allocation3], 0  ;;  %s7359_s0 = inlined_call_operand.vmem [shape: f32[2,2,7,224], index: 0, kind: input, shape index: {}]   ;;  %s7360_s1 = inlined_call_operand.vmem [shape: bf16[5,2,224,160], index: 1, kind: input, shape index: {}]   ;;  %s7361_s2 = inlined_call_operand.vmem [shape: f32[1,160], index: 2, kind: input, shape index: {}]   ;;  %s7362_s3 = inlined_call_operand.vmem [shape: bf16[5,160,10], index: 3, kind: input, shape index: {}]   ;;  %s7363_s4 = inlined_call_operand.vmem [shape: f32[1,10], index: 4, kind: input, shape index: {}]   ;;  %s7364_s5 = inlined_call_operand.hbm [shape: f32[2,1,10], index: 5, kind: output, shape index: {}]  }
   0x1   :  { %12 = vsyncpa [#allocation3 + $0x1], 0  ;;  %s5046_s18 = smov 0   ;;  %s5048_s19 = smov 0  }
   0x2   :  { %s5050_s20 = smov 0   ;;  %s5052_s21 = smov 0  }
   0x3 LB: > { %s5067_s22 = sadd.s32 4294967295, %s5012_s21   ;;  %s3577_s23 = sadd.s32 4294967294, %s5012_s21   ;;  %s5012_s21 = sphi %s5052_s21, %s7536_s21   ;;  %s5008_s20 = sphi %s5050_s20, %s7535_s20   ;;  %s5004_s19 = sphi %s5048_s19, %s7534_s19   ;;  %s5000_s18 = sphi %s5046_s18, %s7533_s18  }
   0x4   : > { %s5071_s24 = sadd.s32 1, %s5012_s21   ;;  %s135_s25 = sadd.s32 1, %s5008_s20 }
   0x5   : > { %s132_s26 = ssub.s32 %s5012_s21, %s5071_s24  ;;  %p145_p0 = scmp.ne.s32.totalorder %s5008_s20, %s5004_s19 }
   0x6   : > { %p133_p1 = scmp.eq.s32.totalorder %s132_s26, 0  ;;  %p146_p2 = scmp.eq.s32.totalorder %s5067_s22, 1 }
   0x7   : > { %p151_p3 = scmp.ne.s32.totalorder %s5004_s19, %s5000_s18  ;;  %p152_p4 = scmp.eq.s32.totalorder %s3577_s23, 1 }
   0x8   : > { %s5082_s27 = scalar_select %p133_p1, %s5008_s20, %s135_s25  }
   0x9   : > { %p5084_p5 = por %p146_p2, %p145_p0  ;;  %p5088_p6 = por %p152_p4, %p151_p3 }
   0xa   : > { %p3580_p7 = scmp.ge.s32.totalorder %s5012_s21, 1  ;;  %p190_p8 = scmp.lt.s32.totalorder %s5012_s21, 3 }
   0xc   : > { %p191_p9 = pnand %p3580_p7, %p190_p8 }
   0xe   : > { %194 = sbr.rel (%p191_p9) target bundleno = 1212 (0x4bc), region = 40 }
  0x15   : > { %v5097_v0 = vld [vmem:[%s7360_s1 + $0x1c4] ss:$8 sps:$4 sm:$0xff]   ;;  %v5106_v2 = vld [vmem:[%s7360_s1 + $0x1c0] ss:$8 sps:$4 sm:$0xff]   ;;  %v5114_v4 = vld [vmem:[%s7360_s1 + $0x1d4] ss:$8 sps:$4 sm:$0xff]  }
  0x16   : > { %v4398_v1 = vld [vmem:[%s7360_s1 + $0x4] ss:$8 sps:$4 sm:$0xff]   ;;  %462 = vmatprep.subr.bf16.mxu1 %v5097_v0  ;;  %v4401_v3 = vld [vmem:[%s7360_s1] ss:$8 sps:$4 sm:$0xff]   ;;  %v4404_v5 = vld [vmem:[%s7360_s1 + $0x14] ss:$8 sps:$4 sm:$0xff]  }
  0x17   : > { %646 = vmatprep.subr.bf16.mxu0 %v4398_v1  ;;  %463 = vmatpush1.bf16.msra.mxu1 %v5106_v2  ;;  %v5123_v6 = vld [vmem:[%s7360_s1 + $0x1d0] ss:$8 sps:$4 sm:$0xff]   ;;  %v5132_v8 = vld [vmem:[%s7360_s1 + $0x1e4] ss:$8 sps:$4 sm:$0xff]   ;;  %v5140_v10 = vld [vmem:[%s7360_s1 + $0x1e0] ss:$8 sps:$4 sm:$0xff]  }
  0x18   : > { %647 = vmatpush1.bf16.msra.mxu0 %v4401_v3  ;;  %464 = vmatprep.subr.bf16.mxu1 %v5114_v4  ;;  %v4407_v7 = vld [vmem:[%s7360_s1 + $0x10] ss:$8 sps:$4 sm:$0xff]   ;;  %v4410_v9 = vld [vmem:[%s7360_s1 + $0x24] ss:$8 sps:$4 sm:$0xff]   ;;  %v4413_v11 = vld [vmem:[%s7360_s1 + $0x20] ss:$8 sps:$4 sm:$0xff]  }
  0x19   : > { %648 = vmatprep.subr.bf16.mxu0 %v4404_v5  ;;  %v5149_v12 = vld [vmem:[%s7360_s1 + $0x1f4] ss:$8 sps:$4 sm:$0xff]   ;;  %v5158_v14 = vld [vmem:[%s7360_s1 + $0x1f0] ss:$8 sps:$4 sm:$0xff]   ;;  %v5167_v16 = vld [vmem:[%s7360_s1 + $0x204] ss:$8 sps:$4 sm:$0xff]  }
  0x1a   : > { %v4416_v13 = vld [vmem:[%s7360_s1 + $0x34] ss:$8 sps:$4 sm:$0xff]   ;;  %v4419_v15 = vld [vmem:[%s7360_s1 + $0x30] ss:$8 sps:$4 sm:$0xff]   ;;  %v4422_v17 = vld [vmem:[%s7360_s1 + $0x44] ss:$8 sps:$4 sm:$0xff]  }
  0x1b   : > { %465 = vmatpush1.bf16.msra.mxu1 %v5123_v6  ;;  %v5176_v18 = vld [vmem:[%s7360_s1 + $0x200] ss:$8 sps:$4 sm:$0xff]   ;;  %v5185_v20 = vld [vmem:[%s7360_s1 + $0x214] ss:$8 sps:$4 sm:$0xff]   ;;  %v5194_v22 = vld [vmem:[%s7360_s1 + $0x210] ss:$8 sps:$4 sm:$0xff]  }
  0x1c   : > { %649 = vmatpush1.bf16.msra.mxu0 %v4407_v7  ;;  %466 = vmatprep.subr.bf16.mxu1 %v5132_v8  ;;  %v4425_v19 = vld [vmem:[%s7360_s1 + $0x40] ss:$8 sps:$4 sm:$0xff]   ;;  %v4428_v21 = vld [vmem:[%s7360_s1 + $0x54] ss:$8 sps:$4 sm:$0xff]   ;;  %v4431_v23 = vld [vmem:[%s7360_s1 + $0x50] ss:$8 sps:$4 sm:$0xff]  }
  0x1d   : > { %650 = vmatprep.subr.bf16.mxu0 %v4410_v9  ;;  %v5203_v24 = vld [vmem:[%s7360_s1 + $0x224] ss:$8 sps:$4 sm:$0xff]   ;;  %v5212_v26 = vld [vmem:[%s7360_s1 + $0x220] ss:$8 sps:$4 sm:$0xff]   ;;  %p217_p10 = scmp.lt.s32.totalorder %s5067_s22, 1  ;;  %vm458_vm0 = vcmask 785408  }
  0x1e   : > { %v4434_v25 = vld [vmem:[%s7360_s1 + $0x64] ss:$8 sps:$4 sm:$0xff]   ;;  %v4437_v27 = vld [vmem:[%s7360_s1 + $0x60] ss:$8 sps:$4 sm:$0xff]   ;;  %v5222_v28 = vld [vmem:[%s7360_s1 + $0x234] ss:$8 sps:$4 sm:$0xff]  }
  0x1f   : > { %467 = vmatpush1.bf16.msra.mxu1 %v5140_v10  ;;  %v4440_v29 = vld [vmem:[%s7360_s1 + $0x74] ss:$8 sps:$4 sm:$0xff]   ;;  %v5231_v30 = vld [vmem:[%s7360_s1 + $0x230] ss:$8 sps:$4 sm:$0xff]   ;;  %s218_s25 = scalar_select %p217_p10, %s5067_s22, 1  ;;  %vm2945_vm1 = vcmask 261120  }
  0x20   : > { %651 = vmatpush1.bf16.msra.mxu0 %v4413_v11  ;;  %468 = vmatprep.subr.bf16.mxu1 %v5149_v12  ;;  %v4443_v31 = vld [vmem:[%s7360_s1 + $0x70] ss:$8 sps:$4 sm:$0xff]   ;;  %v5241_v32 = vld [vmem:[%s7360_s1 + $0x244] ss:$8 sps:$4 sm:$0xff]   ;;  %v5250_v34 = vld [vmem:[%s7360_s1 + $0x240] ss:$8 sps:$4 sm:$0xff]  }
  0x21   : > { %652 = vmatprep.subr.bf16.mxu0 %v4416_v13  ;;  %v4446_v33 = vld [vmem:[%s7360_s1 + $0x84] ss:$8 sps:$4 sm:$0xff]   ;;  %v4449_v35 = vld [vmem:[%s7360_s1 + $0x80] ss:$8 sps:$4 sm:$0xff]   ;;  %s4279_s14 = sshll.u32 %s218_s25, 5  ;;  %s215_s23 = sand.u32 1, %s5004_s19  }
  0x22   : > { %v5259_v36 = vld [vmem:[%s7360_s1 + $0x254] ss:$8 sps:$4 sm:$0xff]   ;;  %s5268_s6 = scalar_lea.vmem %s7359_s0, %s4279_s14  ;;  %v5274_v38 = vld [vmem:[%s7360_s1 + $0x250] ss:$8 sps:$4 sm:$0xff]   ;;  %v5283_v40 = vld [vmem:[%s7360_s1 + $0x264] ss:$8 sps:$4 sm:$0xff]  }
  0x23   : > { %469 = vmatpush1.bf16.msra.mxu1 %v5158_v14  ;;  %v4452_v37 = vld [vmem:[%s7360_s1 + $0x94] ss:$8 sps:$4 sm:$0xff]   ;;  %v4455_v39 = vld [vmem:[%s7360_s1 + $0x90] ss:$8 sps:$4 sm:$0xff]   ;;  %v4458_v41 = vld [vmem:[%s7360_s1 + $0xa4] ss:$8 sps:$4 sm:$0xff]  }
  0x24   : > { %653 = vmatpush1.bf16.msra.mxu0 %v4419_v15  ;;  %470 = vmatprep.subr.bf16.mxu1 %v5167_v16  ;;  %v3612_v42 = vld [vmem:[%s5268_s6 + $0x18] sm:$0x1f]  ;;  %v224_v44 = vld [vmem:[%s5268_s6 + $0x8] sm:$0x1f]  ;;  %v3611_v60 = vld [vmem:[%s5268_s6 + $0x10] sm:$0x1f] }
  0x25   : > { %654 = vmatprep.subr.bf16.mxu0 %v4422_v17  ;;  %v5289_v43 = vpack.c.bf16 %v3612_v42, %v3612_v42  ;;  %v5295_v45 = vld [vmem:[%s7360_s1 + $0x260] ss:$8 sps:$4 sm:$0xff]   ;;  %v5297_v46 = vpack.c.bf16 %v224_v44, %v224_v44  ;;  %v5306_v48 = vld [vmem:[%s7360_s1 + $0x274] ss:$8 sps:$4 sm:$0xff]   ;;  %v5319_v50 = vld [vmem:[%s7360_s1 + $0x270] ss:$8 sps:$4 sm:$0xff]   ;;  %v5370_v1 = vpack.c.bf16 %v3611_v60, %v3611_v60 }
  0x26   : > { %v4461_v47 = vld [vmem:[%s7360_s1 + $0xa0] ss:$8 sps:$4 sm:$0xff]   ;;  %v4464_v49 = vld [vmem:[%s7360_s1 + $0xb4] ss:$8 sps:$4 sm:$0xff]   ;;  %v4467_v51 = vld [vmem:[%s7360_s1 + $0xb0] ss:$8 sps:$4 sm:$0xff]  }
  0x27   : > { %471 = vmatpush1.bf16.msra.mxu1 %v5176_v18  ;;  %3669 = vmatprep.mubr.msk.bf16.mxu1 %vm458_vm0, %v5289_v43  ;;  %v5328_v52 = vld [vmem:[%s7360_s1 + $0x284] ss:$8 sps:$4 sm:$0xff]   ;;  %v5337_v54 = vld [vmem:[%s7360_s1 + $0x280] ss:$8 sps:$4 sm:$0xff]   ;;  %v5346_v56 = vld [vmem:[%s7360_s1 + $0x294] ss:$8 sps:$4 sm:$0xff]  }
  0x28   : > { %655 = vmatpush1.bf16.msra.mxu0 %v4425_v19  ;;  %472 = vmatprep.subr.bf16.mxu1 %v5185_v20  ;;  %v4470_v53 = vld [vmem:[%s7360_s1 + $0xc4] ss:$8 sps:$4 sm:$0xff]   ;;  %v4473_v55 = vld [vmem:[%s7360_s1 + $0xc0] ss:$8 sps:$4 sm:$0xff]   ;;  %v4476_v57 = vld [vmem:[%s7360_s1 + $0xd4] ss:$8 sps:$4 sm:$0xff]  }
  0x29   : > { %656 = vmatprep.subr.bf16.mxu0 %v4428_v21  ;;  %3698 = vmatprep.mubr.msk.bf16.mxu0 %vm458_vm0, %v5297_v46  ;;  %v5355_v58 = vld [vmem:[%s7360_s1 + $0x290] ss:$8 sps:$4 sm:$0xff]   ;;  %v4482_v61 = vld [vmem:[%s7360_s1 + $0x2a4] ss:$8 sps:$4 sm:$0xff]   ;;  %v4480_v3 = vld [vmem:[%s7360_s1 + $0x2a0] ss:$8 sps:$4 sm:$0xff]  }
  0x2a   : > { %v4479_v59 = vld [vmem:[%s7360_s1 + $0xd0] ss:$8 sps:$4 sm:$0xff]   ;;  %v223_v62 = vld [vmem:[%s5268_s6] sm:$0x1f]  ;;  %v4488_v9 = vld [vmem:[%s7360_s1 + $0x2b4] ss:$8 sps:$4 sm:$0xff]  }
  0x2b   : > { %473 = vmatpush1.bf16.msra.mxu1 %v5194_v22  ;;  %v4485_v63 = vld [vmem:[%s7360_s1 + $0x384] ss:$8 sps:$4 sm:$0xff]   ;;  %v4483_v5 = vld [vmem:[%s7360_s1 + $0x380] ss:$8 sps:$4 sm:$0xff]   ;;  %v5378_v7 = vpack.c.bf16 %v223_v62, %v223_v62  ;;  %v4491_v11 = vld [vmem:[%s7360_s1 + $0x394] ss:$8 sps:$4 sm:$0xff]  }
  0x2c   : > { %657 = vmatpush1.bf16.msra.mxu0 %v4431_v23  ;;  %474 = vmatprep.subr.bf16.mxu1 %v5203_v24  ;;  %v4486_v13 = vld [vmem:[%s7360_s1 + $0x2b0] ss:$8 sps:$4 sm:$0xff]   ;;  %v4494_v17 = vld [vmem:[%s7360_s1 + $0x2c4] ss:$8 sps:$4 sm:$0xff]   ;;  %v4492_v21 = vld [vmem:[%s7360_s1 + $0x2c0] ss:$8 sps:$4 sm:$0xff]  }
  0x2d   : > { %658 = vmatprep.subr.bf16.mxu0 %v4434_v25  ;;  %v4489_v15 = vld [vmem:[%s7360_s1 + $0x390] ss:$8 sps:$4 sm:$0xff]   ;;  %v4497_v19 = vld [vmem:[%s7360_s1 + $0x3a4] ss:$8 sps:$4 sm:$0xff]   ;;  %v4495_v23 = vld [vmem:[%s7360_s1 + $0x3a0] ss:$8 sps:$4 sm:$0xff]  }
  0x2e   : > { %v4500_v25 = vld [vmem:[%s7360_s1 + $0x2d4] ss:$8 sps:$4 sm:$0xff]   ;;  %v4510_v44 = vld [vmem:[%s7360_s1 + $0x2f0] ss:$8 sps:$4 sm:$0xff]   ;;  %s4276_s25 = sshll.u32 %s5067_s22, 4  ;;  %s216_s7 = scalar_lea.vmem [#allocation2], %s215_s23 }
  0x2f   : > { %475 = vmatpush1.bf16.msra.mxu1 %v5212_v26  ;;  %v4515_v42 = vld [vmem:[%s7360_s1 + $0x3d4] ss:$8 sps:$4 sm:$0xff]   ;;  %s3522_s8 = sshll.u32 %s216_s7, 4  ;;  %vm3507_vm2 = vcmask 73728   ;;  %s7317_s11 = scalar_lea.hbm %s7364_s5, %s4276_s25  ;;  %s7319_s8 = int_to_ptr.vmem [resolvable:$true] %s3522_s8 }
  0x30   : > { %659 = vmatpush1.bf16.msra.mxu0 %v4437_v27  ;;  %476 = vmatprep.subr.bf16.mxu1 %v5222_v28  ;;  %v4503_v27 = vld [vmem:[%s7360_s1 + $0x3b4] ss:$8 sps:$4 sm:$0xff]   ;;  %s3510_s22 = scalar_lea.sflag [#allocation3], %s215_s23  ;;  %s4950_s12 = scalar_lea.vmem %s7319_s8, 16 }
  0x31   : > { %660 = vmatprep.subr.bf16.mxu0 %v4440_v29  ;;  %v4498_v29 = vld [vmem:[%s7360_s1 + $0x2d0] ss:$8 sps:$4 sm:$0xff]   ;;  %v4524_v60 = vld [vmem:[%s7360_s1 + $0x314] ss:$8 sps:$4 sm:$0xff]   ;;  %p4951_p11 = scmp.ne.s32.totalorder %s7319_s8, %s4950_s12 }
  0x33   : > { %477 = vmatpush1.bf16.msra.mxu1 %v5231_v30  ;;  %p4952_p12 = pnand %p4951_p11, %p5084_p5 }
  0x34   : > { %661 = vmatpush1.bf16.msra.mxu0 %v4443_v31  ;;  %478 = vmatprep.subr.bf16.mxu1 %v5241_v32  ;;  %v4501_v31 = vld [vmem:[%s7360_s1 + $0x3b0] ss:$8 sps:$4 sm:$0xff]  }
  0x35   : > { %662 = vmatprep.subr.bf16.mxu0 %v4446_v33  ;;  %v4506_v33 = vld [vmem:[%s7360_s1 + $0x2e4] ss:$8 sps:$4 sm:$0xff]   ;;  %p4953_p13 = pneg %p4952_p12 }
  0x37   : > { %479 = vmatpush1.bf16.msra.mxu1 %v5250_v34 }
  0x38   : > { %663 = vmatpush1.bf16.msra.mxu0 %v4449_v35  ;;  %480 = vmatprep.subr.bf16.mxu1 %v5259_v36  ;;  %v4509_v35 = vld [vmem:[%s7360_s1 + $0x3c4] ss:$8 sps:$4 sm:$0xff]  }
  0x39   : > { %664 = vmatprep.subr.bf16.mxu0 %v4452_v37  ;;  %v4504_v37 = vld [vmem:[%s7360_s1 + $0x2e0] ss:$8 sps:$4 sm:$0xff]  }
  0x3b   : > { %481 = vmatpush1.bf16.msra.mxu1 %v5274_v38 }
  0x3c   : > { %665 = vmatpush1.bf16.msra.mxu0 %v4455_v39  ;;  %482 = vmatprep.subr.bf16.mxu1 %v5283_v40  ;;  %v4507_v39 = vld [vmem:[%s7360_s1 + $0x3c0] ss:$8 sps:$4 sm:$0xff]  }
  0x3d   : > { %666 = vmatprep.subr.bf16.mxu0 %v4458_v41  ;;  %v4512_v41 = vld [vmem:[%s7360_s1 + $0x2f4] ss:$8 sps:$4 sm:$0xff]  }
  0x3f   : > { %483 = vmatpush1.bf16.msra.mxu1 %v5295_v45 }
  0x40   : > { %667 = vmatpush1.bf16.msra.mxu0 %v4461_v47  ;;  %484 = vmatprep.subr.bf16.mxu1 %v5306_v48  ;;  %v4513_v47 = vld [vmem:[%s7360_s1 + $0x3d0] ss:$8 sps:$4 sm:$0xff]  }
  0x41   : > { %668 = vmatprep.subr.bf16.mxu0 %v4464_v49  ;;  %v4518_v49 = vld [vmem:[%s7360_s1 + $0x304] ss:$8 sps:$4 sm:$0xff]  }
  0x43   : > { %485 = vmatpush1.bf16.msra.mxu1 %v5319_v50 }
  0x44   : > { %669 = vmatpush1.bf16.msra.mxu0 %v4467_v51  ;;  %486 = vmatprep.subr.bf16.mxu1 %v5328_v52  ;;  %v4521_v51 = vld [vmem:[%s7360_s1 + $0x3e4] ss:$8 sps:$4 sm:$0xff]  }
  0x45   : > { %670 = vmatprep.subr.bf16.mxu0 %v4470_v53  ;;  %v1079_v53 = vld [vmem:[%s5268_s6 + $0x8] sm:$0x3e] }
  0x47   : > { %487 = vmatpush1.bf16.msra.mxu1 %v5337_v54 }
  0x48   : > { %671 = vmatpush1.bf16.msra.mxu0 %v4473_v55  ;;  %488 = vmatprep.subr.bf16.mxu1 %v5346_v56  ;;  %v1081_v55 = vpack.c.bf16 %v1079_v53, %v1079_v53  ;;  %v4552_v53 = vld [vmem:[%s7360_s1 + $0x360] ss:$8 sps:$4 sm:$0xff]  }
  0x49   : > { %672 = vmatprep.subr.bf16.mxu0 %v4476_v57  ;;  %v4516_v57 = vld [vmem:[%s7360_s1 + $0x300] ss:$8 sps:$4 sm:$0xff]  }
  0x4a   : > { %v1121_v62 = vshll.u32 %v1081_v55, 16 }
  0x4b   : > { %489 = vmatpush1.bf16.msra.mxu1 %v5355_v58 }
  0x4c   : > { %673 = vmatpush1.bf16.msra.mxu0 %v4479_v59  ;;  %856 = vmatprep.subr.bf16.mxu1 %v4482_v61  ;;  %v4519_v59 = vld [vmem:[%s7360_s1 + $0x3e0] ss:$8 sps:$4 sm:$0xff]   ;;  %v1119_v61 = vshrl.u32 %v1081_v55, 16 }
  0x4d   : > { %1269 = vmatprep.subr.bf16.mxu0 %v4485_v63  ;;  %v4527_v63 = vld [vmem:[%s7360_s1 + $0x3f4] ss:$8 sps:$4 sm:$0xff]  }
  0x4e   : > { %495 = vmatmul.mubr.bf16.vlgmr.msra.gmra.mrb[0].mxu1 %v5370_v1 }
  0x4f   : > { %679 = vmatmul.mubr.bf16.vlgmr.msra.gmra.mrb[0].mxu0 %v5378_v7  ;;  %857 = vmatpush1.bf16.msra.mxu1 %v4480_v3  ;;  %v1123_v3 = vrot.slane %v1121_v62, 1 }
  0x50   : > { %1270 = vmatpush1.bf16.msra.mxu0 %v4483_v5  ;;  %858 = vmatprep.subr.bf16.mxu1 %v4488_v9  ;;  %v4522_v5 = vld [vmem:[%s7360_s1 + $0x310] ss:$8 sps:$4 sm:$0xff]  }
  0x51   : > { %1271 = vmatprep.subr.bf16.mxu0 %v4491_v11  ;;  %3755 = vmatprep.mubr.msk.bf16.mxu1 %vm458_vm0, %v5289_v43  ;;  %v4525_v9 = vld [vmem:[%s7360_s1 + $0x3f0] ss:$8 sps:$4 sm:$0xff]   ;;  %v5470_v11 = vor.u32 %v1123_v3, %v1119_v61 }
  0x52   : > { %v4558_v61 = vld [vmem:[%s7360_s1 + $0x370] ss:$8 sps:$4 sm:$0xff]  }
  0x53   : > { %859 = vmatpush1.bf16.msra.mxu1 %v4486_v13  ;;  %v4530_v13 = vld [vmem:[%s7360_s1 + $0x324] ss:$8 sps:$4 sm:$0xff]   ;;  %3841 = vmatprep.mubr.msk.bf16.mxu0 %vm458_vm0, %v5470_v11  ;;  %v4561_v3 = vld [vmem:[%s7360_s1 + $0x450] ss:$8 sps:$4 sm:$0xff]  }
  0x54   : > { %1272 = vmatpush1.bf16.msra.mxu0 %v4489_v15  ;;  %860 = vmatprep.subr.bf16.mxu1 %v4494_v17  ;;  %v4533_v15 = vld [vmem:[%s7360_s1 + $0x404] ss:$8 sps:$4 sm:$0xff]   ;;  %v4528_v17 = vld [vmem:[%s7360_s1 + $0x320] ss:$8 sps:$4 sm:$0xff]  }
  0x55   : > { %1273 = vmatprep.subr.bf16.mxu0 %v4497_v19  ;;  %v4531_v19 = vld [vmem:[%s7360_s1 + $0x400] ss:$8 sps:$4 sm:$0xff]  }
  0x57   : > { %861 = vmatpush1.bf16.msra.mxu1 %v4492_v21  ;;  %v4536_v21 = vld [vmem:[%s7360_s1 + $0x334] ss:$8 sps:$4 sm:$0xff]  }
  0x58   : > { %1274 = vmatpush1.bf16.msra.mxu0 %v4495_v23  ;;  %862 = vmatprep.subr.bf16.mxu1 %v4500_v25  ;;  %v4539_v23 = vld [vmem:[%s7360_s1 + $0x414] ss:$8 sps:$4 sm:$0xff]   ;;  %v4534_v25 = vld [vmem:[%s7360_s1 + $0x330] ss:$8 sps:$4 sm:$0xff]  }
  0x59   : > { %1275 = vmatprep.subr.bf16.mxu0 %v4503_v27  ;;  %v4537_v27 = vld [vmem:[%s7360_s1 + $0x410] ss:$8 sps:$4 sm:$0xff]  }
  0x5b   : > { %863 = vmatpush1.bf16.msra.mxu1 %v4498_v29  ;;  %v4542_v29 = vld [vmem:[%s7360_s1 + $0x344] ss:$8 sps:$4 sm:$0xff]  }
  0x5c   : > { %1276 = vmatpush1.bf16.msra.mxu0 %v4501_v31  ;;  %864 = vmatprep.subr.bf16.mxu1 %v4506_v33  ;;  %v4545_v31 = vld [vmem:[%s7360_s1 + $0x424] ss:$8 sps:$4 sm:$0xff]   ;;  %v4540_v33 = vld [vmem:[%s7360_s1 + $0x340] ss:$8 sps:$4 sm:$0xff]  }
  0x5d   : > { %1277 = vmatprep.subr.bf16.mxu0 %v4509_v35  ;;  %v4543_v35 = vld [vmem:[%s7360_s1 + $0x420] ss:$8 sps:$4 sm:$0xff]  }
  0x5f   : > { %865 = vmatpush1.bf16.msra.mxu1 %v4504_v37  ;;  %v1078_v37 = vld [vmem:[%s5268_s6] sm:$0x3e] }
  0x60   : > { %1278 = vmatpush1.bf16.msra.mxu0 %v4507_v39  ;;  %866 = vmatprep.subr.bf16.mxu1 %v4512_v41  ;;  %v4548_v39 = vld [vmem:[%s7360_s1 + $0x354] ss:$8 sps:$4 sm:$0xff]  }
  0x61   : > { %1279 = vmatprep.subr.bf16.mxu0 %v4515_v42  ;;  %v4551_v41 = vld [vmem:[%s7360_s1 + $0x434] ss:$8 sps:$4 sm:$0xff]   ;;  %v4546_v42 = vld [vmem:[%s7360_s1 + $0x350] ss:$8 sps:$4 sm:$0xff]  }
  0x63   : > { %867 = vmatpush1.bf16.msra.mxu1 %v4510_v44  ;;  %v1080_v44 = vpack.c.bf16 %v1078_v37, %v1078_v37  ;;  %v4872_v37 = vld [vmem:[%s7360_s1 + $0x34] ss:$8 sps:$4 sm:$0xff]  }
  0x64   : > { %1280 = vmatpush1.bf16.msra.mxu0 %v4513_v47  ;;  %868 = vmatprep.subr.bf16.mxu1 %v4518_v49  ;;  %v4549_v47 = vld [vmem:[%s7360_s1 + $0x430] ss:$8 sps:$4 sm:$0xff]   ;;  %v4554_v49 = vld [vmem:[%s7360_s1 + $0x364] ss:$8 sps:$4 sm:$0xff]  }
  0x65   : > { %1281 = vmatprep.subr.bf16.mxu0 %v4521_v51  ;;  %v4557_v51 = vld [vmem:[%s7360_s1 + $0x444] ss:$8 sps:$4 sm:$0xff]   ;;  %v1114_v55 = vshll.u32 %v1080_v44, 16  ;;  %v1112_v62 = vshrl.u32 %v1080_v44, 16 }
  0x66   : > { %v4874_v44 = vld [vmem:[%s7360_s1 + $0x44] ss:$8 sps:$4 sm:$0xff]  }
  0x67   : > { %869 = vmatpush1.bf16.msra.mxu1 %v4516_v57  ;;  %v4555_v57 = vld [vmem:[%s7360_s1 + $0x440] ss:$8 sps:$4 sm:$0xff]  }
  0x68   : > { %1282 = vmatpush1.bf16.msra.mxu0 %v4519_v59  ;;  %870 = vmatprep.subr.bf16.mxu1 %v4524_v60  ;;  %v4560_v59 = vld [vmem:[%s7360_s1 + $0x374] ss:$8 sps:$4 sm:$0xff]  }
  0x69   : > { %1283 = vmatprep.subr.bf16.mxu0 %v4527_v63  ;;  %v4563_v60 = vld [vmem:[%s7360_s1 + $0x454] ss:$8 sps:$4 sm:$0xff]   ;;  %v1116_v63 = vrot.slane %v1114_v55, 1  ;;  %v5869_v55 = vld [vmem:[%s7360_s1 + $0x4c0] ss:$8 sps:$4 sm:$0xff]  }
  0x6a   : > { %7423 = vst [vmem:[#allocation7_spill] sm:$0xff] %v5869_v55 }
  0x6b   : > { %871 = vmatpush1.bf16.msra.mxu1 %v4522_v5  ;;  %v5550_v5 = vld [vmem:[%s7360_s1 + $0xe4] ss:$8 sps:$4 sm:$0xff]  }
  0x6c   : > { %1284 = vmatpush1.bf16.msra.mxu0 %v4525_v9  ;;  %872 = vmatprep.subr.bf16.mxu1 %v4530_v13  ;;  %v5552_v9 = vor.u32 %v1116_v63, %v1112_v62  ;;  %v5557_v13 = vld [vmem:[%s7360_s1 + $0xe0] ss:$8 sps:$4 sm:$0xff]   ;;  %v5891_v62 = vld [vmem:[%s7360_s1 + $0x4d0] ss:$8 sps:$4 sm:$0xff]   ;;  %v4880_v63 = vld [vmem:[%s7360_s1 + $0x74] ss:$8 sps:$4 sm:$0xff]  }
  0x6d   : > { %1285 = vmatprep.subr.bf16.mxu0 %v4533_v15  ;;  %v5564_v15 = vld [vmem:[%s7360_s1 + $0xf4] ss:$8 sps:$4 sm:$0xff]   ;;  %7425 = vst [vmem:[#allocation9_spill] sm:$0xff] %v5891_v62 }
  0x6f   : > { %873 = vmatpush1.bf16.msra.mxu1 %v4528_v17  ;;  %v5573_v17 = vld [vmem:[%s7360_s1 + $0xf0] ss:$8 sps:$4 sm:$0xff]  }
  0x70   : > { %1286 = vmatpush1.bf16.msra.mxu0 %v4531_v19  ;;  %874 = vmatprep.subr.bf16.mxu1 %v4536_v21  ;;  %v5706_v19 = vld [vmem:[%s7360_s1 + $0x194] ss:$8 sps:$4 sm:$0xff]   ;;  %v4867_v21 = vld [vmem:[%s7360_s1] ss:$8 sps:$4 sm:$0xff]  }
  0x71   : > { %1287 = vmatprep.subr.bf16.mxu0 %v4539_v23  ;;  %v5793_v23 = vld [vmem:[%s7360_s1 + $0x480] ss:$8 sps:$4 sm:$0xff]  }
  0x73   : > { %875 = vmatpush1.bf16.msra.mxu1 %v4534_v25  ;;  %v5802_v25 = vld [vmem:[%s7360_s1 + $0x494] ss:$8 sps:$4 sm:$0xff]  }
  0x74   : > { %1288 = vmatpush1.bf16.msra.mxu0 %v4537_v27  ;;  %876 = vmatprep.subr.bf16.mxu1 %v4542_v29  ;;  %v4869_v27 = vld [vmem:[%s7360_s1 + $0x10] ss:$8 sps:$4 sm:$0xff]   ;;  %v4870_v29 = vld [vmem:[%s7360_s1 + $0x24] ss:$8 sps:$4 sm:$0xff]  }
  0x75   : > { %1289 = vmatprep.subr.bf16.mxu0 %v4545_v31  ;;  %v5815_v31 = vld [vmem:[%s7360_s1 + $0x490] ss:$8 sps:$4 sm:$0xff]  }
  0x77   : > { %877 = vmatpush1.bf16.msra.mxu1 %v4540_v33  ;;  %v5820_v33 = vld [vmem:[%s7360_s1 + $0x4a4] ss:$8 sps:$4 sm:$0xff]  }
  0x78   : > { %1290 = vmatpush1.bf16.msra.mxu0 %v4543_v35  ;;  %878 = vmatprep.subr.bf16.mxu1 %v4548_v39  ;;  %v4871_v35 = vld [vmem:[%s7360_s1 + $0x20] ss:$8 sps:$4 sm:$0xff]  }
  0x79   : > { %1291 = vmatprep.subr.bf16.mxu0 %v4551_v41  ;;  %v5833_v39 = vld [vmem:[%s7360_s1 + $0x4a0] ss:$8 sps:$4 sm:$0xff]   ;;  %v5838_v41 = vld [vmem:[%s7360_s1 + $0x4b4] ss:$8 sps:$4 sm:$0xff]  }
  0x7b   : > { %879 = vmatpush1.bf16.msra.mxu1 %v4546_v42  ;;  %v4873_v42 = vld [vmem:[%s7360_s1 + $0x30] ss:$8 sps:$4 sm:$0xff]  }
  0x7c   : > { %1292 = vmatpush1.bf16.msra.mxu0 %v4549_v47  ;;  %880 = vmatprep.subr.bf16.mxu1 %v4554_v49  ;;  %v5851_v47 = vld [vmem:[%s7360_s1 + $0x4b0] ss:$8 sps:$4 sm:$0xff]   ;;  %v5856_v49 = vld [vmem:[%s7360_s1 + $0x4c4] ss:$8 sps:$4 sm:$0xff]  }
  0x7d   : > { %1293 = vmatprep.subr.bf16.mxu0 %v4557_v51  ;;  %7421 = vst [vmem:[#allocation5_spill] sm:$0xff] %v5851_v47  ;;  %7422 = vst [vmem:[#allocation6_spill] sm:$0xff] %v5856_v49  ;;  %v4875_v51 = vld [vmem:[%s7360_s1 + $0x40] ss:$8 sps:$4 sm:$0xff]  }
  0x7f   : > { %881 = vmatpush1.bf16.msra.mxu1 %v4552_v53  ;;  %v4876_v53 = vld [vmem:[%s7360_s1 + $0x54] ss:$8 sps:$4 sm:$0xff]  }
  0x80   : > { %1294 = vmatpush1.bf16.msra.mxu0 %v4555_v57  ;;  %882 = vmatprep.subr.bf16.mxu1 %v4560_v59  ;;  %v5874_v57 = vld [vmem:[%s7360_s1 + $0x4d4] ss:$8 sps:$4 sm:$0xff]   ;;  %v4877_v59 = vld [vmem:[%s7360_s1 + $0x50] ss:$8 sps:$4 sm:$0xff]  }
  0x81   : > { %1295 = vmatprep.subr.bf16.mxu0 %v4563_v60  ;;  %7424 = vst [vmem:[#allocation8_spill] sm:$0xff] %v5874_v57  ;;  %v4878_v60 = vld [vmem:[%s7360_s1 + $0x64] ss:$8 sps:$4 sm:$0xff]  }
  0x83   : > { %883 = vmatpush1.bf16.msra.mxu1 %v4558_v61  ;;  %v4879_v61 = vld [vmem:[%s7360_s1 + $0x60] ss:$8 sps:$4 sm:$0xff]  }
  0x84   : > { %1296 = vmatpush1.bf16.msra.mxu0 %v4561_v3  ;;  %1037 = vmatprep.subr.bf16.mxu1 %v5550_v5  ;;  %v5900_v3 = vld [vmem:[%s7360_s1 + $0x4e4] ss:$8 sps:$4 sm:$0xff]  }
  0x85   : > { %1524 = vmatprep.subr.bf16.mxu0 %v5097_v0  ;;  %v5580_v0 = vld [vmem:[%s7360_s1 + $0x104] ss:$8 sps:$4 sm:$0xff]   ;;  %7426 = vst [vmem:[#allocation10_spill] sm:$0xff] %v5900_v3 }
  0x86   : > { %889 = vmatmul.mubr.bf16.vlgmr.msra.gmra.mrb[4].mxu1 %v5370_v1 }
  0x87   : > { %1302 = vmatmul.mubr.bf16.vlgmr.msra.gmra.mrb[0].mxu0 %v5552_v9  ;;  %1038 = vmatpush1.bf16.msra.mxu1 %v5557_v13 }
  0x88   : > { %1525 = vmatpush1.bf16.msra.mxu0 %v5106_v2  ;;  %1039 = vmatprep.subr.bf16.mxu1 %v5564_v15  ;;  %v5591_v2 = vld [vmem:[%s7360_s1 + $0x100] ss:$8 sps:$4 sm:$0xff]  }
  0x89   : > { %1526 = vmatprep.subr.bf16.mxu0 %v5114_v4  ;;  %3784 = vmatprep.mubr.msk.bf16.mxu1 %vm458_vm0, %v5297_v46  ;;  %v5598_v4 = vld [vmem:[%s7360_s1 + $0x114] ss:$8 sps:$4 sm:$0xff]   ;;  %v5617_v46 = vld [vmem:[%s7360_s1 + $0x120] ss:$8 sps:$4 sm:$0xff]  }
  0x8a   : > { %3899 = vmatprep.mubr.msk.bf16.mxu0 %vm458_vm0, %v5470_v11 }
  0x8b   : > { %1040 = vmatpush1.bf16.msra.mxu1 %v5573_v17 }
  0x8c   : > { %1527 = vmatpush1.bf16.msra.mxu0 %v5123_v6  ;;  %1041 = vmatprep.subr.bf16.mxu1 %v5580_v0  ;;  %v5605_v6 = vld [vmem:[%s7360_s1 + $0x110] ss:$8 sps:$4 sm:$0xff]  }
  0x8d   : > { %1528 = vmatprep.subr.bf16.mxu0 %v5132_v8  ;;  %v5612_v8 = vld [vmem:[%s7360_s1 + $0x124] ss:$8 sps:$4 sm:$0xff]  }
  0x8f   : > { %1042 = vmatpush1.bf16.msra.mxu1 %v5591_v2 }
  0x90   : > { %1529 = vmatpush1.bf16.msra.mxu0 %v5140_v10  ;;  %1043 = vmatprep.subr.bf16.mxu1 %v5598_v4  ;;  %v5626_v10 = vld [vmem:[%s7360_s1 + $0x134] ss:$8 sps:$4 sm:$0xff]  }
  0x91   : > { %1530 = vmatprep.subr.bf16.mxu0 %v5149_v12  ;;  %v5631_v12 = vld [vmem:[%s7360_s1 + $0x130] ss:$8 sps:$4 sm:$0xff]  }
  0x93   : > { %1044 = vmatpush1.bf16.msra.mxu1 %v5605_v6 }
  0x94   : > { %1531 = vmatpush1.bf16.msra.mxu0 %v5158_v14  ;;  %1045 = vmatprep.subr.bf16.mxu1 %v5612_v8  ;;  %v5640_v14 = vld [vmem:[%s7360_s1 + $0x144] ss:$8 sps:$4 sm:$0xff]  }
  0x95   : > { %1532 = vmatprep.subr.bf16.mxu0 %v5167_v16  ;;  %v5645_v16 = vld [vmem:[%s7360_s1 + $0x140] ss:$8 sps:$4 sm:$0xff]  }
  0x97   : > { %1046 = vmatpush1.bf16.msra.mxu1 %v5617_v46 }
  0x98   : > { %1533 = vmatpush1.bf16.msra.mxu0 %v5176_v18  ;;  %1047 = vmatprep.subr.bf16.mxu1 %v5626_v10  ;;  %v5654_v18 = vld [vmem:[%s7360_s1 + $0x154] ss:$8 sps:$4 sm:$0xff]  }
  0x99   : > { %1534 = vmatprep.subr.bf16.mxu0 %v5185_v20  ;;  %v5659_v20 = vld [vmem:[%s7360_s1 + $0x150] ss:$8 sps:$4 sm:$0xff]  }
  0x9b   : > { %1048 = vmatpush1.bf16.msra.mxu1 %v5631_v12 }
  0x9c   : > { %1535 = vmatpush1.bf16.msra.mxu0 %v5194_v22  ;;  %1049 = vmatprep.subr.bf16.mxu1 %v5640_v14  ;;  %v5668_v22 = vld [vmem:[%s7360_s1 + $0x164] ss:$8 sps:$4 sm:$0xff]  }
  0x9d   : > { %1536 = vmatprep.subr.bf16.mxu0 %v5203_v24  ;;  %v5673_v24 = vld [vmem:[%s7360_s1 + $0x160] ss:$8 sps:$4 sm:$0xff]  }
  0x9f   : > { %1050 = vmatpush1.bf16.msra.mxu1 %v5645_v16 }
  0xa0   : > { %1537 = vmatpush1.bf16.msra.mxu0 %v5212_v26  ;;  %1051 = vmatprep.subr.bf16.mxu1 %v5654_v18  ;;  %v5682_v26 = vld [vmem:[%s7360_s1 + $0x174] ss:$8 sps:$4 sm:$0xff]  }
  0xa1   : > { %1538 = vmatprep.subr.bf16.mxu0 %v5222_v28  ;;  %v5687_v28 = vld [vmem:[%s7360_s1 + $0x170] ss:$8 sps:$4 sm:$0xff]  }
  0xa3   : > { %1052 = vmatpush1.bf16.msra.mxu1 %v5659_v20 }
  0xa4   : > { %1539 = vmatpush1.bf16.msra.mxu0 %v5231_v30  ;;  %1053 = vmatprep.subr.bf16.mxu1 %v5668_v22  ;;  %v5696_v30 = vld [vmem:[%s7360_s1 + $0x184] ss:$8 sps:$4 sm:$0xff]  }
  0xa5   : > { %1540 = vmatprep.subr.bf16.mxu0 %v5241_v32  ;;  %v5701_v32 = vld [vmem:[%s7360_s1 + $0x180] ss:$8 sps:$4 sm:$0xff]  }
  0xa7   : > { %1054 = vmatpush1.bf16.msra.mxu1 %v5673_v24 }
  0xa8   : > { %1541 = vmatpush1.bf16.msra.mxu0 %v5250_v34  ;;  %1055 = vmatprep.subr.bf16.mxu1 %v5682_v26  ;;  %v5715_v34 = vld [vmem:[%s7360_s1 + $0x190] ss:$8 sps:$4 sm:$0xff]  }
  0xa9   : > { %1542 = vmatprep.subr.bf16.mxu0 %v5259_v36  ;;  %v5720_v36 = vld [vmem:[%s7360_s1 + $0x1a4] ss:$8 sps:$4 sm:$0xff]  }
  0xab   : > { %1056 = vmatpush1.bf16.msra.mxu1 %v5687_v28 }
  0xac   : > { %1543 = vmatpush1.bf16.msra.mxu0 %v5274_v38  ;;  %1057 = vmatprep.subr.bf16.mxu1 %v5696_v30  ;;  %v5729_v38 = vld [vmem:[%s7360_s1 + $0x1a0] ss:$8 sps:$4 sm:$0xff]  }
  0xad   : > { %1544 = vmatprep.subr.bf16.mxu0 %v5283_v40  ;;  %v5734_v40 = vld [vmem:[%s7360_s1 + $0x1b4] ss:$8 sps:$4 sm:$0xff]  }
  0xaf   : > { %1058 = vmatpush1.bf16.msra.mxu1 %v5701_v32 }
  0xb0   : > { %1545 = vmatpush1.bf16.msra.mxu0 %v5295_v45  ;;  %1059 = vmatprep.subr.bf16.mxu1 %v5706_v19  ;;  %v5743_v45 = vld [vmem:[%s7360_s1 + $0x1b0] ss:$8 sps:$4 sm:$0xff]  }
  0xb1   : > { %1546 = vmatprep.subr.bf16.mxu0 %v5306_v48  ;;  %v5748_v48 = vld [vmem:[%s7360_s1 + $0x464] ss:$8 sps:$4 sm:$0xff]  }
  0xb3   : > { %1060 = vmatpush1.bf16.msra.mxu1 %v5715_v34 }
  0xb4   : > { %1547 = vmatpush1.bf16.msra.mxu0 %v5319_v50  ;;  %1061 = vmatprep.subr.bf16.mxu1 %v5720_v36  ;;  %v5757_v50 = vld [vmem:[%s7360_s1 + $0x460] ss:$8 sps:$4 sm:$0xff]  }
  0xb5   : > { %1548 = vmatprep.subr.bf16.mxu0 %v5328_v52  ;;  %v5762_v52 = vld [vmem:[%s7360_s1 + $0x474] ss:$8 sps:$4 sm:$0xff]  }
  0xb7   : > { %1062 = vmatpush1.bf16.msra.mxu1 %v5729_v38 }
  0xb8   : > { %1549 = vmatpush1.bf16.msra.mxu0 %v5337_v54  ;;  %1063 = vmatprep.subr.bf16.mxu1 %v5734_v40  ;;  %v4866_v54 = vld [vmem:[%s7360_s1 + $0x4] ss:$8 sps:$4 sm:$0xff]  }
  0xb9   : > { %1550 = vmatprep.subr.bf16.mxu0 %v5346_v56  ;;  %v5773_v56 = vld [vmem:[%s7360_s1 + $0x470] ss:$8 sps:$4 sm:$0xff]  }
  0xbb   : > { %1064 = vmatpush1.bf16.msra.mxu1 %v5743_v45 }
  0xbc   : > { %1551 = vmatpush1.bf16.msra.mxu0 %v5355_v58  ;;  %1481 = vmatprep.subr.bf16.mxu1 %v5748_v48  ;;  %v5780_v58 = vld [vmem:[%s7360_s1 + $0x484] ss:$8 sps:$4 sm:$0xff]  }
  0xbd   : > { %1565 = vmatprep.subr.bf16.mxu0 %v4866_v54  ;;  %v4881_v54 = vld [vmem:[%s7360_s1 + $0x70] ss:$8 sps:$4 sm:$0xff]  }
  0xbe   : > { %1070 = vmatmul.mubr.bf16.vlgmr.msra.gmra.mrb[4].mxu1 %v5378_v7  ;;  %v4868_v7 = vld [vmem:[%s7360_s1 + $0x14] ss:$8 sps:$4 sm:$0xff]  }
  0xbf   : > { %1557 = vmatmul.mubr.bf16.vlgmr.msra.gmra.mrb[4].mxu0 %v5552_v9  ;;  %1482 = vmatpush1.bf16.msra.mxu1 %v5757_v50 }
  0xc0   : > { %1566 = vmatpush1.bf16.msra.mxu0 %v4867_v21  ;;  %1483 = vmatprep.subr.bf16.mxu1 %v5762_v52  ;;  %v5909_v21 = vld [vmem:[%s7360_s1 + $0x4e0] ss:$8 sps:$4 sm:$0xff]  }
  0xc1   : > { %1567 = vmatprep.subr.bf16.mxu0 %v4868_v7  ;;  %3898 = vmatprep.mubr.msk.bf16.mxu1 %vm458_vm0, %v5470_v11  ;;  %7427 = vst [vmem:[#allocation11_spill] sm:$0xff] %v5909_v21  ;;  %v4882_v7 = vld [vmem:[%s7360_s1 + $0x84] ss:$8 sps:$4 sm:$0xff]  }
  0xc2   : > { %3900 = vmatprep.mubr.msk.bf16.mxu0 %vm458_vm0, %v5289_v43 }
  0xc3   : > { %1484 = vmatpush1.bf16.msra.mxu1 %v5773_v56 }
  0xc4   : > { %1568 = vmatpush1.bf16.msra.mxu0 %v4869_v27  ;;  %1485 = vmatprep.subr.bf16.mxu1 %v5780_v58  ;;  %v5918_v27 = vld [vmem:[%s7360_s1 + $0x4f4] ss:$8 sps:$4 sm:$0xff]  }
  0xc5   : > { %1569 = vmatprep.subr.bf16.mxu0 %v4870_v29  ;;  %7428 = vst [vmem:[#allocation12_spill] sm:$0xff] %v5918_v27  ;;  %v4883_v29 = vld [vmem:[%s7360_s1 + $0x80] ss:$8 sps:$4 sm:$0xff]  }
  0xc7   : > { %1486 = vmatpush1.bf16.msra.mxu1 %v5793_v23 }
  0xc8   : > { %1570 = vmatpush1.bf16.msra.mxu0 %v4871_v35  ;;  %1487 = vmatprep.subr.bf16.mxu1 %v5802_v25  ;;  %v5927_v35 = vld [vmem:[%s7360_s1 + $0x4f0] ss:$8 sps:$4 sm:$0xff]  }
  0xc9   : > { %1571 = vmatprep.subr.bf16.mxu0 %v4872_v37  ;;  %7429 = vst [vmem:[#allocation13_spill] sm:$0xff] %v5927_v35  ;;  %v4884_v37 = vld [vmem:[%s7360_s1 + $0x94] ss:$8 sps:$4 sm:$0xff]  }
  0xcb   : > { %1488 = vmatpush1.bf16.msra.mxu1 %v5815_v31 }
  0xcc   : > { %1572 = vmatpush1.bf16.msra.mxu0 %v4873_v42  ;;  %1489 = vmatprep.subr.bf16.mxu1 %v5820_v33  ;;  %v5936_v42 = vld [vmem:[%s7360_s1 + $0x504] ss:$8 sps:$4 sm:$0xff]  }
  0xcd   : > { %1573 = vmatprep.subr.bf16.mxu0 %v4874_v44  ;;  %7430 = vst [vmem:[#allocation14_spill] sm:$0xff] %v5936_v42  ;;  %v4885_v44 = vld [vmem:[%s7360_s1 + $0x90] ss:$8 sps:$4 sm:$0xff]  }
  0xcf   : > { %1490 = vmatpush1.bf16.msra.mxu1 %v5833_v39 }
  0xd0   : > { %1574 = vmatpush1.bf16.msra.mxu0 %v4875_v51  ;;  %1491 = vmatprep.subr.bf16.mxu1 %v5838_v41  ;;  %v5945_v51 = vld [vmem:[%s7360_s1 + $0x500] ss:$8 sps:$4 sm:$0xff]  }
  0xd1   : > { %1575 = vmatprep.subr.bf16.mxu0 %v4876_v53  ;;  %7431 = vst [vmem:[#allocation15_spill] sm:$0xff] %v5945_v51  ;;  %v4886_v53 = vld [vmem:[%s7360_s1 + $0xa4] ss:$8 sps:$4 sm:$0xff]  }
  0xd3   : > { %1492 = vmatpush1.bf16.msra.mxu1 %v5851_v47  ;;  %v4917_v47 = vld [vmem:[%s7360_s1 + $0x350] ss:$8 sps:$4 sm:$0xff]  }
  0xd4   : > { %1576 = vmatpush1.bf16.msra.mxu0 %v4877_v59  ;;  %1493 = vmatprep.subr.bf16.mxu1 %v5856_v49  ;;  %v5954_v59 = vld [vmem:[%s7360_s1 + $0x514] ss:$8 sps:$4 sm:$0xff]   ;;  %v6225_v49 = vld [vmem:[%s7360_s1 + $0x5f0] ss:$8 sps:$4 sm:$0xff]  }
  0xd5   : > { %1577 = vmatprep.subr.bf16.mxu0 %v4878_v60  ;;  %7432 = vst [vmem:[#allocation16_spill] sm:$0xff] %v5954_v59  ;;  %v3904_v60 = vld [vmem:[%s5268_s6 + $0x18] sm:$0x3e]  ;;  %7450 = vst [vmem:[#allocation34_spill] sm:$0xff] %v6225_v49 }
  0xd7   : > { %1494 = vmatpush1.bf16.msra.mxu1 %v5869_v55  ;;  %v6161_v55 = vld [vmem:[%s7360_s1 + $0x5c4] ss:$8 sps:$4 sm:$0xff]  }
  0xd8   : > { %1578 = vmatpush1.bf16.msra.mxu0 %v4879_v61  ;;  %1495 = vmatprep.subr.bf16.mxu1 %v5874_v57  ;;  %v4887_v61 = vld [vmem:[%s7360_s1 + $0xa0] ss:$8 sps:$4 sm:$0xff]   ;;  %v6152_v57 = vld [vmem:[%s7360_s1 + $0x5b0] ss:$8 sps:$4 sm:$0xff]   ;;  %7443 = vst [vmem:[#allocation27_spill] sm:$0xff] %v6161_v55 }
  0xd9   : > { %1579 = vmatprep.subr.bf16.mxu0 %v4880_v63  ;;  %v5964_v63 = vld [vmem:[%s7360_s1 + $0x510] ss:$8 sps:$4 sm:$0xff]   ;;  %7442 = vst [vmem:[#allocation26_spill] sm:$0xff] %v6152_v57 }
  0xda   : > { %7433 = vst [vmem:[#allocation17_spill] sm:$0xff] %v5964_v63 }
  0xdb   : > { %1496 = vmatpush1.bf16.msra.mxu1 %v5891_v62  ;;  %v6143_v62 = vld [vmem:[%s7360_s1 + $0x5b4] ss:$8 sps:$4 sm:$0xff]  }
  0xdc   : > { %1580 = vmatpush1.bf16.msra.mxu0 %v4881_v54  ;;  %1497 = vmatprep.subr.bf16.mxu1 %v5900_v3  ;;  %v4888_v54 = vld [vmem:[%s7360_s1 + $0xb4] ss:$8 sps:$4 sm:$0xff]   ;;  %v6134_v3 = vld [vmem:[%s7360_s1 + $0x5a0] ss:$8 sps:$4 sm:$0xff]   ;;  %7441 = vst [vmem:[#allocation25_spill] sm:$0xff] %v6143_v62 }
  0xdd   : > { %1581 = vmatprep.subr.bf16.mxu0 %v4882_v7  ;;  %v5973_v7 = vld [vmem:[%s7360_s1 + $0x524] ss:$8 sps:$4 sm:$0xff]   ;;  %7440 = vst [vmem:[#allocation24_spill] sm:$0xff] %v6134_v3 }
  0xde   : > { %7434 = vst [vmem:[#allocation18_spill] sm:$0xff] %v5973_v7 }
  0xdf   : > { %1498 = vmatpush1.bf16.msra.mxu1 %v5909_v21  ;;  %v6125_v21 = vld [vmem:[%s7360_s1 + $0x5a4] ss:$8 sps:$4 sm:$0xff]  }
  0xe0   : > { %1582 = vmatpush1.bf16.msra.mxu0 %v4883_v29  ;;  %1499 = vmatprep.subr.bf16.mxu1 %v5918_v27  ;;  %v1691_v29 = vpack.c.bf16 %v3904_v60, %v3904_v60  ;;  %v5991_v60 = vld [vmem:[%s7360_s1 + $0x534] ss:$8 sps:$4 sm:$0xff]   ;;  %v6116_v27 = vld [vmem:[%s7360_s1 + $0x590] ss:$8 sps:$4 sm:$0xff]   ;;  %7439 = vst [vmem:[#allocation23_spill] sm:$0xff] %v6125_v21 }
  0xe1   : > { %1583 = vmatprep.subr.bf16.mxu0 %v4884_v37  ;;  %v4889_v37 = vld [vmem:[%s7360_s1 + $0xb0] ss:$8 sps:$4 sm:$0xff]   ;;  %7436 = vst [vmem:[#allocation20_spill] sm:$0xff] %v5991_v60  ;;  %7438 = vst [vmem:[#allocation22_spill] sm:$0xff] %v6116_v27 }
  0xe3   : > { %1500 = vmatpush1.bf16.msra.mxu1 %v5927_v35  ;;  %v6107_v35 = vld [vmem:[%s7360_s1 + $0x594] ss:$8 sps:$4 sm:$0xff]  }
  0xe4   : > { %1584 = vmatpush1.bf16.msra.mxu0 %v4885_v44  ;;  %1501 = vmatprep.subr.bf16.mxu1 %v5936_v42  ;;  %v5982_v44 = vld [vmem:[%s7360_s1 + $0x520] ss:$8 sps:$4 sm:$0xff]  }
  0xe5   : > { %1585 = vmatprep.subr.bf16.mxu0 %v4886_v53  ;;  %7435 = vst [vmem:[#allocation19_spill] sm:$0xff] %v5982_v44  ;;  %v4890_v53 = vld [vmem:[%s7360_s1 + $0xc4] ss:$8 sps:$4 sm:$0xff]   ;;  %v6098_v42 = vld [vmem:[%s7360_s1 + $0x580] ss:$8 sps:$4 sm:$0xff]  }
  0xe7   : > { %1502 = vmatpush1.bf16.msra.mxu1 %v5945_v51  ;;  %v6089_v51 = vld [vmem:[%s7360_s1 + $0x584] ss:$8 sps:$4 sm:$0xff]  }
  0xe8   : > { %1586 = vmatpush1.bf16.msra.mxu0 %v4887_v61  ;;  %1503 = vmatprep.subr.bf16.mxu1 %v5954_v59  ;;  %v1731_v61 = vshll.u32 %v1691_v29, 16  ;;  %v6080_v59 = vld [vmem:[%s7360_s1 + $0x570] ss:$8 sps:$4 sm:$0xff]  }
  0xe9   : > { %1587 = vmatprep.subr.bf16.mxu0 %v4888_v54  ;;  %v4891_v54 = vld [vmem:[%s7360_s1 + $0xc0] ss:$8 sps:$4 sm:$0xff]  }
  0xeb   : > { %1504 = vmatpush1.bf16.msra.mxu1 %v5964_v63  ;;  %v1733_v63 = vrot.slane %v1731_v61, 1 }
  0xec   : > { %1588 = vmatpush1.bf16.msra.mxu0 %v4889_v37  ;;  %1505 = vmatprep.subr.bf16.mxu1 %v5973_v7  ;;  %v6000_v37 = vld [vmem:[%s7360_s1 + $0x530] ss:$8 sps:$4 sm:$0xff]   ;;  %v1729_v7 = vshrl.u32 %v1691_v29, 16  ;;  %v6027_v29 = vld [vmem:[%s7360_s1 + $0x554] ss:$8 sps:$4 sm:$0xff]  }
  0xed   : > { %1589 = vmatprep.subr.bf16.mxu0 %v4890_v53  ;;  %7437 = vst [vmem:[#allocation21_spill] sm:$0xff] %v6000_v37  ;;  %v4892_v53 = vld [vmem:[%s7360_s1 + $0xd4] ss:$8 sps:$4 sm:$0xff]  }
  0xee   : > { %v6029_v61 = vor.u32 %v1733_v63, %v1729_v7  ;;  %v4896_v63 = vld [vmem:[%s7360_s1 + $0x2b4] ss:$8 sps:$4 sm:$0xff]   ;;  %v6049_v7 = vld [vmem:[%s7360_s1 + $0x564] ss:$8 sps:$4 sm:$0xff]  }
  0xef   : > { %1506 = vmatpush1.bf16.msra.mxu1 %v5982_v44  ;;  %v6009_v44 = vld [vmem:[%s7360_s1 + $0x544] ss:$8 sps:$4 sm:$0xff]  }
  0xf0   : > { %1590 = vmatpush1.bf16.msra.mxu0 %v4891_v54  ;;  %1507 = vmatprep.subr.bf16.mxu1 %v5991_v60  ;;  %v4893_v54 = vld [vmem:[%s7360_s1 + $0xd0] ss:$8 sps:$4 sm:$0xff]   ;;  %v6018_v60 = vld [vmem:[%s7360_s1 + $0x540] ss:$8 sps:$4 sm:$0xff]  }
  0xf1   : > { %1591 = vmatprep.subr.bf16.mxu0 %v4892_v53  ;;  %v4894_v53 = vld [vmem:[%s7360_s1 + $0x2a4] ss:$8 sps:$4 sm:$0xff]  }
  0xf3   : > { %1508 = vmatpush1.bf16.msra.mxu1 %v6000_v37  ;;  %v4898_v37 = vld [vmem:[%s7360_s1 + $0x2c4] ss:$8 sps:$4 sm:$0xff]  }
  0xf4   : > { %1592 = vmatpush1.bf16.msra.mxu0 %v4893_v54  ;;  %1606 = vmatprep.subr.bf16.mxu1 %v4894_v53  ;;  %v4895_v54 = vld [vmem:[%s7360_s1 + $0x2a0] ss:$8 sps:$4 sm:$0xff]   ;;  %v6040_v53 = vld [vmem:[%s7360_s1 + $0x550] ss:$8 sps:$4 sm:$0xff]  }
  0xf5   : > { %1879 = vmatprep.subr.bf16.mxu0 %v6009_v44 }
  0xf6   : > { %1514 = vmatmul.mubr.bf16.vlgmr.msra.gmra.mrb[4].mxu1 %v5552_v9 }
  0xf7   : > { %1598 = vmatmul.mubr.bf16.vlgmr.msra.gmra.mrb[4].mxu0 %v5370_v1  ;;  %1607 = vmatpush1.bf16.msra.mxu1 %v4895_v54  ;;  %v4897_v54 = vld [vmem:[%s7360_s1 + $0x2b0] ss:$8 sps:$4 sm:$0xff]  }
  0xf8   : > { %1880 = vmatpush1.bf16.msra.mxu0 %v6018_v60  ;;  %1608 = vmatprep.subr.bf16.mxu1 %v4896_v63  ;;  %v6062_v63 = vld [vmem:[%s7360_s1 + $0x560] ss:$8 sps:$4 sm:$0xff]  }
  0xf9   : > { %1881 = vmatprep.subr.bf16.mxu0 %v6027_v29  ;;  %3901 = vmatprep.mubr.msk.bf16.mxu1 %vm458_vm0, %v5470_v11  ;;  %v6071_v11 = vld [vmem:[%s7360_s1 + $0x574] ss:$8 sps:$4 sm:$0xff]  }
  0xfa   : > { %3961 = vmatprep.mubr.msk.bf16.mxu0 %vm458_vm0, %v6029_v61 }
  0xfb   : > { %1609 = vmatpush1.bf16.msra.mxu1 %v4897_v54  ;;  %v4899_v54 = vld [vmem:[%s7360_s1 + $0x2c0] ss:$8 sps:$4 sm:$0xff]  }
  0xfc   : > { %1882 = vmatpush1.bf16.msra.mxu0 %v6040_v53  ;;  %1610 = vmatprep.subr.bf16.mxu1 %v4898_v37  ;;  %v4900_v37 = vld [vmem:[%s7360_s1 + $0x2d4] ss:$8 sps:$4 sm:$0xff]  }
  0xfd   : > { %1883 = vmatprep.subr.bf16.mxu0 %v6049_v7 }
  0xff   : > { %1611 = vmatpush1.bf16.msra.mxu1 %v4899_v54  ;;  %v4901_v54 = vld [vmem:[%s7360_s1 + $0x2d0] ss:$8 sps:$4 sm:$0xff]  }
 0x100   : > { %1884 = vmatpush1.bf16.msra.mxu0 %v6062_v63  ;;  %1612 = vmatprep.subr.bf16.mxu1 %v4900_v37  ;;  %v4902_v37 = vld [vmem:[%s7360_s1 + $0x2e4] ss:$8 sps:$4 sm:$0xff]  }
 0x101   : > { %1885 = vmatprep.subr.bf16.mxu0 %v6071_v11 }
 0x103   : > { %1613 = vmatpush1.bf16.msra.mxu1 %v4901_v54  ;;  %v4903_v54 = vld [vmem:[%s7360_s1 + $0x2e0] ss:$8 sps:$4 sm:$0xff]  }
 0x104   : > { %1886 = vmatpush1.bf16.msra.mxu0 %v6080_v59  ;;  %1614 = vmatprep.subr.bf16.mxu1 %v4902_v37  ;;  %v4904_v37 = vld [vmem:[%s7360_s1 + $0x2f4] ss:$8 sps:$4 sm:$0xff]  }
 0x105   : > { %1887 = vmatprep.subr.bf16.mxu0 %v6089_v51 }
 0x107   : > { %1615 = vmatpush1.bf16.msra.mxu1 %v4903_v54  ;;  %v4905_v54 = vld [vmem:[%s7360_s1 + $0x2f0] ss:$8 sps:$4 sm:$0xff]  }
 0x108   : > { %1888 = vmatpush1.bf16.msra.mxu0 %v6098_v42  ;;  %1616 = vmatprep.subr.bf16.mxu1 %v4904_v37  ;;  %v4906_v37 = vld [vmem:[%s7360_s1 + $0x304] ss:$8 sps:$4 sm:$0xff]  }
 0x109   : > { %1889 = vmatprep.subr.bf16.mxu0 %v6107_v35 }
 0x10b   : > { %1617 = vmatpush1.bf16.msra.mxu1 %v4905_v54  ;;  %v4907_v54 = vld [vmem:[%s7360_s1 + $0x300] ss:$8 sps:$4 sm:$0xff]  }
 0x10c   : > { %1890 = vmatpush1.bf16.msra.mxu0 %v6116_v27  ;;  %1618 = vmatprep.subr.bf16.mxu1 %v4906_v37  ;;  %v4908_v37 = vld [vmem:[%s7360_s1 + $0x314] ss:$8 sps:$4 sm:$0xff]  }
 0x10d   : > { %1891 = vmatprep.subr.bf16.mxu0 %v6125_v21  ;;  %v6216_v21 = vld [vmem:[%s7360_s1 + $0x5f4] ss:$8 sps:$4 sm:$0xff]  }
 0x10e   : > { %7449 = vst [vmem:[#allocation33_spill] sm:$0xff] %v6216_v21 }
 0x10f   : > { %1619 = vmatpush1.bf16.msra.mxu1 %v4907_v54  ;;  %v4909_v54 = vld [vmem:[%s7360_s1 + $0x310] ss:$8 sps:$4 sm:$0xff]  }
 0x110   : > { %1892 = vmatpush1.bf16.msra.mxu0 %v6134_v3  ;;  %1620 = vmatprep.subr.bf16.mxu1 %v4908_v37  ;;  %v6170_v3 = vld [vmem:[%s7360_s1 + $0x5c0] ss:$8 sps:$4 sm:$0xff]   ;;  %v4910_v37 = vld [vmem:[%s7360_s1 + $0x324] ss:$8 sps:$4 sm:$0xff]  }
 0x111   : > { %1893 = vmatprep.subr.bf16.mxu0 %v6143_v62  ;;  %7444 = vst [vmem:[#allocation28_spill] sm:$0xff] %v6170_v3  ;;  %v6179_v62 = vld [vmem:[%s7360_s1 + $0x5d4] ss:$8 sps:$4 sm:$0xff]  }
 0x112   : > { %7445 = vst [vmem:[#allocation29_spill] sm:$0xff] %v6179_v62 }
 0x113   : > { %1621 = vmatpush1.bf16.msra.mxu1 %v4909_v54  ;;  %v4911_v54 = vld [vmem:[%s7360_s1 + $0x320] ss:$8 sps:$4 sm:$0xff]  }
 0x114   : > { %1894 = vmatpush1.bf16.msra.mxu0 %v6152_v57  ;;  %1622 = vmatprep.subr.bf16.mxu1 %v4910_v37  ;;  %v6188_v57 = vld [vmem:[%s7360_s1 + $0x5d0] ss:$8 sps:$4 sm:$0xff]   ;;  %v4912_v37 = vld [vmem:[%s7360_s1 + $0x334] ss:$8 sps:$4 sm:$0xff]  }
 0x115   : > { %1895 = vmatprep.subr.bf16.mxu0 %v6161_v55  ;;  %7446 = vst [vmem:[#allocation30_spill] sm:$0xff] %v6188_v57  ;;  %v6197_v55 = vld [vmem:[%s7360_s1 + $0x5e4] ss:$8 sps:$4 sm:$0xff]  }
 0x116   : > { %7447 = vst [vmem:[#allocation31_spill] sm:$0xff] %v6197_v55 }
 0x117   : > { %1623 = vmatpush1.bf16.msra.mxu1 %v4911_v54  ;;  %v4913_v54 = vld [vmem:[%s7360_s1 + $0x330] ss:$8 sps:$4 sm:$0xff]  }
 0x118   : > { %1896 = vmatpush1.bf16.msra.mxu0 %v6170_v3  ;;  %1624 = vmatprep.subr.bf16.mxu1 %v4912_v37  ;;  %v6206_v3 = vld [vmem:[%s7360_s1 + $0x5e0] ss:$8 sps:$4 sm:$0xff]   ;;  %v3903_v37 = vld [vmem:[%s5268_s6 + $0x10] sm:$0x3e] }
 0x119   : > { %1897 = vmatprep.subr.bf16.mxu0 %v6179_v62  ;;  %7448 = vst [vmem:[#allocation32_spill] sm:$0xff] %v6206_v3  ;;  %v4914_v62 = vld [vmem:[%s7360_s1 + $0x344] ss:$8 sps:$4 sm:$0xff]  }
 0x11b   : > { %1625 = vmatpush1.bf16.msra.mxu1 %v4913_v54  ;;  %v1690_v54 = vpack.c.bf16 %v3903_v37, %v3903_v37  ;;  %v6234_v37 = vld [vmem:[%s7360_s1 + $0x604] ss:$8 sps:$4 sm:$0xff]  }
 0x11c   : > { %1898 = vmatpush1.bf16.msra.mxu0 %v6188_v57  ;;  %1626 = vmatprep.subr.bf16.mxu1 %v4914_v62  ;;  %v4915_v57 = vld [vmem:[%s7360_s1 + $0x340] ss:$8 sps:$4 sm:$0xff]   ;;  %v4916_v62 = vld [vmem:[%s7360_s1 + $0x354] ss:$8 sps:$4 sm:$0xff]  }
 0x11d   : > { %1899 = vmatprep.subr.bf16.mxu0 %v6197_v55  ;;  %v1724_v55 = vshll.u32 %v1690_v54, 16 }
 0x11f   : > { %1627 = vmatpush1.bf16.msra.mxu1 %v4915_v57 }
 0x120   : > { %1900 = vmatpush1.bf16.msra.mxu0 %v6206_v3  ;;  %1628 = vmatprep.subr.bf16.mxu1 %v4916_v62  ;;  %v6247_v62 = vld [vmem:[%s7360_s1 + $0x600] ss:$8 sps:$4 sm:$0xff]  }
 0x121   : > { %1901 = vmatprep.subr.bf16.mxu0 %v6216_v21  ;;  %v6236_v57 = vpop.f32.mrb[0].mxu1 }
 0x122   : > { %7451 = vst [vmem:[#allocation35_spill] sm:$0xff] %v6236_v57  ;;  %v6238_v3 = vpop.f32.mrb[1].mxu1  ;;  %v4918_v57 = vld [vmem:[%s7360_s1 + $0x364] ss:$8 sps:$4 sm:$0xff]  }
 0x123   : > { %7452 = vst [vmem:[#allocation36_spill] sm:$0xff] %v6238_v3  ;;  %v500_v27 = vpop.f32.mrb[2].mxu1  ;;  %1629 = vmatpush1.bf16.msra.mxu1 %v4917_v47  ;;  %v1722_v47 = vshrl.u32 %v1690_v54, 16  ;;  %v1726_v3 = vrot.slane %v1724_v55, 1  ;;  %v4922_v54 = vld [vmem:[%s7360_s1 + $0x384] ss:$8 sps:$4 sm:$0xff]  }
 0x124   : > { %1902 = vmatpush1.bf16.msra.mxu0 %v6225_v49  ;;  %v501_v21 = vpop.f32.mrb[3].mxu1  ;;  %1630 = vmatprep.subr.bf16.mxu1 %v4918_v57  ;;  %v6256_v27 = vld [vmem:[%s7360_s1 + $0x614] ss:$8 sps:$4 sm:$0xff]   ;;  %v4919_v49 = vld [vmem:[%s7360_s1 + $0x360] ss:$8 sps:$4 sm:$0xff]  }
 0x125   : > { %1903 = vmatprep.subr.bf16.mxu0 %v6234_v37  ;;  %v6265_v21 = vld [vmem:[%s7360_s1 + $0x610] ss:$8 sps:$4 sm:$0xff]   ;;  %v4920_v57 = vld [vmem:[%s7360_s1 + $0x374] ss:$8 sps:$4 sm:$0xff]   ;;  %v6271_v55 = vor.u32 %v1726_v3, %v1722_v47  ;;  %v4923_v3 = vld [vmem:[%s7360_s1 + $0x380] ss:$8 sps:$4 sm:$0xff]  }
 0x127   : > { %1631 = vmatpush1.bf16.msra.mxu1 %v4919_v49  ;;  %v4921_v49 = vld [vmem:[%s7360_s1 + $0x370] ss:$8 sps:$4 sm:$0xff]  }
 0x128   : > { %1904 = vmatpush1.bf16.msra.mxu0 %v6247_v62  ;;  %1632 = vmatprep.subr.bf16.mxu1 %v4920_v57  ;;  %v6409_v57 = vld [vmem:[%s7360_s1 + $0x620] ss:$8 sps:$4 sm:$0xff]  }
 0x129   : > { %1905 = vmatprep.subr.bf16.mxu0 %v6256_v27  ;;  %7453 = vst [vmem:[#allocation37_spill] sm:$0xff] %v6409_v57 }
 0x12b   : > { %1633 = vmatpush1.bf16.msra.mxu1 %v4921_v49  ;;  %v6414_v49 = vld [vmem:[%s7360_s1 + $0x700] ss:$8 sps:$4 sm:$0xff]  }
 0x12c   : > { %1906 = vmatpush1.bf16.msra.mxu0 %v6265_v21  ;;  %1647 = vmatprep.subr.bf16.mxu1 %v5550_v5  ;;  %v4924_v5 = vld [vmem:[%s7360_s1 + $0x394] ss:$8 sps:$4 sm:$0xff]  }
 0x12d   : > { %2134 = vmatprep.subr.bf16.mxu0 %v4922_v54  ;;  %v6426_v54 = vld [vmem:[%s7360_s1 + $0x714] ss:$8 sps:$4 sm:$0xff]  }
 0x12e   : > { %1639 = vmatmul.mubr.bf16.vlgmr.msra.gmra.mrb[8].mxu1 %v5552_v9  ;;  %v4925_v9 = vld [vmem:[%s7360_s1 + $0x390] ss:$8 sps:$4 sm:$0xff]  }
 0x12f   : > { %1912 = vmatmul.mubr.bf16.vlgmr.msra.gmra.mrb[0].mxu0 %v6271_v55  ;;  %1648 = vmatpush1.bf16.msra.mxu1 %v5557_v13  ;;  %v4926_v13 = vld [vmem:[%s7360_s1 + $0x3a4] ss:$8 sps:$4 sm:$0xff]  }
 0x130   : > { %2135 = vmatpush1.bf16.msra.mxu0 %v4923_v3  ;;  %1649 = vmatprep.subr.bf16.mxu1 %v5564_v15  ;;  %v4928_v15 = vld [vmem:[%s7360_s1 + $0x3b4] ss:$8 sps:$4 sm:$0xff]  }
 0x131   : > { %2136 = vmatprep.subr.bf16.mxu0 %v4924_v5  ;;  %3902 = vmatprep.mubr.msk.bf16.mxu1 %vm458_vm0, %v5289_v43  ;;  %v4927_v43 = vld [vmem:[%s7360_s1 + $0x3a0] ss:$8 sps:$4 sm:$0xff]   ;;  %v6437_v5 = vld [vmem:[%s7360_s1 + $0x630] ss:$8 sps:$4 sm:$0xff]  }
 0x132   : > { %4019 = vmatprep.mubr.msk.bf16.mxu0 %vm458_vm0, %v6029_v61  ;;  %7455 = vst [vmem:[#allocation39_spill] sm:$0xff] %v6437_v5 }
 0x133   : > { %1650 = vmatpush1.bf16.msra.mxu1 %v5573_v17  ;;  %v4929_v17 = vld [vmem:[%s7360_s1 + $0x3b0] ss:$8 sps:$4 sm:$0xff]  }
 0x134   : > { %2137 = vmatpush1.bf16.msra.mxu0 %v4925_v9  ;;  %1651 = vmatprep.subr.bf16.mxu1 %v5580_v0  ;;  %v4930_v0 = vld [vmem:[%s7360_s1 + $0x3c4] ss:$8 sps:$4 sm:$0xff]   ;;  %v6442_v9 = vld [vmem:[%s7360_s1 + $0x710] ss:$8 sps:$4 sm:$0xff]  }
 0x135   : > { %2138 = vmatprep.subr.bf16.mxu0 %v4926_v13  ;;  %v6454_v13 = vld [vmem:[%s7360_s1 + $0x724] ss:$8 sps:$4 sm:$0xff]  }
 0x137   : > { %1652 = vmatpush1.bf16.msra.mxu1 %v5591_v2  ;;  %v4931_v2 = vld [vmem:[%s7360_s1 + $0x3c0] ss:$8 sps:$4 sm:$0xff]  }
 0x138   : > { %2139 = vmatpush1.bf16.msra.mxu0 %v4927_v43  ;;  %1653 = vmatprep.subr.bf16.mxu1 %v5598_v4  ;;  %v4932_v4 = vld [vmem:[%s7360_s1 + $0x3d4] ss:$8 sps:$4 sm:$0xff]   ;;  %v6465_v43 = vld [vmem:[%s7360_s1 + $0x640] ss:$8 sps:$4 sm:$0xff]  }
 0x139   : > { %2140 = vmatprep.subr.bf16.mxu0 %v4928_v15  ;;  %7457 = vst [vmem:[#allocation41_spill] sm:$0xff] %v6465_v43  ;;  %v6470_v15 = vld [vmem:[%s7360_s1 + $0x720] ss:$8 sps:$4 sm:$0xff]  }
 0x13b   : > { %1654 = vmatpush1.bf16.msra.mxu1 %v5605_v6  ;;  %v4933_v6 = vld [vmem:[%s7360_s1 + $0x3d0] ss:$8 sps:$4 sm:$0xff]  }
 0x13c   : > { %2141 = vmatpush1.bf16.msra.mxu0 %v4929_v17  ;;  %1655 = vmatprep.subr.bf16.mxu1 %v5612_v8  ;;  %v4934_v8 = vld [vmem:[%s7360_s1 + $0x3e4] ss:$8 sps:$4 sm:$0xff]   ;;  %v6477_v17 = vld [vmem:[%s7360_s1 + $0x654] ss:$8 sps:$4 sm:$0xff]  }
 0x13d   : > { %2142 = vmatprep.subr.bf16.mxu0 %v4930_v0  ;;  %7458 = vst [vmem:[#allocation42_spill] sm:$0xff] %v6477_v17  ;;  %v6482_v0 = vld [vmem:[%s7360_s1 + $0x734] ss:$8 sps:$4 sm:$0xff]  }
 0x13f   : > { %1656 = vmatpush1.bf16.msra.mxu1 %v5617_v46  ;;  %v4935_v46 = vld [vmem:[%s7360_s1 + $0x3e0] ss:$8 sps:$4 sm:$0xff]  }
 0x140   : > { %2143 = vmatpush1.bf16.msra.mxu0 %v4931_v2  ;;  %1657 = vmatprep.subr.bf16.mxu1 %v5626_v10  ;;  %v4936_v10 = vld [vmem:[%s7360_s1 + $0x3f4] ss:$8 sps:$4 sm:$0xff]   ;;  %v6489_v2 = vld [vmem:[%s7360_s1 + $0x650] ss:$8 sps:$4 sm:$0xff]  }
 0x141   : > { %2144 = vmatprep.subr.bf16.mxu0 %v4932_v4  ;;  %7459 = vst [vmem:[#allocation43_spill] sm:$0xff] %v6489_v2  ;;  %v6494_v4 = vld [vmem:[%s7360_s1 + $0x730] ss:$8 sps:$4 sm:$0xff]  }
 0x143   : > { %1658 = vmatpush1.bf16.msra.mxu1 %v5631_v12  ;;  %v4937_v12 = vld [vmem:[%s7360_s1 + $0x3f0] ss:$8 sps:$4 sm:$0xff]  }
 0x144   : > { %2145 = vmatpush1.bf16.msra.mxu0 %v4933_v6  ;;  %1659 = vmatprep.subr.bf16.mxu1 %v5640_v14  ;;  %v4938_v14 = vld [vmem:[%s7360_s1 + $0x404] ss:$8 sps:$4 sm:$0xff]  }
 0x145   : > { %2146 = vmatprep.subr.bf16.mxu0 %v4934_v8  ;;  %v6501_v6 = vld [vmem:[%s7360_s1 + $0x664] ss:$8 sps:$4 sm:$0xff]  }
 0x146   : > { %7460 = vst [vmem:[#allocation44_spill] sm:$0xff] %v6501_v6  ;;  %v6506_v8 = vld [vmem:[%s7360_s1 + $0x744] ss:$8 sps:$4 sm:$0xff]  }
 0x147   : > { %1660 = vmatpush1.bf16.msra.mxu1 %v5645_v16  ;;  %v4939_v16 = vld [vmem:[%s7360_s1 + $0x400] ss:$8 sps:$4 sm:$0xff]  }
 0x148   : > { %2147 = vmatpush1.bf16.msra.mxu0 %v4935_v46  ;;  %1661 = vmatprep.subr.bf16.mxu1 %v5654_v18  ;;  %v4940_v18 = vld [vmem:[%s7360_s1 + $0x414] ss:$8 sps:$4 sm:$0xff]   ;;  %v6513_v46 = vld [vmem:[%s7360_s1 + $0x660] ss:$8 sps:$4 sm:$0xff]  }
 0x149   : > { %2148 = vmatprep.subr.bf16.mxu0 %v4936_v10  ;;  %7461 = vst [vmem:[#allocation45_spill] sm:$0xff] %v6513_v46  ;;  %v6518_v10 = vld [vmem:[%s7360_s1 + $0x740] ss:$8 sps:$4 sm:$0xff]  }
 0x14b   : > { %1662 = vmatpush1.bf16.msra.mxu1 %v5659_v20  ;;  %v4941_v20 = vld [vmem:[%s7360_s1 + $0x410] ss:$8 sps:$4 sm:$0xff]  }
 0x14c   : > { %2149 = vmatpush1.bf16.msra.mxu0 %v4937_v12  ;;  %1663 = vmatprep.subr.bf16.mxu1 %v5668_v22  ;;  %v4942_v22 = vld [vmem:[%s7360_s1 + $0x424] ss:$8 sps:$4 sm:$0xff]   ;;  %v6525_v12 = vld [vmem:[%s7360_s1 + $0x674] ss:$8 sps:$4 sm:$0xff]  }
 0x14d   : > { %2150 = vmatprep.subr.bf16.mxu0 %v4938_v14  ;;  %7462 = vst [vmem:[#allocation46_spill] sm:$0xff] %v6525_v12  ;;  %v6530_v14 = vld [vmem:[%s7360_s1 + $0x754] ss:$8 sps:$4 sm:$0xff]  }
 0x14f   : > { %1664 = vmatpush1.bf16.msra.mxu1 %v5673_v24  ;;  %v4943_v24 = vld [vmem:[%s7360_s1 + $0x420] ss:$8 sps:$4 sm:$0xff]  }
 0x150   : > { %2151 = vmatpush1.bf16.msra.mxu0 %v4939_v16  ;;  %1665 = vmatprep.subr.bf16.mxu1 %v5682_v26  ;;  %v4944_v26 = vld [vmem:[%s7360_s1 + $0x434] ss:$8 sps:$4 sm:$0xff]   ;;  %v6537_v16 = vld [vmem:[%s7360_s1 + $0x670] ss:$8 sps:$4 sm:$0xff]  }
 0x151   : > { %2152 = vmatprep.subr.bf16.mxu0 %v4940_v18  ;;  %7463 = vst [vmem:[#allocation47_spill] sm:$0xff] %v6537_v16  ;;  %v6542_v18 = vld [vmem:[%s7360_s1 + $0x750] ss:$8 sps:$4 sm:$0xff]  }
 0x153   : > { %1666 = vmatpush1.bf16.msra.mxu1 %v5687_v28  ;;  %v4945_v28 = vld [vmem:[%s7360_s1 + $0x430] ss:$8 sps:$4 sm:$0xff]  }
 0x154   : > { %2153 = vmatpush1.bf16.msra.mxu0 %v4941_v20  ;;  %1667 = vmatprep.subr.bf16.mxu1 %v5696_v30  ;;  %v4946_v30 = vld [vmem:[%s7360_s1 + $0x444] ss:$8 sps:$4 sm:$0xff]  }
 0x155   : > { %2154 = vmatprep.subr.bf16.mxu0 %v4942_v22  ;;  %v6549_v20 = vld [vmem:[%s7360_s1 + $0x684] ss:$8 sps:$4 sm:$0xff]  }
 0x156   : > { %7464 = vst [vmem:[#allocation48_spill] sm:$0xff] %v6549_v20  ;;  %v6554_v22 = vld [vmem:[%s7360_s1 + $0x764] ss:$8 sps:$4 sm:$0xff]  }
 0x157   : > { %1668 = vmatpush1.bf16.msra.mxu1 %v5701_v32  ;;  %v2221_v32 = vld [vmem:[%s5268_s6 + $0x8] sm:$0x7c] }
 0x158   : > { %2155 = vmatpush1.bf16.msra.mxu0 %v4943_v24  ;;  %1669 = vmatprep.subr.bf16.mxu1 %v5706_v19  ;;  %v4947_v19 = vld [vmem:[%s7360_s1 + $0x440] ss:$8 sps:$4 sm:$0xff]   ;;  %v2223_v47 = vpack.c.bf16 %v2221_v32, %v2221_v32  ;;  %v6585_v32 = vld [vmem:[%s7360_s1 + $0x690] ss:$8 sps:$4 sm:$0xff]  }
 0x159   : > { %2156 = vmatprep.subr.bf16.mxu0 %v4944_v26  ;;  %v6561_v24 = vld [vmem:[%s7360_s1 + $0x680] ss:$8 sps:$4 sm:$0xff]   ;;  %7467 = vst [vmem:[#allocation51_spill] sm:$0xff] %v6585_v32 }
 0x15a   : > { %v6428_v3 = vrot.slane %v2223_v47, 1  ;;  %7465 = vst [vmem:[#allocation49_spill] sm:$0xff] %v6561_v24  ;;  %v6566_v26 = vld [vmem:[%s7360_s1 + $0x760] ss:$8 sps:$4 sm:$0xff]   ;;  %v6602_v47 = vld [vmem:[%s7360_s1 + $0x784] ss:$8 sps:$4 sm:$0xff]  }
 0x15b   : > { %1670 = vmatpush1.bf16.msra.mxu1 %v5715_v34  ;;  %v4948_v34 = vld [vmem:[%s7360_s1 + $0x454] ss:$8 sps:$4 sm:$0xff]  }
 0x15c   : > { %2157 = vmatpush1.bf16.msra.mxu0 %v4945_v28  ;;  %1671 = vmatprep.subr.bf16.mxu1 %v5720_v36  ;;  %v6395_v36 = vld [vmem:[%s7360_s1 + $0x624] ss:$8 sps:$4 sm:$0xff]   ;;  %v6573_v28 = vld [vmem:[%s7360_s1 + $0x694] ss:$8 sps:$4 sm:$0xff]  }
 0x15d   : > { %2158 = vmatprep.subr.bf16.mxu0 %v4946_v30  ;;  %7466 = vst [vmem:[#allocation50_spill] sm:$0xff] %v6573_v28  ;;  %v6578_v30 = vld [vmem:[%s7360_s1 + $0x774] ss:$8 sps:$4 sm:$0xff]  }
 0x15f   : > { %1672 = vmatpush1.bf16.msra.mxu1 %v5729_v38  ;;  %v6400_v38 = vld [vmem:[%s7360_s1 + $0x704] ss:$8 sps:$4 sm:$0xff]  }
 0x160   : > { %2159 = vmatpush1.bf16.msra.mxu0 %v4947_v19  ;;  %1673 = vmatprep.subr.bf16.mxu1 %v5734_v40  ;;  %v4949_v40 = vld [vmem:[%s7360_s1 + $0x450] ss:$8 sps:$4 sm:$0xff]  }
 0x161   : > { %2160 = vmatprep.subr.bf16.mxu0 %v4948_v34  ;;  %v6590_v19 = vld [vmem:[%s7360_s1 + $0x770] ss:$8 sps:$4 sm:$0xff]   ;;  %v6597_v34 = vld [vmem:[%s7360_s1 + $0x6a4] ss:$8 sps:$4 sm:$0xff]  }
 0x162   : > { %7468 = vst [vmem:[#allocation52_spill] sm:$0xff] %v6597_v34 }
 0x163   : > { %1674 = vmatpush1.bf16.msra.mxu1 %v5743_v45  ;;  %v6421_v45 = vld [vmem:[%s7360_s1 + $0x634] ss:$8 sps:$4 sm:$0xff]  }
 0x164   : > { %2161 = vmatpush1.bf16.msra.mxu0 %v4949_v40  ;;  %2091 = vmatprep.subr.bf16.mxu1 %v6395_v36  ;;  %7454 = vst [vmem:[#allocation38_spill] sm:$0xff] %v6421_v45  ;;  %v6609_v40 = vld [vmem:[%s7360_s1 + $0x6a0] ss:$8 sps:$4 sm:$0xff]  }
 0x165   : > { %2401 = vmatprep.subr.bf16.mxu0 %v6400_v38  ;;  %7469 = vst [vmem:[#allocation53_spill] sm:$0xff] %v6609_v40 }
 0x166   : > { %1680 = vmatmul.mubr.bf16.vlgmr.msra.gmra.mrb[8].mxu1 %v5370_v1  ;;  %v6449_v1 = vld [vmem:[%s7360_s1 + $0x644] ss:$8 sps:$4 sm:$0xff]  }
 0x167   : > { %2167 = vmatmul.mubr.bf16.vlgmr.msra.gmra.mrb[4].mxu0 %v6271_v55  ;;  %2092 = vmatpush1.bf16.msra.mxu1 %v6409_v57  ;;  %7456 = vst [vmem:[#allocation40_spill] sm:$0xff] %v6449_v1 }
 0x168   : > { %2402 = vmatpush1.bf16.msra.mxu0 %v6414_v49  ;;  %2093 = vmatprep.subr.bf16.mxu1 %v6421_v45  ;;  %v6735_v45 = vld [vmem:[%s7360_s1 + $0x7d0] ss:$8 sps:$4 sm:$0xff]  }
 0x169   : > { %2403 = vmatprep.subr.bf16.mxu0 %v6426_v54  ;;  %4077 = vmatprep.mubr.msk.bf16.mxu0 %vm458_vm0, %v6428_v3 }
 0x16a   : > { %4018 = vmatprep.mubr.msk.bf16.mxu1 %vm458_vm0, %v6029_v61 }
 0x16b   : > { %2094 = vmatpush1.bf16.msra.mxu1 %v6437_v5 }
 0x16c   : > { %2404 = vmatpush1.bf16.msra.mxu0 %v6442_v9  ;;  %2095 = vmatprep.subr.bf16.mxu1 %v6449_v1  ;;  %v6723_v1 = vld [vmem:[%s7360_s1 + $0x7d4] ss:$8 sps:$4 sm:$0xff]  }
 0x16d   : > { %2405 = vmatprep.subr.bf16.mxu0 %v6454_v13 }
 0x16f   : > { %2096 = vmatpush1.bf16.msra.mxu1 %v6465_v43  ;;  %v2220_v43 = vld [vmem:[%s5268_s6] sm:$0x7c] }
 0x170   : > { %2406 = vmatpush1.bf16.msra.mxu0 %v6470_v15  ;;  %2097 = vmatprep.subr.bf16.mxu1 %v6477_v17  ;;  %v6710_v17 = vld [vmem:[%s7360_s1 + $0x7c0] ss:$8 sps:$4 sm:$0xff]   ;;  %v2222_v5 = vpack.c.bf16 %v2220_v43, %v2220_v43 }
 0x171   : > { %2407 = vmatprep.subr.bf16.mxu0 %v6482_v0  ;;  %v7501_v43 = vld [vmem:[#allocation17_spill] sm:$0xff] }
 0x172   : > { %v6739_v57 = vrot.slane %v2222_v5, 1  ;;  %v7500_v5 = vld [vmem:[#allocation33_spill] sm:$0xff] }
 0x173   : > { %2098 = vmatpush1.bf16.msra.mxu1 %v6489_v2  ;;  %v6698_v2 = vld [vmem:[%s7360_s1 + $0x7c4] ss:$8 sps:$4 sm:$0xff]  }
 0x174   : > { %2408 = vmatpush1.bf16.msra.mxu0 %v6494_v4  ;;  %2099 = vmatprep.subr.bf16.mxu1 %v6501_v6  ;;  %v6686_v6 = vld [vmem:[%s7360_s1 + $0x7b0] ss:$8 sps:$4 sm:$0xff]  }
 0x175   : > { %2409 = vmatprep.subr.bf16.mxu0 %v6506_v8 }
 0x177   : > { %2100 = vmatpush1.bf16.msra.mxu1 %v6513_v46  ;;  %v6674_v46 = vld [vmem:[%s7360_s1 + $0x7b4] ss:$8 sps:$4 sm:$0xff]  }
 0x178   : > { %2410 = vmatpush1.bf16.msra.mxu0 %v6518_v10  ;;  %2101 = vmatprep.subr.bf16.mxu1 %v6525_v12  ;;  %v6662_v12 = vld [vmem:[%s7360_s1 + $0x7a0] ss:$8 sps:$4 sm:$0xff]  }
 0x179   : > { %2411 = vmatprep.subr.bf16.mxu0 %v6530_v14 }
 0x17b   : > { %2102 = vmatpush1.bf16.msra.mxu1 %v6537_v16  ;;  %v6650_v16 = vld [vmem:[%s7360_s1 + $0x7a4] ss:$8 sps:$4 sm:$0xff]  }
 0x17c   : > { %2412 = vmatpush1.bf16.msra.mxu0 %v6542_v18  ;;  %2103 = vmatprep.subr.bf16.mxu1 %v6549_v20  ;;  %v6638_v20 = vld [vmem:[%s7360_s1 + $0x790] ss:$8 sps:$4 sm:$0xff]  }
 0x17d   : > { %2413 = vmatprep.subr.bf16.mxu0 %v6554_v22 }
 0x17f   : > { %2104 = vmatpush1.bf16.msra.mxu1 %v6561_v24  ;;  %v6626_v24 = vld [vmem:[%s7360_s1 + $0x794] ss:$8 sps:$4 sm:$0xff]  }
 0x180   : > { %2414 = vmatpush1.bf16.msra.mxu0 %v6566_v26  ;;  %2105 = vmatprep.subr.bf16.mxu1 %v6573_v28  ;;  %v6614_v28 = vld [vmem:[%s7360_s1 + $0x780] ss:$8 sps:$4 sm:$0xff]  }
 0x181   : > { %2415 = vmatprep.subr.bf16.mxu0 %v6578_v30 }
 0x183   : > { %2106 = vmatpush1.bf16.msra.mxu1 %v6585_v32  ;;  %v6621_v32 = vld [vmem:[%s7360_s1 + $0x6b4] ss:$8 sps:$4 sm:$0xff]  }
 0x184   : > { %2416 = vmatpush1.bf16.msra.mxu0 %v6590_v19  ;;  %2107 = vmatprep.subr.bf16.mxu1 %v6597_v34  ;;  %7470 = vst [vmem:[#allocation54_spill] sm:$0xff] %v6621_v32  ;;  %v6633_v34 = vld [vmem:[%s7360_s1 + $0x6b0] ss:$8 sps:$4 sm:$0xff]  }
 0x185   : > { %2417 = vmatprep.subr.bf16.mxu0 %v6602_v47  ;;  %7471 = vst [vmem:[#allocation55_spill] sm:$0xff] %v6633_v34 }
 0x187   : > { %2108 = vmatpush1.bf16.msra.mxu1 %v6609_v40  ;;  %v6645_v40 = vld [vmem:[%s7360_s1 + $0x6c4] ss:$8 sps:$4 sm:$0xff]  }
 0x188   : > { %2418 = vmatpush1.bf16.msra.mxu0 %v6614_v28  ;;  %2109 = vmatprep.subr.bf16.mxu1 %v6621_v32  ;;  %7472 = vst [vmem:[#allocation56_spill] sm:$0xff] %v6645_v40  ;;  %v6657_v32 = vld [vmem:[%s7360_s1 + $0x6c0] ss:$8 sps:$4 sm:$0xff]  }
 0x189   : > { %2419 = vmatprep.subr.bf16.mxu0 %v6626_v24  ;;  %7473 = vst [vmem:[#allocation57_spill] sm:$0xff] %v6657_v32 }
 0x18b   : > { %2110 = vmatpush1.bf16.msra.mxu1 %v6633_v34  ;;  %v6669_v34 = vld [vmem:[%s7360_s1 + $0x6d4] ss:$8 sps:$4 sm:$0xff]  }
 0x18c   : > { %2420 = vmatpush1.bf16.msra.mxu0 %v6638_v20  ;;  %2111 = vmatprep.subr.bf16.mxu1 %v6645_v40  ;;  %7474 = vst [vmem:[#allocation58_spill] sm:$0xff] %v6669_v34  ;;  %v6681_v40 = vld [vmem:[%s7360_s1 + $0x6d0] ss:$8 sps:$4 sm:$0xff]  }
 0x18d   : > { %2421 = vmatprep.subr.bf16.mxu0 %v6650_v16  ;;  %7475 = vst [vmem:[#allocation59_spill] sm:$0xff] %v6681_v40 }
 0x18f   : > { %2112 = vmatpush1.bf16.msra.mxu1 %v6657_v32  ;;  %v6693_v32 = vld [vmem:[%s7360_s1 + $0x6e4] ss:$8 sps:$4 sm:$0xff]  }
 0x190   : > { %2422 = vmatpush1.bf16.msra.mxu0 %v6662_v12  ;;  %2113 = vmatprep.subr.bf16.mxu1 %v6669_v34  ;;  %7476 = vst [vmem:[#allocation60_spill] sm:$0xff] %v6693_v32  ;;  %v6705_v34 = vld [vmem:[%s7360_s1 + $0x6e0] ss:$8 sps:$4 sm:$0xff]  }
 0x191   : > { %2423 = vmatprep.subr.bf16.mxu0 %v6674_v46 }
 0x193   : > { %2114 = vmatpush1.bf16.msra.mxu1 %v6681_v40  ;;  %v6718_v40 = vld [vmem:[%s7360_s1 + $0x6f4] ss:$8 sps:$4 sm:$0xff]  }
 0x194   : > { %2424 = vmatpush1.bf16.msra.mxu0 %v6686_v6  ;;  %2115 = vmatprep.subr.bf16.mxu1 %v6693_v32  ;;  %v6730_v32 = vld [vmem:[%s7360_s1 + $0x6f0] ss:$8 sps:$4 sm:$0xff]  }
 0x195   : > { %2425 = vmatprep.subr.bf16.mxu0 %v6698_v2 }
 0x197   : > { %2116 = vmatpush1.bf16.msra.mxu1 %v6705_v34 }
 0x198   : > { %2426 = vmatpush1.bf16.msra.mxu0 %v6710_v17  ;;  %2117 = vmatprep.subr.bf16.mxu1 %v6718_v40 }
 0x199   : > { %2427 = vmatprep.subr.bf16.mxu0 %v6723_v1 }
 0x19b   : > { %2118 = vmatpush1.bf16.msra.mxu1 %v6730_v32 }
 0x19c   : > { %2428 = vmatpush1.bf16.msra.mxu0 %v6735_v45  ;;  %2177 = vmatprep.subr.bf16.mxu1 %v5748_v48  ;;  %v7477_v48 = vld [vmem:[#allocation5_spill] sm:$0xff] }
 0x19d   : > { %2656 = vmatprep.subr.bf16.mxu0 %v6009_v44  ;;  %v7492_v44 = vld [vmem:[#allocation29_spill] sm:$0xff] }
 0x19e   : > { %2124 = vmatmul.mubr.bf16.vlgmr.msra.gmra.mrb[4].mxu1 %v6271_v55 }
 0x19f   : > { %2434 = vmatmul.mubr.bf16.vlgmr.msra.gmra.mrb[0].mxu0 %v6739_v57  ;;  %2178 = vmatpush1.bf16.msra.mxu1 %v5757_v50  ;;  %v7478_v50 = vld [vmem:[#allocation22_spill] sm:$0xff] }
 0x1a0   : > { %2657 = vmatpush1.bf16.msra.mxu0 %v6018_v60  ;;  %2179 = vmatprep.subr.bf16.mxu1 %v5762_v52  ;;  %v7479_v52 = vld [vmem:[#allocation6_spill] sm:$0xff]  ;;  %v7493_v60 = vld [vmem:[#allocation13_spill] sm:$0xff] }
 0x1a1   : > { %2658 = vmatprep.subr.bf16.mxu0 %v6027_v29  ;;  %4020 = vmatprep.mubr.msk.bf16.mxu1 %vm458_vm0, %v6029_v61  ;;  %v7494_v29 = vld [vmem:[#allocation30_spill] sm:$0xff] }
 0x1a2   : > { %4135 = vmatprep.mubr.msk.bf16.mxu0 %vm458_vm0, %v6428_v3  ;;  %v7495_v61 = vld [vmem:[#allocation14_spill] sm:$0xff] }
 0x1a3   : > { %2180 = vmatpush1.bf16.msra.mxu1 %v5773_v56  ;;  %v7480_v56 = vld [vmem:[#allocation23_spill] sm:$0xff] }
 0x1a4   : > { %2659 = vmatpush1.bf16.msra.mxu0 %v6040_v53  ;;  %2181 = vmatprep.subr.bf16.mxu1 %v5780_v58  ;;  %v7481_v58 = vld [vmem:[#allocation7_spill] sm:$0xff] }
 0x1a5   : > { %2660 = vmatprep.subr.bf16.mxu0 %v6049_v7  ;;  %v7496_v53 = vld [vmem:[#allocation31_spill] sm:$0xff] }
 0x1a6   : > { %v7497_v7 = vld [vmem:[#allocation15_spill] sm:$0xff] }
 0x1a7   : > { %2182 = vmatpush1.bf16.msra.mxu1 %v5793_v23  ;;  %v7482_v23 = vld [vmem:[#allocation24_spill] sm:$0xff] }
 0x1a8   : > { %2661 = vmatpush1.bf16.msra.mxu0 %v6062_v63  ;;  %2183 = vmatprep.subr.bf16.mxu1 %v5802_v25  ;;  %v7483_v25 = vld [vmem:[#allocation8_spill] sm:$0xff] }
 0x1a9   : > { %2662 = vmatprep.subr.bf16.mxu0 %v6071_v11  ;;  %v7498_v63 = vld [vmem:[#allocation32_spill] sm:$0xff] }
 0x1aa   : > { %v7499_v11 = vld [vmem:[#allocation16_spill] sm:$0xff] }
 0x1ab   : > { %2184 = vmatpush1.bf16.msra.mxu1 %v5815_v31  ;;  %v7484_v31 = vld [vmem:[#allocation25_spill] sm:$0xff] }
 0x1ac   : > { %2663 = vmatpush1.bf16.msra.mxu0 %v6080_v59  ;;  %2185 = vmatprep.subr.bf16.mxu1 %v5820_v33  ;;  %v7485_v33 = vld [vmem:[#allocation9_spill] sm:$0xff]  ;;  %v7491_v59 = vld [vmem:[#allocation12_spill] sm:$0xff] }
 0x1ad   : > { %2664 = vmatprep.subr.bf16.mxu0 %v6089_v51  ;;  %v7490_v51 = vld [vmem:[#allocation28_spill] sm:$0xff] }
 0x1af   : > { %2186 = vmatpush1.bf16.msra.mxu1 %v5833_v39  ;;  %v7486_v39 = vld [vmem:[#allocation26_spill] sm:$0xff] }
 0x1b0   : > { %2665 = vmatpush1.bf16.msra.mxu0 %v6098_v42  ;;  %2187 = vmatprep.subr.bf16.mxu1 %v5838_v41  ;;  %v7487_v41 = vld [vmem:[#allocation10_spill] sm:$0xff]  ;;  %v7489_v42 = vld [vmem:[#allocation11_spill] sm:$0xff] }
 0x1b1   : > { %2666 = vmatprep.subr.bf16.mxu0 %v6107_v35  ;;  %v7488_v35 = vld [vmem:[#allocation27_spill] sm:$0xff] }
 0x1b3   : > { %2188 = vmatpush1.bf16.msra.mxu1 %v7477_v48  ;;  %v7502_v48 = vld [vmem:[#allocation34_spill] sm:$0xff] }
 0x1b4   : > { %2667 = vmatpush1.bf16.msra.mxu0 %v7478_v50  ;;  %2189 = vmatprep.subr.bf16.mxu1 %v7479_v52  ;;  %v7503_v50 = vld [vmem:[#allocation18_spill] sm:$0xff]  ;;  %v4138_v52 = vld [vmem:[%s5268_s6 + $0x18] sm:$0x7c] }
 0x1b5   : > { %2668 = vmatprep.subr.bf16.mxu0 %v7480_v56  ;;  %v7504_v56 = vld [vmem:[#allocation19_spill] sm:$0xff] }
 0x1b7   : > { %2190 = vmatpush1.bf16.msra.mxu1 %v7481_v58  ;;  %v7505_v58 = vld [vmem:[#allocation20_spill] sm:$0xff] }
 0x1b8   : > { %2669 = vmatpush1.bf16.msra.mxu0 %v7482_v23  ;;  %2191 = vmatprep.subr.bf16.mxu1 %v7483_v25  ;;  %v6807_v23 = vld [vmem:[%s7360_s1 + $0x7e4] ss:$8 sps:$4 sm:$0xff]   ;;  %v2745_v25 = vpack.c.bf16 %v4138_v52, %v4138_v52  ;;  %v7530_v52 = vld [vmem:[#allocation60_spill] sm:$0xff] }
 0x1b9   : > { %2670 = vmatprep.subr.bf16.mxu0 %v7484_v31  ;;  %v7506_v31 = vld [vmem:[#allocation21_spill] sm:$0xff] }
 0x1bb   : > { %2192 = vmatpush1.bf16.msra.mxu1 %v7485_v33 }
 0x1bc   : > { %2671 = vmatpush1.bf16.msra.mxu0 %v7486_v39  ;;  %2193 = vmatprep.subr.bf16.mxu1 %v7487_v41  ;;  %v7508_v39 = vld [vmem:[#allocation38_spill] sm:$0xff]  ;;  %v7510_v41 = vld [vmem:[#allocation40_spill] sm:$0xff] }
 0x1bd   : > { %2672 = vmatprep.subr.bf16.mxu0 %v7488_v35  ;;  %v7511_v35 = vld [vmem:[#allocation41_spill] sm:$0xff] }
 0x1bf   : > { %2194 = vmatpush1.bf16.msra.mxu1 %v7489_v42  ;;  %v7514_v42 = vld [vmem:[#allocation44_spill] sm:$0xff] }
 0x1c0   : > { %2673 = vmatpush1.bf16.msra.mxu0 %v7490_v51  ;;  %2195 = vmatprep.subr.bf16.mxu1 %v7491_v59  ;;  %v7515_v51 = vld [vmem:[#allocation45_spill] sm:$0xff]  ;;  %v7516_v59 = vld [vmem:[#allocation46_spill] sm:$0xff] }
 0x1c1   : > { %2674 = vmatprep.subr.bf16.mxu0 %v7492_v44  ;;  %v7517_v44 = vld [vmem:[#allocation47_spill] sm:$0xff] }
 0x1c3   : > { %2196 = vmatpush1.bf16.msra.mxu1 %v7493_v60  ;;  %v7519_v60 = vld [vmem:[#allocation49_spill] sm:$0xff] }
 0x1c4   : > { %2675 = vmatpush1.bf16.msra.mxu0 %v7494_v29  ;;  %2197 = vmatprep.subr.bf16.mxu1 %v7495_v61  ;;  %v7520_v29 = vld [vmem:[#allocation50_spill] sm:$0xff]  ;;  %v7521_v61 = vld [vmem:[#allocation51_spill] sm:$0xff] }
 0x1c5   : > { %2676 = vmatprep.subr.bf16.mxu0 %v7496_v53  ;;  %v7522_v53 = vld [vmem:[#allocation52_spill] sm:$0xff] }
 0x1c7   : > { %2198 = vmatpush1.bf16.msra.mxu1 %v7497_v7  ;;  %v7523_v7 = vld [vmem:[#allocation53_spill] sm:$0xff] }
 0x1c8   : > { %2677 = vmatpush1.bf16.msra.mxu0 %v7498_v63  ;;  %2199 = vmatprep.subr.bf16.mxu1 %v7499_v11  ;;  %v7524_v63 = vld [vmem:[#allocation54_spill] sm:$0xff]  ;;  %v7525_v11 = vld [vmem:[#allocation55_spill] sm:$0xff] }
 0x1c9   : > { %2678 = vmatprep.subr.bf16.mxu0 %v7500_v5  ;;  %v7526_v5 = vld [vmem:[#allocation56_spill] sm:$0xff] }
 0x1cb   : > { %2200 = vmatpush1.bf16.msra.mxu1 %v7501_v43  ;;  %v7527_v43 = vld [vmem:[#allocation57_spill] sm:$0xff] }
 0x1cc   : > { %2679 = vmatpush1.bf16.msra.mxu0 %v7502_v48  ;;  %2201 = vmatprep.subr.bf16.mxu1 %v7503_v50  ;;  %v7528_v48 = vld [vmem:[#allocation58_spill] sm:$0xff]  ;;  %v7529_v50 = vld [vmem:[#allocation59_spill] sm:$0xff] }
 0x1cd   : > { %2680 = vmatprep.subr.bf16.mxu0 %v6234_v37  ;;  %v6814_v37 = vld [vmem:[%s7360_s1 + $0x7e0] ss:$8 sps:$4 sm:$0xff]  }
 0x1cf   : > { %2202 = vmatpush1.bf16.msra.mxu1 %v7504_v56  ;;  %v4823_v56 = vld [vmem:[%s7362_s3 + $0x68] sm:$0xff]  }
 0x1d0   : > { %2681 = vmatpush1.bf16.msra.mxu0 %v6247_v62  ;;  %2203 = vmatprep.subr.bf16.mxu1 %v7505_v58  ;;  %v6821_v62 = vld [vmem:[%s7360_s1 + $0x7f4] ss:$8 sps:$4 sm:$0xff]  }
 0x1d1   : > { %2682 = vmatprep.subr.bf16.mxu0 %v6256_v27  ;;  %v6823_v27 = vrot.slane %v2745_v25, 1 }
 0x1d3   : > { %2204 = vmatpush1.bf16.msra.mxu1 %v7506_v31 }
 0x1d4   : > { %2683 = vmatpush1.bf16.msra.mxu0 %v6265_v21  ;;  %2613 = vmatprep.subr.bf16.mxu1 %v6807_v23  ;;  %v6832_v21 = vld [vmem:[%s7360_s1 + $0x7f0] ss:$8 sps:$4 sm:$0xff]  }
 0x1d5   : > { %2754 = vmatprep.subr.bf16.mxu0 %v6400_v38  ;;  %v6839_v38 = vld [vmem:[%s7360_s1 + $0x804] ss:$8 sps:$4 sm:$0xff]  }
 0x1d6   : > { %2210 = vmatmul.mubr.bf16.vlgmr.msra.gmra.mrb[8].mxu1 %v6271_v55  ;;  %v6850_v55 = vld [vmem:[%s7360_s1 + $0x800] ss:$8 sps:$4 sm:$0xff]  }
 0x1d7   : > { %2689 = vmatmul.mubr.bf16.vlgmr.msra.gmra.mrb[4].mxu0 %v6739_v57  ;;  %2614 = vmatpush1.bf16.msra.mxu1 %v6814_v37 }
 0x1d8   : > { %2755 = vmatpush1.bf16.msra.mxu0 %v6414_v49  ;;  %2615 = vmatprep.subr.bf16.mxu1 %v6821_v62  ;;  %v6857_v49 = vld [vmem:[%s7360_s1 + $0x814] ss:$8 sps:$4 sm:$0xff]  }
 0x1d9   : > { %2756 = vmatprep.subr.bf16.mxu0 %v6426_v54  ;;  %4134 = vmatprep.mubr.msk.bf16.mxu1 %vm458_vm0, %v6428_v3  ;;  %v6864_v54 = vld [vmem:[%s7360_s1 + $0x810] ss:$8 sps:$4 sm:$0xff]  }
 0x1da   : > { %4139 = vmatprep.mubr.msk.bf16.mxu0 %vm458_vm0, %v6823_v27 }
 0x1db   : > { %2616 = vmatpush1.bf16.msra.mxu1 %v6832_v21 }
 0x1dc   : > { %2757 = vmatpush1.bf16.msra.mxu0 %v6442_v9  ;;  %2617 = vmatprep.subr.bf16.mxu1 %v6839_v38  ;;  %v6871_v9 = vld [vmem:[%s7360_s1 + $0x824] ss:$8 sps:$4 sm:$0xff]  }
 0x1dd   : > { %2758 = vmatprep.subr.bf16.mxu0 %v6454_v13  ;;  %v6878_v13 = vld [vmem:[%s7360_s1 + $0x820] ss:$8 sps:$4 sm:$0xff]  }
 0x1df   : > { %2618 = vmatpush1.bf16.msra.mxu1 %v6850_v55 }
 0x1e0   : > { %2759 = vmatpush1.bf16.msra.mxu0 %v6470_v15  ;;  %2619 = vmatprep.subr.bf16.mxu1 %v6857_v49  ;;  %v6885_v15 = vld [vmem:[%s7360_s1 + $0x834] ss:$8 sps:$4 sm:$0xff]  }
 0x1e1   : > { %2760 = vmatprep.subr.bf16.mxu0 %v6482_v0  ;;  %v6892_v0 = vld [vmem:[%s7360_s1 + $0x830] ss:$8 sps:$4 sm:$0xff]  }
 0x1e3   : > { %2620 = vmatpush1.bf16.msra.mxu1 %v6864_v54 }
 0x1e4   : > { %2761 = vmatpush1.bf16.msra.mxu0 %v6494_v4  ;;  %2621 = vmatprep.subr.bf16.mxu1 %v6871_v9  ;;  %v6899_v4 = vld [vmem:[%s7360_s1 + $0x844] ss:$8 sps:$4 sm:$0xff]  }
 0x1e5   : > { %2762 = vmatprep.subr.bf16.mxu0 %v6506_v8  ;;  %v6906_v8 = vld [vmem:[%s7360_s1 + $0x840] ss:$8 sps:$4 sm:$0xff]  }
 0x1e7   : > { %2622 = vmatpush1.bf16.msra.mxu1 %v6878_v13 }
 0x1e8   : > { %2763 = vmatpush1.bf16.msra.mxu0 %v6518_v10  ;;  %2623 = vmatprep.subr.bf16.mxu1 %v6885_v15  ;;  %v6913_v10 = vld [vmem:[%s7360_s1 + $0x854] ss:$8 sps:$4 sm:$0xff]  }
 0x1e9   : > { %2764 = vmatprep.subr.bf16.mxu0 %v6530_v14  ;;  %v6920_v14 = vld [vmem:[%s7360_s1 + $0x850] ss:$8 sps:$4 sm:$0xff]  }
 0x1eb   : > { %2624 = vmatpush1.bf16.msra.mxu1 %v6892_v0 }
 0x1ec   : > { %2765 = vmatpush1.bf16.msra.mxu0 %v6542_v18  ;;  %2625 = vmatprep.subr.bf16.mxu1 %v6899_v4  ;;  %v6927_v18 = vld [vmem:[%s7360_s1 + $0x864] ss:$8 sps:$4 sm:$0xff]  }
 0x1ed   : > { %2766 = vmatprep.subr.bf16.mxu0 %v6554_v22  ;;  %v6934_v22 = vld [vmem:[%s7360_s1 + $0x860] ss:$8 sps:$4 sm:$0xff]  }
 0x1ef   : > { %2626 = vmatpush1.bf16.msra.mxu1 %v6906_v8 }
 0x1f0   : > { %2767 = vmatpush1.bf16.msra.mxu0 %v6566_v26  ;;  %2627 = vmatprep.subr.bf16.mxu1 %v6913_v10  ;;  %v6941_v26 = vld [vmem:[%s7360_s1 + $0x874] ss:$8 sps:$4 sm:$0xff]  }
 0x1f1   : > { %2768 = vmatprep.subr.bf16.mxu0 %v6578_v30  ;;  %v6948_v30 = vld [vmem:[%s7360_s1 + $0x870] ss:$8 sps:$4 sm:$0xff]  }
 0x1f3   : > { %2628 = vmatpush1.bf16.msra.mxu1 %v6920_v14 }
 0x1f4   : > { %2769 = vmatpush1.bf16.msra.mxu0 %v6590_v19  ;;  %2629 = vmatprep.subr.bf16.mxu1 %v6927_v18  ;;  %v6955_v19 = vld [vmem:[%s7360_s1 + $0x884] ss:$8 sps:$4 sm:$0xff]  }
 0x1f5   : > { %2770 = vmatprep.subr.bf16.mxu0 %v6602_v47  ;;  %v4137_v47 = vld [vmem:[%s5268_s6 + $0x10] sm:$0x7c]  ;;  %s5015_s6 = smov [#allocation2]  }
 0x1f6   : > { %v2744_v33 = vpack.c.bf16 %v4137_v47, %v4137_v47  ;;  %s4954_s13 = sshll.u32 %s5015_s6, 4  ;;  %s4955_s13 = int_to_ptr.vmem [resolvable:$false] %s4954_s13 }
 0x1f7   : > { %2630 = vmatpush1.bf16.msra.mxu1 %v6934_v22  ;;  %s4956_s14 = scalar_lea.vmem %s4955_s13, 32  ;;  %p4957_p0 = scmp.lt.s32.totalorder %s7319_s8, %s4955_s13 }
 0x1f8   : > { %2771 = vmatpush1.bf16.msra.mxu0 %v6614_v28  ;;  %2631 = vmatprep.subr.bf16.mxu1 %v6941_v26  ;;  %v6962_v28 = vld [vmem:[%s7360_s1 + $0x880] ss:$8 sps:$4 sm:$0xff]   ;;  %p4958_p1 = scmp.lt.s32.totalorder %s4956_s14, %s4950_s12 }
 0x1f9   : > { %2772 = vmatprep.subr.bf16.mxu0 %v6626_v24  ;;  %v6969_v24 = vld [vmem:[%s7360_s1 + $0x894] ss:$8 sps:$4 sm:$0xff]  }
 0x1fa   : > { %p4959_p2 = por %p4958_p1, %p4957_p0 }
 0x1fb   : > { %2632 = vmatpush1.bf16.msra.mxu1 %v6948_v30 }
 0x1fc   : > { %2773 = vmatpush1.bf16.msra.mxu0 %v6638_v20  ;;  %2633 = vmatprep.subr.bf16.mxu1 %v6955_v19  ;;  %v6976_v20 = vld [vmem:[%s7360_s1 + $0x890] ss:$8 sps:$4 sm:$0xff]   ;;  %p4960_p3 = pnand %p4959_p2, %p4953_p13 }
 0x1fd   : > { %2774 = vmatprep.subr.bf16.mxu0 %v6650_v16  ;;  %v6983_v16 = vld [vmem:[%s7360_s1 + $0x8a4] ss:$8 sps:$4 sm:$0xff]  }
 0x1ff   : > { %2634 = vmatpush1.bf16.msra.mxu1 %v6962_v28 }
 0x200   : > { %2775 = vmatpush1.bf16.msra.mxu0 %v6662_v12  ;;  %2635 = vmatprep.subr.bf16.mxu1 %v6969_v24  ;;  %v6990_v12 = vld [vmem:[%s7360_s1 + $0x8a0] ss:$8 sps:$4 sm:$0xff]  }
 0x201   : > { %2776 = vmatprep.subr.bf16.mxu0 %v6674_v46  ;;  %v6998_v46 = vld [vmem:[%s7360_s1 + $0x8b4] ss:$8 sps:$4 sm:$0xff]  }
 0x203   : > { %2636 = vmatpush1.bf16.msra.mxu1 %v6976_v20 }
 0x204   : > { %2777 = vmatpush1.bf16.msra.mxu0 %v6686_v6  ;;  %2637 = vmatprep.subr.bf16.mxu1 %v6983_v16  ;;  %v7005_v6 = vld [vmem:[%s7360_s1 + $0x8b0] ss:$8 sps:$4 sm:$0xff]  }
 0x205   : > { %2778 = vmatprep.subr.bf16.mxu0 %v6698_v2  ;;  %v7009_v2 = vrot.slane %v2744_v33, 1 }
 0x207   : > { %2638 = vmatpush1.bf16.msra.mxu1 %v6990_v12 }
 0x208   : > { %2779 = vmatpush1.bf16.msra.mxu0 %v6710_v17  ;;  %2639 = vmatprep.subr.bf16.mxu1 %v6998_v46  ;;  %v7507_v17 = vld [vmem:[#allocation37_spill] sm:$0xff] }
 0x209   : > { %2780 = vmatprep.subr.bf16.mxu0 %v6723_v1  ;;  %v7509_v1 = vld [vmem:[#allocation39_spill] sm:$0xff] }
 0x20b   : > { %2640 = vmatpush1.bf16.msra.mxu1 %v7005_v6 }
 0x20c   : > { %2781 = vmatpush1.bf16.msra.mxu0 %v6735_v45  ;;  %2699 = vmatprep.subr.bf16.mxu1 %v6395_v36  ;;  %v7512_v45 = vld [vmem:[#allocation42_spill] sm:$0xff]  ;;  %v7513_v36 = vld [vmem:[#allocation43_spill] sm:$0xff] }
 0x20e   : > { %2646 = vmatmul.mubr.bf16.vlgmr.msra.gmra.mrb[4].mxu1 %v6739_v57 }
 0x20f   : > { %2787 = vmatmul.mubr.bf16.vlgmr.msra.gmra.mrb[4].mxu0 %v7009_v2  ;;  %2700 = vmatpush1.bf16.msra.mxu1 %v7507_v17 }
 0x210   : > { %4136 = vmatprep.mubr.msk.bf16.mxu1 %vm458_vm0, %v6428_v3  ;;  %2701 = vmatprep.subr.bf16.mxu1 %v7508_v39  ;;  %v7518_v3 = vld [vmem:[#allocation48_spill] sm:$0xff] }
 0x213   : > { %2702 = vmatpush1.bf16.msra.mxu1 %v7509_v1  ;;  %v2846_v1 = vld [vmem:[%s7361_s2] sm:$0x3] }
 0x214   : > { %2703 = vmatprep.subr.bf16.mxu1 %v7510_v41 }
 0x217   : > { %2704 = vmatpush1.bf16.msra.mxu1 %v7511_v35 }
 0x218   : > { %2705 = vmatprep.subr.bf16.mxu1 %v7512_v45 }
 0x21b   : > { %2706 = vmatpush1.bf16.msra.mxu1 %v7513_v36 }
 0x21c   : > { %2707 = vmatprep.subr.bf16.mxu1 %v7514_v42 }
 0x21f   : > { %2708 = vmatpush1.bf16.msra.mxu1 %v7515_v51 }
 0x220   : > { %2709 = vmatprep.subr.bf16.mxu1 %v7516_v59 }
 0x223   : > { %2710 = vmatpush1.bf16.msra.mxu1 %v7517_v44 }
 0x224   : > { %2711 = vmatprep.subr.bf16.mxu1 %v7518_v3 }
 0x227   : > { %2712 = vmatpush1.bf16.msra.mxu1 %v7519_v60 }
 0x228   : > { %2713 = vmatprep.subr.bf16.mxu1 %v7520_v29 }
 0x22b   : > { %2714 = vmatpush1.bf16.msra.mxu1 %v7521_v61 }
 0x22c   : > { %2715 = vmatprep.subr.bf16.mxu1 %v7522_v53 }
 0x22f   : > { %2716 = vmatpush1.bf16.msra.mxu1 %v7523_v7 }
 0x230   : > { %2717 = vmatprep.subr.bf16.mxu1 %v7524_v63 }
 0x233   : > { %2718 = vmatpush1.bf16.msra.mxu1 %v7525_v11 }
 0x234   : > { %2719 = vmatprep.subr.bf16.mxu1 %v7526_v5 }
 0x237   : > { %2720 = vmatpush1.bf16.msra.mxu1 %v7527_v43 }
 0x238   : > { %2721 = vmatprep.subr.bf16.mxu1 %v7528_v48  ;;  %v4836_v48 = vld [vmem:[%s7362_s3 + $0xa0] sm:$0xff]  }
 0x23b   : > { %2722 = vmatpush1.bf16.msra.mxu1 %v7529_v50 }
 0x23c   : > { %2723 = vmatprep.subr.bf16.mxu1 %v7530_v52 }
 0x23f   : > { %2724 = vmatpush1.bf16.msra.mxu1 %v6705_v34  ;;  %v4819_v34 = vld [vmem:[%s7362_s3 + $0x58] sm:$0xff]  }
 0x240   : > { %2725 = vmatprep.subr.bf16.mxu1 %v6718_v40  ;;  %v4821_v40 = vld [vmem:[%s7362_s3 + $0x60] sm:$0xff]  }
 0x243   : > { %2726 = vmatpush1.bf16.msra.mxu1 %v6730_v32  ;;  %v5014_v32 = vmov 0  }
 0x244   : > { %2797 = vmatprep.subr.bf16.mxu1 %v6807_v23  ;;  %3080 = vmatprep.subr.bf16.mxu0 %v5014_v32  ;;  %v7531_v23 = vld [vmem:[#allocation35_spill] sm:$0xff] }
 0x246   : > { %2732 = vmatmul.mubr.bf16.vlgmr.msra.gmra.mrb[8].mxu1 %v6739_v57  ;;  %v4817_v57 = vld [vmem:[%s7362_s3 + $0x50] sm:$0xff]  }
 0x247   : > { %2798 = vmatpush1.bf16.msra.mxu1 %v6814_v37  ;;  %4140 = vmatprep.mubr.msk.bf16.mxu1 %vm458_vm0, %v6823_v27  ;;  %v4825_v37 = vld [vmem:[%s7362_s3 + $0x70] sm:$0xff]  }
 0x248   : > { %2799 = vmatprep.subr.bf16.mxu1 %v6821_v62  ;;  %3081 = vmatpush1.bf16.msra.mxu0 %v4817_v57  ;;  %v7532_v62 = vld [vmem:[#allocation36_spill] sm:$0xff]  ;;  %v4837_v57 = vld [vmem:[%s7362_s3 + $0xa8] sm:$0xff]  }
 0x249   : > { %3082 = vmatprep.subr.bf16.mxu0 %v5014_v32 }
 0x24b   : > { %2800 = vmatpush1.bf16.msra.mxu1 %v6832_v21 }
 0x24c   : > { %2801 = vmatprep.subr.bf16.mxu1 %v6839_v38  ;;  %3083 = vmatpush1.bf16.msra.mxu0 %v4819_v34  ;;  %v4838_v34 = vld [vmem:[%s7362_s3 + $0xb0] sm:$0xff]  }
 0x24d   : > { %3084 = vmatprep.subr.bf16.mxu0 %v5014_v32 }
 0x24f   : > { %2802 = vmatpush1.bf16.msra.mxu1 %v6850_v55  ;;  %v4827_v55 = vld [vmem:[%s7362_s3 + $0x78] sm:$0xff]  }
 0x250   : > { %2803 = vmatprep.subr.bf16.mxu1 %v6857_v49  ;;  %3085 = vmatpush1.bf16.msra.mxu0 %v4821_v40  ;;  %v4829_v49 = vld [vmem:[%s7362_s3 + $0x80] sm:$0xff]   ;;  %v4839_v40 = vld [vmem:[%s7362_s3 + $0xb8] sm:$0xff]  }
 0x251   : > { %3086 = vmatprep.subr.bf16.mxu0 %v5014_v32 }
 0x253   : > { %2804 = vmatpush1.bf16.msra.mxu1 %v6864_v54  ;;  %v4816_v54 = vld [vmem:[%s7362_s3] sm:$0xff]  }
 0x254   : > { %2805 = vmatprep.subr.bf16.mxu1 %v6871_v9  ;;  %3087 = vmatpush1.bf16.msra.mxu0 %v4823_v56  ;;  %v4818_v9 = vld [vmem:[%s7362_s3 + $0x8] sm:$0xff]   ;;  %v4840_v56 = vld [vmem:[%s7362_s3 + $0xc0] sm:$0xff]  }
 0x255   : > { %3088 = vmatprep.subr.bf16.mxu0 %v5014_v32 }
 0x257   : > { %2806 = vmatpush1.bf16.msra.mxu1 %v6878_v13  ;;  %v4820_v13 = vld [vmem:[%s7362_s3 + $0x10] sm:$0xff]  }
 0x258   : > { %2807 = vmatprep.subr.bf16.mxu1 %v6885_v15  ;;  %3089 = vmatpush1.bf16.msra.mxu0 %v4825_v37  ;;  %v4822_v15 = vld [vmem:[%s7362_s3 + $0x18] sm:$0xff]   ;;  %v4845_v37 = vld [vmem:[%s7362_s3 + $0xe8] sm:$0xff]  }
 0x259   : > { %3090 = vmatprep.subr.bf16.mxu0 %v5014_v32 }
 0x25b   : > { %2808 = vmatpush1.bf16.msra.mxu1 %v6892_v0  ;;  %v4824_v0 = vld [vmem:[%s7362_s3 + $0x20] sm:$0xff]  }
 0x25c   : > { %2809 = vmatprep.subr.bf16.mxu1 %v6899_v4  ;;  %3091 = vmatpush1.bf16.msra.mxu0 %v4827_v55  ;;  %v4826_v4 = vld [vmem:[%s7362_s3 + $0x28] sm:$0xff]   ;;  %v4848_v55 = vld [vmem:[%s7362_s3 + $0x100] sm:$0xff]  }
 0x25d   : > { %3092 = vmatprep.subr.bf16.mxu0 %v5014_v32 }
 0x25f   : > { %2810 = vmatpush1.bf16.msra.mxu1 %v6906_v8  ;;  %v4828_v8 = vld [vmem:[%s7362_s3 + $0x30] sm:$0xff]  }
 0x260   : > { %2811 = vmatprep.subr.bf16.mxu1 %v6913_v10  ;;  %3093 = vmatpush1.bf16.msra.mxu0 %v4829_v49  ;;  %v4830_v10 = vld [vmem:[%s7362_s3 + $0x38] sm:$0xff]   ;;  %v4849_v49 = vld [vmem:[%s7362_s3 + $0x108] sm:$0xff]  }
 0x261   : > { %3094 = vmatprep.subr.bf16.mxu0 %v5014_v32 }
 0x263   : > { %2812 = vmatpush1.bf16.msra.mxu1 %v6920_v14  ;;  %v4831_v14 = vld [vmem:[%s7362_s3 + $0x88] sm:$0xff]  }
 0x264   : > { %2813 = vmatprep.subr.bf16.mxu1 %v6927_v18  ;;  %3095 = vmatpush1.bf16.msra.mxu0 %v4831_v14  ;;  %v4832_v18 = vld [vmem:[%s7362_s3 + $0x40] sm:$0xff]  }
 0x265   : > { %3096 = vmatprep.subr.bf16.mxu0 %v5014_v32 }
 0x267   : > { %2814 = vmatpush1.bf16.msra.mxu1 %v6934_v22  ;;  %v4833_v22 = vld [vmem:[%s7362_s3 + $0x90] sm:$0xff]  }
 0x268   : > { %2815 = vmatprep.subr.bf16.mxu1 %v6941_v26  ;;  %3097 = vmatpush1.bf16.msra.mxu0 %v4833_v22  ;;  %v4834_v26 = vld [vmem:[%s7362_s3 + $0x48] sm:$0xff]   ;;  %v4858_v22 = vld [vmem:[%s7362_s3 + $0x150] sm:$0xff]  }
 0x269   : > { %3098 = vmatprep.subr.bf16.mxu0 %v5014_v32 }
 0x26b   : > { %2816 = vmatpush1.bf16.msra.mxu1 %v6948_v30  ;;  %v4835_v30 = vld [vmem:[%s7362_s3 + $0x98] sm:$0xff]  }
 0x26c   : > { %2817 = vmatprep.subr.bf16.mxu1 %v6955_v19  ;;  %3099 = vmatpush1.bf16.msra.mxu0 %v4835_v30  ;;  %v4860_v30 = vld [vmem:[%s7362_s3 + $0x160] sm:$0xff]  }
 0x26d   : > { %3210 = vmatprep.subr.bf16.mxu0 %v5014_v32 }
 0x26f   : > { %2818 = vmatpush1.bf16.msra.mxu1 %v6962_v28 }
 0x270   : > { %2819 = vmatprep.subr.bf16.mxu1 %v6969_v24 }
 0x272   : > { %v2435_v58 = vpop.f32.mrb[0].mxu0 }
 0x273   : > { %v7088_v25 = vadd.f32 %v2435_v58, %v7531_v23  ;;  %v2437_v31 = vpop.f32.mrb[1].mxu0  ;;  %2820 = vmatpush1.bf16.msra.mxu1 %v6976_v20  ;;  %v4841_v58 = vld [vmem:[%s7362_s3 + $0xc8] sm:$0xff]   ;;  %v4842_v23 = vld [vmem:[%s7362_s3 + $0xd0] sm:$0xff]  }
 0x274   : > { %v7094_v27 = vadd.f32 %v2437_v31, %v7532_v62  ;;  %v2439_v21 = vpop.f32.mrb[2].mxu0  ;;  %2821 = vmatprep.subr.bf16.mxu1 %v6983_v16  ;;  %v4844_v31 = vld [vmem:[%s7362_s3 + $0xe0] sm:$0xff]   ;;  %v4846_v62 = vld [vmem:[%s7362_s3 + $0xf0] sm:$0xff]  }
 0x275   : > { %v2440_v38 = vpop.f32.mrb[3].mxu0 }
 0x276   : > { %v4847_v38 = vld [vmem:[%s7362_s3 + $0xf8] sm:$0xff]  }
 0x277   : > { %2822 = vmatpush1.bf16.msra.mxu1 %v6990_v12 }
 0x278   : > { %2823 = vmatprep.subr.bf16.mxu1 %v6998_v46 }
 0x27b   : > { %2824 = vmatpush1.bf16.msra.mxu1 %v7005_v6 }
 0x27c   : > { %2949 = vmatprep.subr.bf16.mxu1 %v5014_v32 }
 0x27e   : > { %2830 = vmatmul.mubr.bf16.vlgmr.msra.gmra.mrb[8].mxu1 %v7009_v2  ;;  %v2848_v2 = vlaneseq }
 0x27f   : > { %2950 = vmatpush1.bf16.msra.mxu1 %v4816_v54  ;;  %v4850_v54 = vld [vmem:[%s7362_s3 + $0x110] sm:$0xff]  }
 0x280   : > { %2951 = vmatprep.subr.bf16.mxu1 %v5014_v32  ;;  %v2849_v17 = vshrl.u32 %v2848_v2, 7  ;;  %v2864_v2 = vld [vmem:[%s7363_s4] sm:$0x1] }
 0x282   : > { %v2850_v39 = vsub.s32 0, %v2849_v17  ;;  %v2854_v41 = vsub.s32 1, %v2849_v17 }
 0x283   : > { %2952 = vmatpush1.bf16.msra.mxu1 %v4818_v9  ;;  %v4851_v9 = vld [vmem:[%s7362_s3 + $0x118] sm:$0xff]  }
 0x284   : > { %2953 = vmatprep.subr.bf16.mxu1 %v5014_v32  ;;  %v2851_v36 = vrot.slane %v2846_v1, %v2850_v39  ;;  %v2855_v59 = vrot.slane %v2846_v1, %v2854_v41 }
 0x287   : > { %2954 = vmatpush1.bf16.msra.mxu1 %v4820_v13  ;;  %v4852_v13 = vld [vmem:[%s7362_s3 + $0x120] sm:$0xff]  }
 0x288   : > { %2955 = vmatprep.subr.bf16.mxu1 %v5014_v32 }
 0x28b   : > { %2956 = vmatpush1.bf16.msra.mxu1 %v4822_v15  ;;  %v4853_v15 = vld [vmem:[%s7362_s3 + $0x128] sm:$0xff]  }
 0x28c   : > { %2957 = vmatprep.subr.bf16.mxu1 %v5014_v32 }
 0x28f   : > { %2958 = vmatpush1.bf16.msra.mxu1 %v4824_v0  ;;  %v4854_v0 = vld [vmem:[%s7362_s3 + $0x130] sm:$0xff]  }
 0x290   : > { %2959 = vmatprep.subr.bf16.mxu1 %v5014_v32 }
 0x293   : > { %2960 = vmatpush1.bf16.msra.mxu1 %v4826_v4  ;;  %v4855_v4 = vld [vmem:[%s7362_s3 + $0x138] sm:$0xff]  }
 0x294   : > { %2961 = vmatprep.subr.bf16.mxu1 %v5014_v32 }
 0x297   : > { %2962 = vmatpush1.bf16.msra.mxu1 %v4828_v8  ;;  %v4856_v8 = vld [vmem:[%s7362_s3 + $0x140] sm:$0xff]  }
 0x298   : > { %2963 = vmatprep.subr.bf16.mxu1 %v5014_v32 }
 0x29b   : > { %2964 = vmatpush1.bf16.msra.mxu1 %v4830_v10 }
 0x29c   : > { %2965 = vmatprep.subr.bf16.mxu1 %v5014_v32 }
 0x29f   : > { %2966 = vmatpush1.bf16.msra.mxu1 %v4832_v18  ;;  %v4857_v18 = vld [vmem:[%s7362_s3 + $0x148] sm:$0xff]  }
 0x2a0   : > { %2967 = vmatprep.subr.bf16.mxu1 %v5014_v32 }
 0x2a3   : > { %2968 = vmatpush1.bf16.msra.mxu1 %v4834_v26  ;;  %v4859_v26 = vld [vmem:[%s7362_s3 + $0x158] sm:$0xff]  }
 0x2e1   : > { %v2647_v19 = vpop.f32.mrb[4].mxu1 }
 0x2e2   : > { %v2788_v28 = vpop.f32.mrb[4].mxu0  ;;  %v2840_v24 = vmax.f32 %v7088_v25, %v2647_v19  ;;  %v2649_v20 = vpop.f32.mrb[5].mxu1  ;;  %v4843_v25 = vld [vmem:[%s7362_s3 + $0xd8] sm:$0xff]   ;;  %v4861_v19 = vld [vmem:[%s7362_s3 + $0x168] sm:$0xff]  }
 0x2e3   : > { %v2790_v16 = vpop.f32.mrb[5].mxu0  ;;  %v2841_v12 = vmax.f32 %v7094_v27, %v2649_v20  ;;  %v2651_v47 = vpop.f32.mrb[6].mxu1  ;;  %v4864_v20 = vld [vmem:[%s7362_s3 + $0x180] sm:$0xff]  }
 0x2e4   : > { %v2792_v46 = vpop.f32.mrb[6].mxu0  ;;  %v2652_v33 = vpop.f32.mrb[7].mxu1 }
 0x2e5   : > { %v2793_v6 = vpop.f32.mrb[7].mxu0 }
 0x351   : > { %v2831_v35 = vpop.f32.mrb[8].mxu1 }
 0x352   : > { %v2842_v45 = vmax.f32 %v2788_v28, %v2831_v35  ;;  %v2833_v42 = vpop.f32.mrb[9].mxu1  ;;  %v4862_v28 = vld [vmem:[%s7362_s3 + $0x170] sm:$0xff]  }
 0x353   : > { %v2843_v51 = vmax.f32 %v2790_v16, %v2833_v42  ;;  %v2835_v44 = vpop.f32.mrb[10].mxu1  ;;  %v4865_v16 = vld [vmem:[%s7362_s3 + $0x188] sm:$0xff]  }
 0x354   : > { %v2844_v3 = vmax.f32 %v2840_v24, %v2842_v45  ;;  %v2836_v60 = vpop.f32.mrb[11].mxu1  ;;  %v4863_v24 = vld [vmem:[%s7362_s3 + $0x178] sm:$0xff]  }
 0x355   : > { %v2845_v29 = vmax.f32 %v2841_v12, %v2843_v51 }
 0x356   : > { %v2858_v61 = vadd.f32 %v2851_v36, %v2844_v3 }
 0x357   : > { %v2859_v53 = vadd.f32 %v2855_v59, %v2845_v29 }
 0x358   : > { %v2860_v7 = vmax.f32 %v2858_v61, 0.0 }
 0x359   : > { %v2861_v63 = vmax.f32 %v2859_v53, 0.0 }
 0x35a   : > { %v7169_v11 = vpack.c.bf16 %v2860_v7, %v2860_v7 }
 0x35b   : > { %v7171_v5 = vpack.c.bf16 %v2861_v63, %v2861_v63 }
 0x35c   : > { %v3012_v50 = vshrl.u32 %v7169_v11, 16  ;;  %v3144_v27 = vrot.slane %v7169_v11, 1  ;;  %v3400_v12 = vrot.slane %v7169_v11, 2 }
 0x35d   : > { %4151 = vmatprep.mubr.msk.bf16.mxu1 %vm2945_vm1, %v7171_v5  ;;  %v3014_v43 = vshrl.u32 %v7171_v5, 16  ;;  %v3145_v52 = vrot.slane %v7171_v5, 1  ;;  %v3401_v14 = vrot.slane %v7171_v5, 2 }
 0x35e   : > { %2982 = vmatmul.mubr.bf16.vlgmr.msra.gmra.mrb[12].mxu1 %v7169_v11  ;;  %v3272_v10 = vrot.slane %v3012_v50, 1 }
 0x35f   : > { %4182 = vmatprep.mubr.msk.bf16.mxu0 %vm2945_vm1, %v3014_v43  ;;  %v3273_v21 = vrot.slane %v3014_v43, 1 }
 0x360   : > { %3113 = vmatmul.mubr.bf16.vlgmr.msra.gmra.mrb[8].mxu0 %v3012_v50 }
 0x361   : > { %3211 = vmatpush1.bf16.msra.mxu0 %v4836_v48  ;;  %4213 = vmatprep.mubr.msk.bf16.mxu0 %vm2945_vm1, %v3145_v52 }
 0x362   : > { %3212 = vmatprep.subr.bf16.mxu0 %v5014_v32 }
 0x365   : > { %3213 = vmatpush1.bf16.msra.mxu0 %v4837_v57 }
 0x366   : > { %3214 = vmatprep.subr.bf16.mxu0 %v5014_v32 }
 0x369   : > { %3215 = vmatpush1.bf16.msra.mxu0 %v4838_v34 }
 0x36a   : > { %3216 = vmatprep.subr.bf16.mxu0 %v5014_v32 }
 0x36d   : > { %3217 = vmatpush1.bf16.msra.mxu0 %v4839_v40 }
 0x36e   : > { %3218 = vmatprep.subr.bf16.mxu0 %v5014_v32 }
 0x371   : > { %3219 = vmatpush1.bf16.msra.mxu0 %v4840_v56 }
 0x372   : > { %3220 = vmatprep.subr.bf16.mxu0 %v5014_v32 }
 0x375   : > { %3221 = vmatpush1.bf16.msra.mxu0 %v4841_v58 }
 0x376   : > { %3222 = vmatprep.subr.bf16.mxu0 %v5014_v32 }
 0x379   : > { %3223 = vmatpush1.bf16.msra.mxu0 %v4842_v23 }
 0x37a   : > { %3224 = vmatprep.subr.bf16.mxu0 %v5014_v32 }
 0x37d   : > { %3225 = vmatpush1.bf16.msra.mxu0 %v4843_v25 }
 0x37e   : > { %3226 = vmatprep.subr.bf16.mxu0 %v5014_v32 }
 0x381   : > { %3227 = vmatpush1.bf16.msra.mxu0 %v4844_v31 }
 0x382   : > { %3228 = vmatprep.subr.bf16.mxu0 %v5014_v32 }
 0x385   : > { %3229 = vmatpush1.bf16.msra.mxu0 %v4845_v37 }
 0x386   : > { %3338 = vmatprep.subr.bf16.mxu0 %v5014_v32 }
 0x388   : > { %3243 = vmatmul.mubr.bf16.vlgmr.msra.gmra.mrb[8].mxu0 %v3144_v27 }
 0x389   : > { %3339 = vmatpush1.bf16.msra.mxu0 %v4846_v62  ;;  %4244 = vmatprep.mubr.msk.bf16.mxu0 %vm2945_vm1, %v3273_v21 }
 0x38a   : > { %3340 = vmatprep.subr.bf16.mxu0 %v5014_v32 }
 0x38d   : > { %3341 = vmatpush1.bf16.msra.mxu0 %v4847_v38 }
 0x38e   : > { %3342 = vmatprep.subr.bf16.mxu0 %v5014_v32 }
 0x391   : > { %3343 = vmatpush1.bf16.msra.mxu0 %v4848_v55 }
 0x392   : > { %3344 = vmatprep.subr.bf16.mxu0 %v5014_v32 }
 0x395   : > { %3345 = vmatpush1.bf16.msra.mxu0 %v4849_v49 }
 0x396   : > { %3346 = vmatprep.subr.bf16.mxu0 %v5014_v32 }
 0x399   : > { %3347 = vmatpush1.bf16.msra.mxu0 %v4850_v54 }
 0x39a   : > { %3348 = vmatprep.subr.bf16.mxu0 %v5014_v32 }
 0x39d   : > { %3349 = vmatpush1.bf16.msra.mxu0 %v4851_v9 }
 0x39e   : > { %3350 = vmatprep.subr.bf16.mxu0 %v5014_v32 }
 0x3a1   : > { %3351 = vmatpush1.bf16.msra.mxu0 %v4852_v13 }
 0x3a2   : > { %3352 = vmatprep.subr.bf16.mxu0 %v5014_v32 }
 0x3a5   : > { %3353 = vmatpush1.bf16.msra.mxu0 %v4853_v15 }
 0x3a6   : > { %3354 = vmatprep.subr.bf16.mxu0 %v5014_v32 }
 0x3a9   : > { %3355 = vmatpush1.bf16.msra.mxu0 %v4854_v0 }
 0x3aa   : > { %3356 = vmatprep.subr.bf16.mxu0 %v5014_v32 }
 0x3ad   : > { %3357 = vmatpush1.bf16.msra.mxu0 %v4855_v4 }
 0x3ae   : > { %3466 = vmatprep.subr.bf16.mxu0 %v5014_v32 }
 0x3b0   : > { %3371 = vmatmul.mubr.bf16.vlgmr.msra.gmra.mrb[8].mxu0 %v3272_v10 }
 0x3b1   : > { %3467 = vmatpush1.bf16.msra.mxu0 %v4856_v8  ;;  %4275 = vmatprep.mubr.msk.bf16.mxu0 %vm2945_vm1, %v3401_v14 }
 0x3b2   : > { %3468 = vmatprep.subr.bf16.mxu0 %v5014_v32 }
 0x3b5   : > { %3469 = vmatpush1.bf16.msra.mxu0 %v4857_v18 }
 0x3b6   : > { %3470 = vmatprep.subr.bf16.mxu0 %v5014_v32 }
 0x3b9   : > { %3471 = vmatpush1.bf16.msra.mxu0 %v4858_v22 }
 0x3ba   : > { %3472 = vmatprep.subr.bf16.mxu0 %v5014_v32 }
 0x3bd   : > { %3473 = vmatpush1.bf16.msra.mxu0 %v4859_v26 }
 0x3be   : > { %3474 = vmatprep.subr.bf16.mxu0 %v5014_v32 }
 0x3c1   : > { %3475 = vmatpush1.bf16.msra.mxu0 %v4860_v30 }
 0x3c2   : > { %3476 = vmatprep.subr.bf16.mxu0 %v5014_v32 }
 0x3c5   : > { %3477 = vmatpush1.bf16.msra.mxu0 %v4861_v19 }
 0x3c6   : > { %3478 = vmatprep.subr.bf16.mxu0 %v5014_v32 }
 0x3c9   : > { %3479 = vmatpush1.bf16.msra.mxu0 %v4862_v28 }
 0x3ca   : > { %3480 = vmatprep.subr.bf16.mxu0 %v5014_v32 }
 0x3cd   : > { %3481 = vmatpush1.bf16.msra.mxu0 %v4863_v24 }
 0x3ce   : > { %3482 = vmatprep.subr.bf16.mxu0 %v5014_v32 }
 0x3d1   : > { %3483 = vmatpush1.bf16.msra.mxu0 %v4864_v20 }
 0x3d2   : > { %3484 = vmatprep.subr.bf16.mxu0 %v5014_v32 }
 0x3d5   : > { %3485 = vmatpush1.bf16.msra.mxu0 %v4865_v16 }
 0x3d8   : > { %3499 = vmatmul.mubr.bf16.vlgmr.msra.gmra.mrb[8].mxu0 %v3400_v12 }
 0x431   : > { %v2983_v47 = vpop.f32.mrb[12].mxu1 }
 0x432   : > { %v2985_v46 = vpop.f32.mrb[13].mxu1  ;;  %v2989_v17 = vadd.f32 %v2983_v47, %v2864_v2 }
 0x433   : > { %v2986_v33 = vpop.f32.mrb[14].mxu1 }
 0x434   : > { %v2987_v6 = vpop.f32.mrb[15].mxu1 }
 0x4ab   : > { %v3500_v39 = vpop.f32.mrb[8].mxu0 }
 0x4ac   : > { %v4283_v32 = vadd.f32 %v3500_v39, %v2989_v17  ;;  %v3502_v1 = vpop.f32.mrb[9].mxu0 }
 0x4ad   : > { %v3503_v41 = vpop.f32.mrb[10].mxu0 }
 0x4ae   : > { %v3504_v35 = vpop.f32.mrb[11].mxu0  ;;  %3508 = vst.msk [vmem:[%s216_s7] sm:$0x1] %vm3507_vm2, %v4283_v32 }
 0x4af   : > { %4963 = shalt.err (!%p4960_p3)
}
 0x4b0   : > { %s4964_s15 = scalar_lea.hbm %s7317_s11, 16  ;;  %s4968_s23 = scalar_lea.hbm %s7364_s5, 32 }
 0x4b1   : > { %p4965_p4 = scmp.ne.s32.totalorder %s7317_s11, %s4964_s15  ;;  %p4969_p9 = scmp.lt.u32.totalorder %s7317_s11, %s7364_s5 }
 0x4b2   : > { %p4970_p10 = scmp.lt.u32.totalorder %s4968_s23, %s4964_s15  ;;  %p4972_p12 = scmp.lt.u32.totalorder %s4964_s15, %s7317_s11 }
 0x4b3   : > { %p4966_p7 = pnand %p4965_p4, %p5084_p5 }
 0x4b4   : > { %p4971_p11 = por %p4970_p10, %p4969_p9 }
 0x4b5   : > { %p4967_p8 = pneg %p4966_p7 }
 0x4b6   : > { %p4973_p13 = por %p4972_p12, %p4971_p11 }
 0x4b8   : > { %p4974_p0 = pnand %p4973_p13, %p4967_p8 }
 0x4ba   : > { %4977 = shalt.err (!%p4974_p0)
}
 0x4bb   : > { %4356 = dma.vmem_to_hbm [thread:$0]  (%p5084_p5), %s7319_s8, 16, %s7317_s11, %s3510_s22  }
 0x4bc PF: > { %p4362_p1 = scmp.ge.s32.totalorder %s5012_s21, 2  ;;  %s3534_s25 = sand.u32 1, %s5000_s18  }
 0x4bd   : > { %s3535_s7 = scalar_lea.sflag [#allocation3], %s3534_s25 }
 0x4be   : > { %p4359_p2 = pnand %p4362_p1, %p5088_p6 }
 0x4c0   : > { %4995 = dma.done.wait (!%p4359_p2), %s3535_s7, 16  }
 0x4c1   : > { %4997 = vsyncadd (!%p4359_p2), %s3535_s7, 4294967280  ;;  %p15_p3 = scmp.ge.s32.totalorder %s5071_s24, 4   ;;  %s7533_s18 = smov %s5004_s19 }
 0x4c2   : > { %s7534_s19 = smov %s5008_s20  ;;  %s7535_s20 = smov %s5082_s27 }
 0x4c3   : > { %s7536_s21 = smov %s5071_s24  ;;  %17 = sbr.rel (!%p15_p3) target bundleno = 3 (0x3), region = 89 }
 0x4ca   :  { %3539 = vsyncpa [#allocation3], 1 }
 0x4cb   :  { %3541 = vsyncpa [#allocation3 + $0x1], 1 }

</bundles_post_ra>
